<compile_context>
chip_gen: v7x
topology: tpu7x:2x2x1
jax: 0.10.0
libtpu: 0.0.40
codegen_flags: <defaults>
</compile_context>

<pallas_src>
import math

import jax
import jax.numpy as jnp
from jax import lax
from jax.experimental import pallas as pl
from jax.experimental.pallas import tpu as pltpu

# ------------------------- small ViT configuration -------------------------
B = 2            # batch
IN_CHANS = 1     # ViTModel uses in_chans=1
IMG = 16         # small square image
PATCH = 8        # patch size -> 2x2 = 4 patches
NUM_PATCHES = (IMG // PATCH) ** 2
EMBED_DIM = 32
HEADS = 4
HEAD_DIM = EMBED_DIM // HEADS
DEPTH = 2
MLP_DIM = 4 * EMBED_DIM
NUM_CLASSES = 1
NUM_TOKENS = NUM_PATCHES + 2          # cls + dist (distilled model)
LN_EPS = 1e-6
ATTN_SCALE = 1.0 / math.sqrt(HEAD_DIM)
INV_SQRT2 = 1.0 / math.sqrt(2.0)

_VMEM = pl.BlockSpec(memory_space=pltpu.MemorySpace.VMEM)
_F32 = jnp.float32
_BF16 = jnp.bfloat16


# ---------------------------- in-kernel helpers -----------------------------
def _layernorm(x, g, b):
    x = x.astype(_F32)
    mean = jnp.mean(x, axis=-1, keepdims=True)
    xc = x - mean
    var = jnp.mean(xc * xc, axis=-1, keepdims=True)
    return xc * lax.rsqrt(var + LN_EPS) * g + b


def _gelu(x):
    # exact (erf) GELU, matching torch.nn.GELU(approximate='none')
    return 0.5 * x * (1.0 + lax.erf(x * INV_SQRT2))


# ----------------------------- fused ViT kernel ------------------------------
def _vit_kernel(
    # inputs / parameters (all VMEM-resident for the whole kernel)
    patches_ref, patch_w_ref, patch_b_ref, cls_dist_ref, pos_ref,
    ln1_g_ref, ln1_b_ref,
    wq_ref, bq_ref, wk_ref, bk_ref, wv_ref, bv_ref,
    proj_w_ref, proj_b_ref,
    ln2_g_ref, ln2_b_ref,
    fc1_w_ref, fc1_b_ref, fc2_w_ref, fc2_b_ref,
    lnf_g_ref, lnf_b_ref, head_w_ref, head_b_ref,
    # output
    out_ref,
):
    f32 = _F32
    bf16 = _BF16

    # ---- patch embedding (strided conv as matmul) + token assembly ----
    # bf16 operands, f32 accumulation (MXU); bias add in f32 (VPU).
    tok = jnp.dot(patches_ref[...].astype(bf16), patch_w_ref[...],
                  preferred_element_type=f32) + patch_b_ref[...]
    pos = pos_ref[...]                                # (NUM_TOKENS, D)
    cd = cls_dist_ref[...] + pos[0:2, :]              # (2, D) cls/dist + pos
    pos_p = pos[2:NUM_TOKENS, :]                      # (NUM_PATCHES, D)
    rows = []
    for b in range(B):
        rows.append(cd)
        rows.append(tok[b * NUM_PATCHES:(b + 1) * NUM_PATCHES, :] + pos_p)
    x = jnp.concatenate(rows, axis=0)                 # (B*NUM_TOKENS, D) value
    # pos_drop: identity in eval mode

    # ---- transformer blocks (statically unrolled, activations stay in vregs)
    for d in range(DEPTH):
        # attention sub-block
        h = _layernorm(x, ln1_g_ref[d], ln1_b_ref[d]).astype(bf16)
        # Wq / bq already scaled by ATTN_SCALE at pack time.
        q = jnp.dot(h, wq_ref[d], preferred_element_type=f32) + bq_ref[d]
        k = jnp.dot(h, wk_ref[d], preferred_element_type=f32) + bk_ref[d]
        v = jnp.dot(h, wv_ref[d], preferred_element_type=f32) + bv_ref[d]
        batch_outs = []
        for b in range(B):
            r0 = b * NUM_TOKENS
            head_outs = []
            for hh in range(HEADS):
                c0 = hh * HEAD_DIM
                qh = q[r0:r0 + NUM_TOKENS, c0:c0 + HEAD_DIM].astype(bf16)
                kh = k[r0:r0 + NUM_TOKENS, c0:c0 + HEAD_DIM].astype(bf16)
                vh = v[r0:r0 + NUM_TOKENS, c0:c0 + HEAD_DIM].astype(bf16)
                # scores: contract over head_dim (no explicit transpose)
                s = lax.dot_general(qh, kh, (((1,), (1,)), ((), ())),
                                    preferred_element_type=f32)
                s = s - jnp.max(s, axis=-1, keepdims=True)
                p = jnp.exp(s)
                # EUP reciprocal instead of a VALU divide
                p = p * pl.reciprocal(jnp.sum(p, axis=-1, keepdims=True),
                                      approx=True)
                head_outs.append(jnp.dot(p.astype(bf16), vh,
                                         preferred_element_type=f32))
            batch_outs.append(jnp.concatenate(head_outs, axis=-1))  # (N, D)
        o = jnp.concatenate(batch_outs, axis=0)        # (B*N, D) value (no scratch)
        o = jnp.dot(o.astype(bf16), proj_w_ref[d],
                    preferred_element_type=f32) + proj_b_ref[d]
        x = x + o                                      # residual (value carry)

        # MLP sub-block
        h = _layernorm(x, ln2_g_ref[d], ln2_b_ref[d]).astype(bf16)
        h = jnp.dot(h, fc1_w_ref[d], preferred_element_type=f32) + fc1_b_ref[d]
        h = _gelu(h)
        h = jnp.dot(h.astype(bf16), fc2_w_ref[d],
                    preferred_element_type=f32) + fc2_b_ref[d]
        x = x + h                                      # residual (value carry)

    # ---- final LN + fused distilled head ----
    xf = _layernorm(x, lnf_g_ref[...], lnf_b_ref[...])
    z_rows = []
    for b in range(B):
        r0 = b * NUM_TOKENS
        z_rows.append(jnp.concatenate([xf[r0:r0 + 1, :],          # cls token
                                       xf[r0 + 1:r0 + 2, :]],     # dist token
                                      axis=-1))                   # (1, 2D)
    z = jnp.concatenate(z_rows, axis=0)                            # (B, 2D)
    # head_w already carries the distilled 0.5; head_b pre-averaged.
    out = jnp.dot(z.astype(_BF16), head_w_ref[...],
                  preferred_element_type=f32) + head_b_ref[...]
    out_ref[...] = out.astype(out_ref.dtype)


# ------------------------------- JAX glue -----------------------------------
def extract_patches(x):
    """NCHW -> (B*num_patches, C*P*P), patch pixel order = (c, i, j) to match
    the flattened Conv2d weight layout (D, C, P, P)."""
    b, c, h, w = x.shape
    hp, wp = h // PATCH, w // PATCH
    x = x.reshape(b, c, hp, PATCH, wp, PATCH)
    x = x.transpose(0, 2, 4, 1, 3, 5)              # (B, Hp, Wp, C, P, P)
    return x.reshape(b * hp * wp, c * PATCH * PATCH)


def pack_params(params):
    """One-time packing: DEPTH-stacked per-block params, bf16 matmul weights,
    lane-aligned Wq/Wk/Wv split, ATTN_SCALE folded into Wq/bq, distilled-head
    0.5 folded into head_w / head_b."""
    def stack_w(name):
        return jnp.stack([blk[name] for blk in params["blocks"]], axis=0)

    def stack_row(name):
        return jnp.stack([blk[name].reshape(1, -1) for blk in params["blocks"]],
                         axis=0).astype(_F32)

    qkv_w = stack_w("qkv_w")                              # (DEPTH, D, 3D) f32
    qkv_b = stack_row("qkv_b")                            # (DEPTH, 1, 3D) f32
    return dict(
        patch_w=params["patch_w"].astype(_BF16),
        patch_b=params["patch_b"].reshape(1, EMBED_DIM).astype(_F32),
        cls_dist=jnp.concatenate(
            [params["cls_token"].reshape(1, EMBED_DIM),
             params["dist_token"].reshape(1, EMBED_DIM)], axis=0).astype(_F32),
        pos=params["pos_embed"].reshape(NUM_TOKENS, EMBED_DIM).astype(_F32),
        ln1_g=stack_row("ln1_g"), ln1_b=stack_row("ln1_b"),
        wq=(qkv_w[:, :, 0:EMBED_DIM] * ATTN_SCALE).astype(_BF16),
        bq=(qkv_b[:, :, 0:EMBED_DIM] * ATTN_SCALE).astype(_F32),
        wk=qkv_w[:, :, EMBED_DIM:2 * EMBED_DIM].astype(_BF16),
        bk=qkv_b[:, :, EMBED_DIM:2 * EMBED_DIM],
        wv=qkv_w[:, :, 2 * EMBED_DIM:3 * EMBED_DIM].astype(_BF16),
        bv=qkv_b[:, :, 2 * EMBED_DIM:3 * EMBED_DIM],
        proj_w=stack_w("proj_w").astype(_BF16), proj_b=stack_row("proj_b"),
        ln2_g=stack_row("ln2_g"), ln2_b=stack_row("ln2_b"),
        fc1_w=stack_w("fc1_w").astype(_BF16), fc1_b=stack_row("fc1_b"),
        fc2_w=stack_w("fc2_w").astype(_BF16), fc2_b=stack_row("fc2_b"),
        lnf_g=params["ln_g"].reshape(1, EMBED_DIM).astype(_F32),
        lnf_b=params["ln_b"].reshape(1, EMBED_DIM).astype(_F32),
        head_w=(0.5 * jnp.concatenate([params["head_w"],
                                       params["head_dist_w"]], axis=0)
                ).astype(_BF16),
        head_b=(0.5 * (params["head_b"] + params["head_dist_b"])
                ).reshape(1, NUM_CLASSES).astype(_F32),
    )


def vit_forward(x, p):
    b = x.shape[0]
    patches = extract_patches(x)                       # (B*np, C*P*P)
    args = (
        patches,
        p["patch_w"], p["patch_b"], p["cls_dist"], p["pos"],
        p["ln1_g"], p["ln1_b"],
        p["wq"], p["bq"], p["wk"], p["bk"], p["wv"], p["bv"],
        p["proj_w"], p["proj_b"],
        p["ln2_g"], p["ln2_b"],
        p["fc1_w"], p["fc1_b"], p["fc2_w"], p["fc2_b"],
        p["lnf_g"], p["lnf_b"], p["head_w"], p["head_b"],
    )
    return pl.pallas_call(
        _vit_kernel,
        out_shape=jax.ShapeDtypeStruct((b, NUM_CLASSES), jnp.float32),
        in_specs=[_VMEM] * len(args),
        out_specs=_VMEM,
    )(*args)
    # TODO(synk): at real deit-base scale, add a grid: "parallel" axis over
    # token-row blocks (uses both v7x TensorCores) and an "arbitrary" DEPTH
    # axis streaming per-block bf16 weights via BlockSpec index_map, with
    # vmem_limit_bytes raised via pltpu.CompilerParams.  At this toy size the
    # per-grid-step overhead would dominate, so the kernel stays grid-less.


# --------------------------- deterministic params ---------------------------
def init_params(key):
    keys = iter(jax.random.split(key, 64))

    def nrm(shape, scale=0.02):
        return (scale * jax.random.normal(next(keys), shape)).astype(_F32)

    def ones(shape):
        return jnp.ones(shape, _F32)

    def zeros(shape):
        return jnp.zeros(shape, _F32)

    params = dict(
        patch_w=nrm((IN_CHANS * PATCH * PATCH, EMBED_DIM)),
        patch_b=nrm((EMBED_DIM,)),
        cls_token=nrm((1, 1, EMBED_DIM)),
        dist_token=nrm((1, 1, EMBED_DIM)),
        pos_embed=nrm((1, NUM_TOKENS, EMBED_DIM)),
        ln_g=ones((EMBED_DIM,)), ln_b=zeros((EMBED_DIM,)),
        head_w=nrm((EMBED_DIM, NUM_CLASSES)), head_b=zeros((NUM_CLASSES,)),
        head_dist_w=nrm((EMBED_DIM, NUM_CLASSES)), head_dist_b=zeros((NUM_CLASSES,)),
        blocks=[],
    )
    for _ in range(DEPTH):
        params["blocks"].append(dict(
            ln1_g=ones((EMBED_DIM,)), ln1_b=zeros((EMBED_DIM,)),
            qkv_w=nrm((EMBED_DIM, 3 * EMBED_DIM)), qkv_b=zeros((3 * EMBED_DIM,)),
            proj_w=nrm((EMBED_DIM, EMBED_DIM)), proj_b=zeros((EMBED_DIM,)),
            ln2_g=ones((EMBED_DIM,)), ln2_b=zeros((EMBED_DIM,)),
            fc1_w=nrm((EMBED_DIM, MLP_DIM)), fc1_b=zeros((MLP_DIM,)),
            fc2_w=nrm((MLP_DIM, EMBED_DIM)), fc2_b=zeros((EMBED_DIM,)),
        ))
    return params


if __name__ == "__main__":
    key = jax.random.PRNGKey(0)
    k_param, k_x = jax.random.split(key)
    params = init_params(k_param)
    packed = pack_params(params)          # one-time packing (bf16, DEPTH-stacked)
    x = jax.random.normal(k_x, (B, IN_CHANS, IMG, IMG), dtype=jnp.float32)

    out = jax.jit(vit_forward)(x, packed)
    jax.block_until_ready(out)
    assert out.shape == (B, NUM_CLASSES), out.shape
    # TODO(synk): dropout layers (pos_drop/attn_drop/proj_drop/head_drop) are
    # identity in eval mode and therefore intentionally omitted.
    print("KERNEL_OK")
</pallas_src>

<mosaic_0001>
module attributes {stable_mosaic.version = 11 : i64} {
  func.func @_vit_kernel(%arg0: memref<8x64xf32, #tpu.memory_space<vmem>>, %arg1: memref<64x32xbf16, #tpu.memory_space<vmem>>, %arg2: memref<1x32xf32, #tpu.memory_space<vmem>>, %arg3: memref<2x32xf32, #tpu.memory_space<vmem>>, %arg4: memref<6x32xf32, #tpu.memory_space<vmem>>, %arg5: memref<2x1x32xf32, #tpu.memory_space<vmem>>, %arg6: memref<2x1x32xf32, #tpu.memory_space<vmem>>, %arg7: memref<2x32x32xbf16, #tpu.memory_space<vmem>>, %arg8: memref<2x1x32xf32, #tpu.memory_space<vmem>>, %arg9: memref<2x32x32xbf16, #tpu.memory_space<vmem>>, %arg10: memref<2x1x32xf32, #tpu.memory_space<vmem>>, %arg11: memref<2x32x32xbf16, #tpu.memory_space<vmem>>, %arg12: memref<2x1x32xf32, #tpu.memory_space<vmem>>, %arg13: memref<2x32x32xbf16, #tpu.memory_space<vmem>>, %arg14: memref<2x1x32xf32, #tpu.memory_space<vmem>>, %arg15: memref<2x1x32xf32, #tpu.memory_space<vmem>>, %arg16: memref<2x1x32xf32, #tpu.memory_space<vmem>>, %arg17: memref<2x32x128xbf16, #tpu.memory_space<vmem>>, %arg18: memref<2x1x128xf32, #tpu.memory_space<vmem>>, %arg19: memref<2x128x32xbf16, #tpu.memory_space<vmem>>, %arg20: memref<2x1x32xf32, #tpu.memory_space<vmem>>, %arg21: memref<1x32xf32, #tpu.memory_space<vmem>>, %arg22: memref<1x32xf32, #tpu.memory_space<vmem>>, %arg23: memref<64x1xbf16, #tpu.memory_space<vmem>>, %arg24: memref<1x1xf32, #tpu.memory_space<vmem>>, %arg25: memref<2x1xf32, #tpu.memory_space<vmem>>) attributes {dimension_semantics = [], scalar_prefetch = 0 : i64, scratch_operands = 0 : i64, tpu.core_type = #tpu.core_type<tc>} {
    %c0 = arith.constant 0 : index
    %c0_0 = arith.constant 0 : index
    %0 = vector.load %arg0[%c0, %c0_0] : memref<8x64xf32, #tpu.memory_space<vmem>>, vector<8x64xf32>
    %1 = arith.truncf %0 : vector<8x64xf32> to vector<8x64xbf16>
    %c0_1 = arith.constant 0 : index
    %c0_2 = arith.constant 0 : index
    %2 = vector.load %arg1[%c0_1, %c0_2] : memref<64x32xbf16, #tpu.memory_space<vmem>>, vector<64x32xbf16>
    %cst = arith.constant dense<0.000000e+00> : vector<8x32xf32>
    %3 = tpu.matmul %1, %2, %cst {dimension_numbers = #tpu.dot_dimension_numbers<[1], [0], [0], [1], [0, 0, 1, 1], [], []>} : vector<8x64xbf16>, vector<64x32xbf16>, vector<8x32xf32> -> vector<8x32xf32>
    %c0_3 = arith.constant 0 : index
    %c0_4 = arith.constant 0 : index
    %4 = vector.load %arg2[%c0_3, %c0_4] : memref<1x32xf32, #tpu.memory_space<vmem>>, vector<1x32xf32>
    %5 = vector.broadcast %4 : vector<1x32xf32> to vector<8x32xf32>
    %6 = arith.addf %3, %5 : vector<8x32xf32>
    %c0_5 = arith.constant 0 : index
    %c0_6 = arith.constant 0 : index
    %7 = vector.load %arg4[%c0_5, %c0_6] : memref<6x32xf32, #tpu.memory_space<vmem>>, vector<6x32xf32>
    %c0_7 = arith.constant 0 : index
    %c0_8 = arith.constant 0 : index
    %8 = vector.load %arg3[%c0_7, %c0_8] : memref<2x32xf32, #tpu.memory_space<vmem>>, vector<2x32xf32>
    %9 = vector.extract_strided_slice %7 {offsets = [0, 0], sizes = [2, 32], strides = [1, 1]} : vector<6x32xf32> to vector<2x32xf32>
    %10 = arith.addf %8, %9 : vector<2x32xf32>
    %11 = vector.extract_strided_slice %7 {offsets = [2, 0], sizes = [4, 32], strides = [1, 1]} : vector<6x32xf32> to vector<4x32xf32>
    %12 = vector.extract_strided_slice %6 {offsets = [0, 0], sizes = [4, 32], strides = [1, 1]} : vector<8x32xf32> to vector<4x32xf32>
    %13 = arith.addf %12, %11 : vector<4x32xf32>
    %14 = vector.extract_strided_slice %6 {offsets = [4, 0], sizes = [4, 32], strides = [1, 1]} : vector<8x32xf32> to vector<4x32xf32>
    %15 = arith.addf %14, %11 : vector<4x32xf32>
    %16 = tpu.concatenate %10, %13, %10, %15 in 0 : vector<2x32xf32>, vector<4x32xf32>, vector<2x32xf32>, vector<4x32xf32> -> vector<12x32xf32>
    %c0_9 = arith.constant 0 : index
    %c0_10 = arith.constant 0 : index
    %c0_11 = arith.constant 0 : index
    %17 = vector.load %arg5[%c0_9, %c0_10, %c0_11] : memref<2x1x32xf32, #tpu.memory_space<vmem>>, vector<1x1x32xf32>
    %18 = vector.shape_cast %17 : vector<1x1x32xf32> to vector<1x32xf32>
    %c0_12 = arith.constant 0 : index
    %c0_13 = arith.constant 0 : index
    %c0_14 = arith.constant 0 : index
    %19 = vector.load %arg6[%c0_12, %c0_13, %c0_14] : memref<2x1x32xf32, #tpu.memory_space<vmem>>, vector<1x1x32xf32>
    %20 = vector.shape_cast %19 : vector<1x1x32xf32> to vector<1x32xf32>
    %cst_15 = arith.constant dense<0.000000e+00> : vector<12xf32>
    %21 = vector.multi_reduction <add>, %16, %cst_15 [1] : vector<12x32xf32> to vector<12xf32>
    %22 = vector.shape_cast %21 : vector<12xf32> to vector<12x1xf32>
    %cst_16 = arith.constant 3.200000e+01 : f32
    %23 = vector.broadcast %cst_16 : f32 to vector<12x1xf32>
    %24 = arith.divf %22, %23 : vector<12x1xf32>
    %25 = vector.broadcast %24 : vector<12x1xf32> to vector<12x32xf32>
    %26 = arith.subf %16, %25 : vector<12x32xf32>
    %27 = arith.mulf %26, %26 : vector<12x32xf32>
    %cst_17 = arith.constant dense<0.000000e+00> : vector<12xf32>
    %28 = vector.multi_reduction <add>, %27, %cst_17 [1] : vector<12x32xf32> to vector<12xf32>
    %29 = vector.shape_cast %28 : vector<12xf32> to vector<12x1xf32>
    %cst_18 = arith.constant 3.200000e+01 : f32
    %30 = vector.broadcast %cst_18 : f32 to vector<12x1xf32>
    %31 = arith.divf %29, %30 : vector<12x1xf32>
    %cst_19 = arith.constant 9.99999997E-7 : f32
    %32 = vector.broadcast %cst_19 : f32 to vector<12x1xf32>
    %33 = arith.addf %31, %32 : vector<12x1xf32>
    %34 = math.rsqrt %33 : vector<12x1xf32>
    %35 = vector.broadcast %34 : vector<12x1xf32> to vector<12x32xf32>
    %36 = arith.mulf %26, %35 : vector<12x32xf32>
    %37 = vector.broadcast %18 : vector<1x32xf32> to vector<12x32xf32>
    %38 = arith.mulf %36, %37 : vector<12x32xf32>
    %39 = vector.broadcast %20 : vector<1x32xf32> to vector<12x32xf32>
    %40 = arith.addf %38, %39 : vector<12x32xf32>
    %41 = arith.truncf %40 : vector<12x32xf32> to vector<12x32xbf16>
    %c0_20 = arith.constant 0 : index
    %c0_21 = arith.constant 0 : index
    %c0_22 = arith.constant 0 : index
    %42 = vector.load %arg7[%c0_20, %c0_21, %c0_22] : memref<2x32x32xbf16, #tpu.memory_space<vmem>>, vector<1x32x32xbf16>
    %43 = vector.shape_cast %42 : vector<1x32x32xbf16> to vector<32x32xbf16>
    %cst_23 = arith.constant dense<0.000000e+00> : vector<12x32xf32>
    %44 = tpu.matmul %41, %43, %cst_23 {dimension_numbers = #tpu.dot_dimension_numbers<[1], [0], [0], [1], [0, 0, 1, 1], [], []>} : vector<12x32xbf16>, vector<32x32xbf16>, vector<12x32xf32> -> vector<12x32xf32>
    %c0_24 = arith.constant 0 : index
    %c0_25 = arith.constant 0 : index
    %c0_26 = arith.constant 0 : index
    %45 = vector.load %arg8[%c0_24, %c0_25, %c0_26] : memref<2x1x32xf32, #tpu.memory_space<vmem>>, vector<1x1x32xf32>
    %46 = vector.shape_cast %45 : vector<1x1x32xf32> to vector<1x32xf32>
    %47 = vector.broadcast %46 : vector<1x32xf32> to vector<12x32xf32>
    %48 = arith.addf %44, %47 : vector<12x32xf32>
    %c0_27 = arith.constant 0 : index
    %c0_28 = arith.constant 0 : index
    %c0_29 = arith.constant 0 : index
    %49 = vector.load %arg9[%c0_27, %c0_28, %c0_29] : memref<2x32x32xbf16, #tpu.memory_space<vmem>>, vector<1x32x32xbf16>
    %50 = vector.shape_cast %49 : vector<1x32x32xbf16> to vector<32x32xbf16>
    %cst_30 = arith.constant dense<0.000000e+00> : vector<12x32xf32>
    %51 = tpu.matmul %41, %50, %cst_30 {dimension_numbers = #tpu.dot_dimension_numbers<[1], [0], [0], [1], [0, 0, 1, 1], [], []>} : vector<12x32xbf16>, vector<32x32xbf16>, vector<12x32xf32> -> vector<12x32xf32>
    %c0_31 = arith.constant 0 : index
    %c0_32 = arith.constant 0 : index
    %c0_33 = arith.constant 0 : index
    %52 = vector.load %arg10[%c0_31, %c0_32, %c0_33] : memref<2x1x32xf32, #tpu.memory_space<vmem>>, vector<1x1x32xf32>
    %53 = vector.shape_cast %52 : vector<1x1x32xf32> to vector<1x32xf32>
    %54 = vector.broadcast %53 : vector<1x32xf32> to vector<12x32xf32>
    %55 = arith.addf %51, %54 : vector<12x32xf32>
    %c0_34 = arith.constant 0 : index
    %c0_35 = arith.constant 0 : index
    %c0_36 = arith.constant 0 : index
    %56 = vector.load %arg11[%c0_34, %c0_35, %c0_36] : memref<2x32x32xbf16, #tpu.memory_space<vmem>>, vector<1x32x32xbf16>
    %57 = vector.shape_cast %56 : vector<1x32x32xbf16> to vector<32x32xbf16>
    %cst_37 = arith.constant dense<0.000000e+00> : vector<12x32xf32>
    %58 = tpu.matmul %41, %57, %cst_37 {dimension_numbers = #tpu.dot_dimension_numbers<[1], [0], [0], [1], [0, 0, 1, 1], [], []>} : vector<12x32xbf16>, vector<32x32xbf16>, vector<12x32xf32> -> vector<12x32xf32>
    %c0_38 = arith.constant 0 : index
    %c0_39 = arith.constant 0 : index
    %c0_40 = arith.constant 0 : index
    %59 = vector.load %arg12[%c0_38, %c0_39, %c0_40] : memref<2x1x32xf32, #tpu.memory_space<vmem>>, vector<1x1x32xf32>
    %60 = vector.shape_cast %59 : vector<1x1x32xf32> to vector<1x32xf32>
    %61 = vector.broadcast %60 : vector<1x32xf32> to vector<12x32xf32>
    %62 = arith.addf %58, %61 : vector<12x32xf32>
    %63 = vector.extract_strided_slice %48 {offsets = [0, 0], sizes = [6, 8], strides = [1, 1]} : vector<12x32xf32> to vector<6x8xf32>
    %64 = arith.truncf %63 : vector<6x8xf32> to vector<6x8xbf16>
    %65 = vector.extract_strided_slice %55 {offsets = [0, 0], sizes = [6, 8], strides = [1, 1]} : vector<12x32xf32> to vector<6x8xf32>
    %66 = arith.truncf %65 : vector<6x8xf32> to vector<6x8xbf16>
    %67 = vector.extract_strided_slice %62 {offsets = [0, 0], sizes = [6, 8], strides = [1, 1]} : vector<12x32xf32> to vector<6x8xf32>
    %68 = arith.truncf %67 : vector<6x8xf32> to vector<6x8xbf16>
    %cst_41 = arith.constant dense<0.000000e+00> : vector<6x6xf32>
    %69 = tpu.matmul %64, %66, %cst_41 {dimension_numbers = #tpu.dot_dimension_numbers<[1], [1], [0], [0], [0, 0, 1, 0], [], []>} : vector<6x8xbf16>, vector<6x8xbf16>, vector<6x6xf32> -> vector<6x6xf32>
    %cst_42 = arith.constant dense<0xFF800000> : vector<6xf32>
    %70 = vector.multi_reduction <maximumf>, %69, %cst_42 [1] : vector<6x6xf32> to vector<6xf32>
    %71 = vector.shape_cast %70 : vector<6xf32> to vector<6x1xf32>
    %72 = vector.broadcast %71 : vector<6x1xf32> to vector<6x6xf32>
    %73 = arith.subf %69, %72 : vector<6x6xf32>
    %74 = math.exp %73 : vector<6x6xf32>
    %cst_43 = arith.constant dense<0.000000e+00> : vector<6xf32>
    %75 = vector.multi_reduction <add>, %74, %cst_43 [1] : vector<6x6xf32> to vector<6xf32>
    %76 = vector.shape_cast %75 : vector<6xf32> to vector<6x1xf32>
    %77 = tpu.reciprocal %76 {approx = true} : vector<6x1xf32> -> vector<6x1xf32>
    %78 = vector.broadcast %77 : vector<6x1xf32> to vector<6x6xf32>
    %79 = arith.mulf %74, %78 : vector<6x6xf32>
    %80 = arith.truncf %79 : vector<6x6xf32> to vector<6x6xbf16>
    %cst_44 = arith.constant dense<0.000000e+00> : vector<6x8xf32>
    %81 = tpu.matmul %80, %68, %cst_44 {dimension_numbers = #tpu.dot_dimension_numbers<[1], [0], [0], [1], [0, 0, 1, 1], [], []>} : vector<6x6xbf16>, vector<6x8xbf16>, vector<6x8xf32> -> vector<6x8xf32>
    %82 = vector.extract_strided_slice %48 {offsets = [0, 8], sizes = [6, 8], strides = [1, 1]} : vector<12x32xf32> to vector<6x8xf32>
    %83 = arith.truncf %82 : vector<6x8xf32> to vector<6x8xbf16>
    %84 = vector.extract_strided_slice %55 {offsets = [0, 8], sizes = [6, 8], strides = [1, 1]} : vector<12x32xf32> to vector<6x8xf32>
    %85 = arith.truncf %84 : vector<6x8xf32> to vector<6x8xbf16>
    %86 = vector.extract_strided_slice %62 {offsets = [0, 8], sizes = [6, 8], strides = [1, 1]} : vector<12x32xf32> to vector<6x8xf32>
    %87 = arith.truncf %86 : vector<6x8xf32> to vector<6x8xbf16>
    %cst_45 = arith.constant dense<0.000000e+00> : vector<6x6xf32>
    %88 = tpu.matmul %83, %85, %cst_45 {dimension_numbers = #tpu.dot_dimension_numbers<[1], [1], [0], [0], [0, 0, 1, 0], [], []>} : vector<6x8xbf16>, vector<6x8xbf16>, vector<6x6xf32> -> vector<6x6xf32>
    %cst_46 = arith.constant dense<0xFF800000> : vector<6xf32>
    %89 = vector.multi_reduction <maximumf>, %88, %cst_46 [1] : vector<6x6xf32> to vector<6xf32>
    %90 = vector.shape_cast %89 : vector<6xf32> to vector<6x1xf32>
    %91 = vector.broadcast %90 : vector<6x1xf32> to vector<6x6xf32>
    %92 = arith.subf %88, %91 : vector<6x6xf32>
    %93 = math.exp %92 : vector<6x6xf32>
    %cst_47 = arith.constant dense<0.000000e+00> : vector<6xf32>
    %94 = vector.multi_reduction <add>, %93, %cst_47 [1] : vector<6x6xf32> to vector<6xf32>
    %95 = vector.shape_cast %94 : vector<6xf32> to vector<6x1xf32>
    %96 = tpu.reciprocal %95 {approx = true} : vector<6x1xf32> -> vector<6x1xf32>
    %97 = vector.broadcast %96 : vector<6x1xf32> to vector<6x6xf32>
    %98 = arith.mulf %93, %97 : vector<6x6xf32>
    %99 = arith.truncf %98 : vector<6x6xf32> to vector<6x6xbf16>
    %cst_48 = arith.constant dense<0.000000e+00> : vector<6x8xf32>
    %100 = tpu.matmul %99, %87, %cst_48 {dimension_numbers = #tpu.dot_dimension_numbers<[1], [0], [0], [1], [0, 0, 1, 1], [], []>} : vector<6x6xbf16>, vector<6x8xbf16>, vector<6x8xf32> -> vector<6x8xf32>
    %101 = vector.extract_strided_slice %48 {offsets = [0, 16], sizes = [6, 8], strides = [1, 1]} : vector<12x32xf32> to vector<6x8xf32>
    %102 = arith.truncf %101 : vector<6x8xf32> to vector<6x8xbf16>
    %103 = vector.extract_strided_slice %55 {offsets = [0, 16], sizes = [6, 8], strides = [1, 1]} : vector<12x32xf32> to vector<6x8xf32>
    %104 = arith.truncf %103 : vector<6x8xf32> to vector<6x8xbf16>
    %105 = vector.extract_strided_slice %62 {offsets = [0, 16], sizes = [6, 8], strides = [1, 1]} : vector<12x32xf32> to vector<6x8xf32>
    %106 = arith.truncf %105 : vector<6x8xf32> to vector<6x8xbf16>
    %cst_49 = arith.constant dense<0.000000e+00> : vector<6x6xf32>
    %107 = tpu.matmul %102, %104, %cst_49 {dimension_numbers = #tpu.dot_dimension_numbers<[1], [1], [0], [0], [0, 0, 1, 0], [], []>} : vector<6x8xbf16>, vector<6x8xbf16>, vector<6x6xf32> -> vector<6x6xf32>
    %cst_50 = arith.constant dense<0xFF800000> : vector<6xf32>
    %108 = vector.multi_reduction <maximumf>, %107, %cst_50 [1] : vector<6x6xf32> to vector<6xf32>
    %109 = vector.shape_cast %108 : vector<6xf32> to vector<6x1xf32>
    %110 = vector.broadcast %109 : vector<6x1xf32> to vector<6x6xf32>
    %111 = arith.subf %107, %110 : vector<6x6xf32>
    %112 = math.exp %111 : vector<6x6xf32>
    %cst_51 = arith.constant dense<0.000000e+00> : vector<6xf32>
    %113 = vector.multi_reduction <add>, %112, %cst_51 [1] : vector<6x6xf32> to vector<6xf32>
    %114 = vector.shape_cast %113 : vector<6xf32> to vector<6x1xf32>
    %115 = tpu.reciprocal %114 {approx = true} : vector<6x1xf32> -> vector<6x1xf32>
    %116 = vector.broadcast %115 : vector<6x1xf32> to vector<6x6xf32>
    %117 = arith.mulf %112, %116 : vector<6x6xf32>
    %118 = arith.truncf %117 : vector<6x6xf32> to vector<6x6xbf16>
    %cst_52 = arith.constant dense<0.000000e+00> : vector<6x8xf32>
    %119 = tpu.matmul %118, %106, %cst_52 {dimension_numbers = #tpu.dot_dimension_numbers<[1], [0], [0], [1], [0, 0, 1, 1], [], []>} : vector<6x6xbf16>, vector<6x8xbf16>, vector<6x8xf32> -> vector<6x8xf32>
    %120 = vector.extract_strided_slice %48 {offsets = [0, 24], sizes = [6, 8], strides = [1, 1]} : vector<12x32xf32> to vector<6x8xf32>
    %121 = arith.truncf %120 : vector<6x8xf32> to vector<6x8xbf16>
    %122 = vector.extract_strided_slice %55 {offsets = [0, 24], sizes = [6, 8], strides = [1, 1]} : vector<12x32xf32> to vector<6x8xf32>
    %123 = arith.truncf %122 : vector<6x8xf32> to vector<6x8xbf16>
    %124 = vector.extract_strided_slice %62 {offsets = [0, 24], sizes = [6, 8], strides = [1, 1]} : vector<12x32xf32> to vector<6x8xf32>
    %125 = arith.truncf %124 : vector<6x8xf32> to vector<6x8xbf16>
    %cst_53 = arith.constant dense<0.000000e+00> : vector<6x6xf32>
    %126 = tpu.matmul %121, %123, %cst_53 {dimension_numbers = #tpu.dot_dimension_numbers<[1], [1], [0], [0], [0, 0, 1, 0], [], []>} : vector<6x8xbf16>, vector<6x8xbf16>, vector<6x6xf32> -> vector<6x6xf32>
    %cst_54 = arith.constant dense<0xFF800000> : vector<6xf32>
    %127 = vector.multi_reduction <maximumf>, %126, %cst_54 [1] : vector<6x6xf32> to vector<6xf32>
    %128 = vector.shape_cast %127 : vector<6xf32> to vector<6x1xf32>
    %129 = vector.broadcast %128 : vector<6x1xf32> to vector<6x6xf32>
    %130 = arith.subf %126, %129 : vector<6x6xf32>
    %131 = math.exp %130 : vector<6x6xf32>
    %cst_55 = arith.constant dense<0.000000e+00> : vector<6xf32>
    %132 = vector.multi_reduction <add>, %131, %cst_55 [1] : vector<6x6xf32> to vector<6xf32>
    %133 = vector.shape_cast %132 : vector<6xf32> to vector<6x1xf32>
    %134 = tpu.reciprocal %133 {approx = true} : vector<6x1xf32> -> vector<6x1xf32>
    %135 = vector.broadcast %134 : vector<6x1xf32> to vector<6x6xf32>
    %136 = arith.mulf %131, %135 : vector<6x6xf32>
    %137 = arith.truncf %136 : vector<6x6xf32> to vector<6x6xbf16>
    %cst_56 = arith.constant dense<0.000000e+00> : vector<6x8xf32>
    %138 = tpu.matmul %137, %125, %cst_56 {dimension_numbers = #tpu.dot_dimension_numbers<[1], [0], [0], [1], [0, 0, 1, 1], [], []>} : vector<6x6xbf16>, vector<6x8xbf16>, vector<6x8xf32> -> vector<6x8xf32>
    %139 = tpu.concatenate %81, %100, %119, %138 in 1 : vector<6x8xf32>, vector<6x8xf32>, vector<6x8xf32>, vector<6x8xf32> -> vector<6x32xf32>
    %140 = vector.extract_strided_slice %48 {offsets = [6, 0], sizes = [6, 8], strides = [1, 1]} : vector<12x32xf32> to vector<6x8xf32>
    %141 = arith.truncf %140 : vector<6x8xf32> to vector<6x8xbf16>
    %142 = vector.extract_strided_slice %55 {offsets = [6, 0], sizes = [6, 8], strides = [1, 1]} : vector<12x32xf32> to vector<6x8xf32>
    %143 = arith.truncf %142 : vector<6x8xf32> to vector<6x8xbf16>
    %144 = vector.extract_strided_slice %62 {offsets = [6, 0], sizes = [6, 8], strides = [1, 1]} : vector<12x32xf32> to vector<6x8xf32>
    %145 = arith.truncf %144 : vector<6x8xf32> to vector<6x8xbf16>
    %cst_57 = arith.constant dense<0.000000e+00> : vector<6x6xf32>
    %146 = tpu.matmul %141, %143, %cst_57 {dimension_numbers = #tpu.dot_dimension_numbers<[1], [1], [0], [0], [0, 0, 1, 0], [], []>} : vector<6x8xbf16>, vector<6x8xbf16>, vector<6x6xf32> -> vector<6x6xf32>
    %cst_58 = arith.constant dense<0xFF800000> : vector<6xf32>
    %147 = vector.multi_reduction <maximumf>, %146, %cst_58 [1] : vector<6x6xf32> to vector<6xf32>
    %148 = vector.shape_cast %147 : vector<6xf32> to vector<6x1xf32>
    %149 = vector.broadcast %148 : vector<6x1xf32> to vector<6x6xf32>
    %150 = arith.subf %146, %149 : vector<6x6xf32>
    %151 = math.exp %150 : vector<6x6xf32>
    %cst_59 = arith.constant dense<0.000000e+00> : vector<6xf32>
    %152 = vector.multi_reduction <add>, %151, %cst_59 [1] : vector<6x6xf32> to vector<6xf32>
    %153 = vector.shape_cast %152 : vector<6xf32> to vector<6x1xf32>
    %154 = tpu.reciprocal %153 {approx = true} : vector<6x1xf32> -> vector<6x1xf32>
    %155 = vector.broadcast %154 : vector<6x1xf32> to vector<6x6xf32>
    %156 = arith.mulf %151, %155 : vector<6x6xf32>
    %157 = arith.truncf %156 : vector<6x6xf32> to vector<6x6xbf16>
    %cst_60 = arith.constant dense<0.000000e+00> : vector<6x8xf32>
    %158 = tpu.matmul %157, %145, %cst_60 {dimension_numbers = #tpu.dot_dimension_numbers<[1], [0], [0], [1], [0, 0, 1, 1], [], []>} : vector<6x6xbf16>, vector<6x8xbf16>, vector<6x8xf32> -> vector<6x8xf32>
    %159 = vector.extract_strided_slice %48 {offsets = [6, 8], sizes = [6, 8], strides = [1, 1]} : vector<12x32xf32> to vector<6x8xf32>
    %160 = arith.truncf %159 : vector<6x8xf32> to vector<6x8xbf16>
    %161 = vector.extract_strided_slice %55 {offsets = [6, 8], sizes = [6, 8], strides = [1, 1]} : vector<12x32xf32> to vector<6x8xf32>
    %162 = arith.truncf %161 : vector<6x8xf32> to vector<6x8xbf16>
    %163 = vector.extract_strided_slice %62 {offsets = [6, 8], sizes = [6, 8], strides = [1, 1]} : vector<12x32xf32> to vector<6x8xf32>
    %164 = arith.truncf %163 : vector<6x8xf32> to vector<6x8xbf16>
    %cst_61 = arith.constant dense<0.000000e+00> : vector<6x6xf32>
    %165 = tpu.matmul %160, %162, %cst_61 {dimension_numbers = #tpu.dot_dimension_numbers<[1], [1], [0], [0], [0, 0, 1, 0], [], []>} : vector<6x8xbf16>, vector<6x8xbf16>, vector<6x6xf32> -> vector<6x6xf32>
    %cst_62 = arith.constant dense<0xFF800000> : vector<6xf32>
    %166 = vector.multi_reduction <maximumf>, %165, %cst_62 [1] : vector<6x6xf32> to vector<6xf32>
    %167 = vector.shape_cast %166 : vector<6xf32> to vector<6x1xf32>
    %168 = vector.broadcast %167 : vector<6x1xf32> to vector<6x6xf32>
    %169 = arith.subf %165, %168 : vector<6x6xf32>
    %170 = math.exp %169 : vector<6x6xf32>
    %cst_63 = arith.constant dense<0.000000e+00> : vector<6xf32>
    %171 = vector.multi_reduction <add>, %170, %cst_63 [1] : vector<6x6xf32> to vector<6xf32>
    %172 = vector.shape_cast %171 : vector<6xf32> to vector<6x1xf32>
    %173 = tpu.reciprocal %172 {approx = true} : vector<6x1xf32> -> vector<6x1xf32>
    %174 = vector.broadcast %173 : vector<6x1xf32> to vector<6x6xf32>
    %175 = arith.mulf %170, %174 : vector<6x6xf32>
    %176 = arith.truncf %175 : vector<6x6xf32> to vector<6x6xbf16>
    %cst_64 = arith.constant dense<0.000000e+00> : vector<6x8xf32>
    %177 = tpu.matmul %176, %164, %cst_64 {dimension_numbers = #tpu.dot_dimension_numbers<[1], [0], [0], [1], [0, 0, 1, 1], [], []>} : vector<6x6xbf16>, vector<6x8xbf16>, vector<6x8xf32> -> vector<6x8xf32>
    %178 = vector.extract_strided_slice %48 {offsets = [6, 16], sizes = [6, 8], strides = [1, 1]} : vector<12x32xf32> to vector<6x8xf32>
    %179 = arith.truncf %178 : vector<6x8xf32> to vector<6x8xbf16>
    %180 = vector.extract_strided_slice %55 {offsets = [6, 16], sizes = [6, 8], strides = [1, 1]} : vector<12x32xf32> to vector<6x8xf32>
    %181 = arith.truncf %180 : vector<6x8xf32> to vector<6x8xbf16>
    %182 = vector.extract_strided_slice %62 {offsets = [6, 16], sizes = [6, 8], strides = [1, 1]} : vector<12x32xf32> to vector<6x8xf32>
    %183 = arith.truncf %182 : vector<6x8xf32> to vector<6x8xbf16>
    %cst_65 = arith.constant dense<0.000000e+00> : vector<6x6xf32>
    %184 = tpu.matmul %179, %181, %cst_65 {dimension_numbers = #tpu.dot_dimension_numbers<[1], [1], [0], [0], [0, 0, 1, 0], [], []>} : vector<6x8xbf16>, vector<6x8xbf16>, vector<6x6xf32> -> vector<6x6xf32>
    %cst_66 = arith.constant dense<0xFF800000> : vector<6xf32>
    %185 = vector.multi_reduction <maximumf>, %184, %cst_66 [1] : vector<6x6xf32> to vector<6xf32>
    %186 = vector.shape_cast %185 : vector<6xf32> to vector<6x1xf32>
    %187 = vector.broadcast %186 : vector<6x1xf32> to vector<6x6xf32>
    %188 = arith.subf %184, %187 : vector<6x6xf32>
    %189 = math.exp %188 : vector<6x6xf32>
    %cst_67 = arith.constant dense<0.000000e+00> : vector<6xf32>
    %190 = vector.multi_reduction <add>, %189, %cst_67 [1] : vector<6x6xf32> to vector<6xf32>
    %191 = vector.shape_cast %190 : vector<6xf32> to vector<6x1xf32>
    %192 = tpu.reciprocal %191 {approx = true} : vector<6x1xf32> -> vector<6x1xf32>
    %193 = vector.broadcast %192 : vector<6x1xf32> to vector<6x6xf32>
    %194 = arith.mulf %189, %193 : vector<6x6xf32>
    %195 = arith.truncf %194 : vector<6x6xf32> to vector<6x6xbf16>
    %cst_68 = arith.constant dense<0.000000e+00> : vector<6x8xf32>
    %196 = tpu.matmul %195, %183, %cst_68 {dimension_numbers = #tpu.dot_dimension_numbers<[1], [0], [0], [1], [0, 0, 1, 1], [], []>} : vector<6x6xbf16>, vector<6x8xbf16>, vector<6x8xf32> -> vector<6x8xf32>
    %197 = vector.extract_strided_slice %48 {offsets = [6, 24], sizes = [6, 8], strides = [1, 1]} : vector<12x32xf32> to vector<6x8xf32>
    %198 = arith.truncf %197 : vector<6x8xf32> to vector<6x8xbf16>
    %199 = vector.extract_strided_slice %55 {offsets = [6, 24], sizes = [6, 8], strides = [1, 1]} : vector<12x32xf32> to vector<6x8xf32>
    %200 = arith.truncf %199 : vector<6x8xf32> to vector<6x8xbf16>
    %201 = vector.extract_strided_slice %62 {offsets = [6, 24], sizes = [6, 8], strides = [1, 1]} : vector<12x32xf32> to vector<6x8xf32>
    %202 = arith.truncf %201 : vector<6x8xf32> to vector<6x8xbf16>
    %cst_69 = arith.constant dense<0.000000e+00> : vector<6x6xf32>
    %203 = tpu.matmul %198, %200, %cst_69 {dimension_numbers = #tpu.dot_dimension_numbers<[1], [1], [0], [0], [0, 0, 1, 0], [], []>} : vector<6x8xbf16>, vector<6x8xbf16>, vector<6x6xf32> -> vector<6x6xf32>
    %cst_70 = arith.constant dense<0xFF800000> : vector<6xf32>
    %204 = vector.multi_reduction <maximumf>, %203, %cst_70 [1] : vector<6x6xf32> to vector<6xf32>
    %205 = vector.shape_cast %204 : vector<6xf32> to vector<6x1xf32>
    %206 = vector.broadcast %205 : vector<6x1xf32> to vector<6x6xf32>
    %207 = arith.subf %203, %206 : vector<6x6xf32>
    %208 = math.exp %207 : vector<6x6xf32>
    %cst_71 = arith.constant dense<0.000000e+00> : vector<6xf32>
    %209 = vector.multi_reduction <add>, %208, %cst_71 [1] : vector<6x6xf32> to vector<6xf32>
    %210 = vector.shape_cast %209 : vector<6xf32> to vector<6x1xf32>
    %211 = tpu.reciprocal %210 {approx = true} : vector<6x1xf32> -> vector<6x1xf32>
    %212 = vector.broadcast %211 : vector<6x1xf32> to vector<6x6xf32>
    %213 = arith.mulf %208, %212 : vector<6x6xf32>
    %214 = arith.truncf %213 : vector<6x6xf32> to vector<6x6xbf16>
    %cst_72 = arith.constant dense<0.000000e+00> : vector<6x8xf32>
    %215 = tpu.matmul %214, %202, %cst_72 {dimension_numbers = #tpu.dot_dimension_numbers<[1], [0], [0], [1], [0, 0, 1, 1], [], []>} : vector<6x6xbf16>, vector<6x8xbf16>, vector<6x8xf32> -> vector<6x8xf32>
    %216 = tpu.concatenate %158, %177, %196, %215 in 1 : vector<6x8xf32>, vector<6x8xf32>, vector<6x8xf32>, vector<6x8xf32> -> vector<6x32xf32>
    %217 = tpu.concatenate %139, %216 in 0 : vector<6x32xf32>, vector<6x32xf32> -> vector<12x32xf32>
    %218 = arith.truncf %217 : vector<12x32xf32> to vector<12x32xbf16>
    %c0_73 = arith.constant 0 : index
    %c0_74 = arith.constant 0 : index
    %c0_75 = arith.constant 0 : index
    %219 = vector.load %arg13[%c0_73, %c0_74, %c0_75] : memref<2x32x32xbf16, #tpu.memory_space<vmem>>, vector<1x32x32xbf16>
    %220 = vector.shape_cast %219 : vector<1x32x32xbf16> to vector<32x32xbf16>
    %cst_76 = arith.constant dense<0.000000e+00> : vector<12x32xf32>
    %221 = tpu.matmul %218, %220, %cst_76 {dimension_numbers = #tpu.dot_dimension_numbers<[1], [0], [0], [1], [0, 0, 1, 1], [], []>} : vector<12x32xbf16>, vector<32x32xbf16>, vector<12x32xf32> -> vector<12x32xf32>
    %c0_77 = arith.constant 0 : index
    %c0_78 = arith.constant 0 : index
    %c0_79 = arith.constant 0 : index
    %222 = vector.load %arg14[%c0_77, %c0_78, %c0_79] : memref<2x1x32xf32, #tpu.memory_space<vmem>>, vector<1x1x32xf32>
    %223 = vector.shape_cast %222 : vector<1x1x32xf32> to vector<1x32xf32>
    %224 = vector.broadcast %223 : vector<1x32xf32> to vector<12x32xf32>
    %225 = arith.addf %221, %224 : vector<12x32xf32>
    %226 = arith.addf %16, %225 : vector<12x32xf32>
    %c0_80 = arith.constant 0 : index
    %c0_81 = arith.constant 0 : index
    %c0_82 = arith.constant 0 : index
    %227 = vector.load %arg15[%c0_80, %c0_81, %c0_82] : memref<2x1x32xf32, #tpu.memory_space<vmem>>, vector<1x1x32xf32>
    %228 = vector.shape_cast %227 : vector<1x1x32xf32> to vector<1x32xf32>
    %c0_83 = arith.constant 0 : index
    %c0_84 = arith.constant 0 : index
    %c0_85 = arith.constant 0 : index
    %229 = vector.load %arg16[%c0_83, %c0_84, %c0_85] : memref<2x1x32xf32, #tpu.memory_space<vmem>>, vector<1x1x32xf32>
    %230 = vector.shape_cast %229 : vector<1x1x32xf32> to vector<1x32xf32>
    %cst_86 = arith.constant dense<0.000000e+00> : vector<12xf32>
    %231 = vector.multi_reduction <add>, %226, %cst_86 [1] : vector<12x32xf32> to vector<12xf32>
    %232 = vector.shape_cast %231 : vector<12xf32> to vector<12x1xf32>
    %cst_87 = arith.constant 3.200000e+01 : f32
    %233 = vector.broadcast %cst_87 : f32 to vector<12x1xf32>
    %234 = arith.divf %232, %233 : vector<12x1xf32>
    %235 = vector.broadcast %234 : vector<12x1xf32> to vector<12x32xf32>
    %236 = arith.subf %226, %235 : vector<12x32xf32>
    %237 = arith.mulf %236, %236 : vector<12x32xf32>
    %cst_88 = arith.constant dense<0.000000e+00> : vector<12xf32>
    %238 = vector.multi_reduction <add>, %237, %cst_88 [1] : vector<12x32xf32> to vector<12xf32>
    %239 = vector.shape_cast %238 : vector<12xf32> to vector<12x1xf32>
    %cst_89 = arith.constant 3.200000e+01 : f32
    %240 = vector.broadcast %cst_89 : f32 to vector<12x1xf32>
    %241 = arith.divf %239, %240 : vector<12x1xf32>
    %cst_90 = arith.constant 9.99999997E-7 : f32
    %242 = vector.broadcast %cst_90 : f32 to vector<12x1xf32>
    %243 = arith.addf %241, %242 : vector<12x1xf32>
    %244 = math.rsqrt %243 : vector<12x1xf32>
    %245 = vector.broadcast %244 : vector<12x1xf32> to vector<12x32xf32>
    %246 = arith.mulf %236, %245 : vector<12x32xf32>
    %247 = vector.broadcast %228 : vector<1x32xf32> to vector<12x32xf32>
    %248 = arith.mulf %246, %247 : vector<12x32xf32>
    %249 = vector.broadcast %230 : vector<1x32xf32> to vector<12x32xf32>
    %250 = arith.addf %248, %249 : vector<12x32xf32>
    %251 = arith.truncf %250 : vector<12x32xf32> to vector<12x32xbf16>
    %c0_91 = arith.constant 0 : index
    %c0_92 = arith.constant 0 : index
    %c0_93 = arith.constant 0 : index
    %252 = vector.load %arg17[%c0_91, %c0_92, %c0_93] : memref<2x32x128xbf16, #tpu.memory_space<vmem>>, vector<1x32x128xbf16>
    %253 = vector.shape_cast %252 : vector<1x32x128xbf16> to vector<32x128xbf16>
    %cst_94 = arith.constant dense<0.000000e+00> : vector<12x128xf32>
    %254 = tpu.matmul %251, %253, %cst_94 {dimension_numbers = #tpu.dot_dimension_numbers<[1], [0], [0], [1], [0, 0, 1, 1], [], []>} : vector<12x32xbf16>, vector<32x128xbf16>, vector<12x128xf32> -> vector<12x128xf32>
    %c0_95 = arith.constant 0 : index
    %c0_96 = arith.constant 0 : index
    %c0_97 = arith.constant 0 : index
    %255 = vector.load %arg18[%c0_95, %c0_96, %c0_97] : memref<2x1x128xf32, #tpu.memory_space<vmem>>, vector<1x1x128xf32>
    %256 = vector.shape_cast %255 : vector<1x1x128xf32> to vector<1x128xf32>
    %257 = vector.broadcast %256 : vector<1x128xf32> to vector<12x128xf32>
    %258 = arith.addf %254, %257 : vector<12x128xf32>
    %cst_98 = arith.constant 5.000000e-01 : f32
    %259 = vector.broadcast %cst_98 : f32 to vector<12x128xf32>
    %260 = arith.mulf %259, %258 : vector<12x128xf32>
    %cst_99 = arith.constant 0.707106769 : f32
    %261 = vector.broadcast %cst_99 : f32 to vector<12x128xf32>
    %262 = arith.mulf %258, %261 : vector<12x128xf32>
    %263 = math.erf %262 : vector<12x128xf32>
    %cst_100 = arith.constant 1.000000e+00 : f32
    %264 = vector.broadcast %cst_100 : f32 to vector<12x128xf32>
    %265 = arith.addf %264, %263 : vector<12x128xf32>
    %266 = arith.mulf %260, %265 : vector<12x128xf32>
    %267 = arith.truncf %266 : vector<12x128xf32> to vector<12x128xbf16>
    %c0_101 = arith.constant 0 : index
    %c0_102 = arith.constant 0 : index
    %c0_103 = arith.constant 0 : index
    %268 = vector.load %arg19[%c0_101, %c0_102, %c0_103] : memref<2x128x32xbf16, #tpu.memory_space<vmem>>, vector<1x128x32xbf16>
    %269 = vector.shape_cast %268 : vector<1x128x32xbf16> to vector<128x32xbf16>
    %cst_104 = arith.constant dense<0.000000e+00> : vector<12x32xf32>
    %270 = tpu.matmul %267, %269, %cst_104 {dimension_numbers = #tpu.dot_dimension_numbers<[1], [0], [0], [1], [0, 0, 1, 1], [], []>} : vector<12x128xbf16>, vector<128x32xbf16>, vector<12x32xf32> -> vector<12x32xf32>
    %c0_105 = arith.constant 0 : index
    %c0_106 = arith.constant 0 : index
    %c0_107 = arith.constant 0 : index
    %271 = vector.load %arg20[%c0_105, %c0_106, %c0_107] : memref<2x1x32xf32, #tpu.memory_space<vmem>>, vector<1x1x32xf32>
    %272 = vector.shape_cast %271 : vector<1x1x32xf32> to vector<1x32xf32>
    %273 = vector.broadcast %272 : vector<1x32xf32> to vector<12x32xf32>
    %274 = arith.addf %270, %273 : vector<12x32xf32>
    %275 = arith.addf %226, %274 : vector<12x32xf32>
    %c1 = arith.constant 1 : index
    %c0_108 = arith.constant 0 : index
    %c0_109 = arith.constant 0 : index
    %276 = vector.load %arg5[%c1, %c0_108, %c0_109] : memref<2x1x32xf32, #tpu.memory_space<vmem>>, vector<1x1x32xf32>
    %277 = vector.shape_cast %276 : vector<1x1x32xf32> to vector<1x32xf32>
    %c1_110 = arith.constant 1 : index
    %c0_111 = arith.constant 0 : index
    %c0_112 = arith.constant 0 : index
    %278 = vector.load %arg6[%c1_110, %c0_111, %c0_112] : memref<2x1x32xf32, #tpu.memory_space<vmem>>, vector<1x1x32xf32>
    %279 = vector.shape_cast %278 : vector<1x1x32xf32> to vector<1x32xf32>
    %cst_113 = arith.constant dense<0.000000e+00> : vector<12xf32>
    %280 = vector.multi_reduction <add>, %275, %cst_113 [1] : vector<12x32xf32> to vector<12xf32>
    %281 = vector.shape_cast %280 : vector<12xf32> to vector<12x1xf32>
    %cst_114 = arith.constant 3.200000e+01 : f32
    %282 = vector.broadcast %cst_114 : f32 to vector<12x1xf32>
    %283 = arith.divf %281, %282 : vector<12x1xf32>
    %284 = vector.broadcast %283 : vector<12x1xf32> to vector<12x32xf32>
    %285 = arith.subf %275, %284 : vector<12x32xf32>
    %286 = arith.mulf %285, %285 : vector<12x32xf32>
    %cst_115 = arith.constant dense<0.000000e+00> : vector<12xf32>
    %287 = vector.multi_reduction <add>, %286, %cst_115 [1] : vector<12x32xf32> to vector<12xf32>
    %288 = vector.shape_cast %287 : vector<12xf32> to vector<12x1xf32>
    %cst_116 = arith.constant 3.200000e+01 : f32
    %289 = vector.broadcast %cst_116 : f32 to vector<12x1xf32>
    %290 = arith.divf %288, %289 : vector<12x1xf32>
    %cst_117 = arith.constant 9.99999997E-7 : f32
    %291 = vector.broadcast %cst_117 : f32 to vector<12x1xf32>
    %292 = arith.addf %290, %291 : vector<12x1xf32>
    %293 = math.rsqrt %292 : vector<12x1xf32>
    %294 = vector.broadcast %293 : vector<12x1xf32> to vector<12x32xf32>
    %295 = arith.mulf %285, %294 : vector<12x32xf32>
    %296 = vector.broadcast %277 : vector<1x32xf32> to vector<12x32xf32>
    %297 = arith.mulf %295, %296 : vector<12x32xf32>
    %298 = vector.broadcast %279 : vector<1x32xf32> to vector<12x32xf32>
    %299 = arith.addf %297, %298 : vector<12x32xf32>
    %300 = arith.truncf %299 : vector<12x32xf32> to vector<12x32xbf16>
    %c1_118 = arith.constant 1 : index
    %c0_119 = arith.constant 0 : index
    %c0_120 = arith.constant 0 : index
    %301 = vector.load %arg7[%c1_118, %c0_119, %c0_120] : memref<2x32x32xbf16, #tpu.memory_space<vmem>>, vector<1x32x32xbf16>
    %302 = vector.shape_cast %301 : vector<1x32x32xbf16> to vector<32x32xbf16>
    %cst_121 = arith.constant dense<0.000000e+00> : vector<12x32xf32>
    %303 = tpu.matmul %300, %302, %cst_121 {dimension_numbers = #tpu.dot_dimension_numbers<[1], [0], [0], [1], [0, 0, 1, 1], [], []>} : vector<12x32xbf16>, vector<32x32xbf16>, vector<12x32xf32> -> vector<12x32xf32>
    %c1_122 = arith.constant 1 : index
    %c0_123 = arith.constant 0 : index
    %c0_124 = arith.constant 0 : index
    %304 = vector.load %arg8[%c1_122, %c0_123, %c0_124] : memref<2x1x32xf32, #tpu.memory_space<vmem>>, vector<1x1x32xf32>
    %305 = vector.shape_cast %304 : vector<1x1x32xf32> to vector<1x32xf32>
    %306 = vector.broadcast %305 : vector<1x32xf32> to vector<12x32xf32>
    %307 = arith.addf %303, %306 : vector<12x32xf32>
    %c1_125 = arith.constant 1 : index
    %c0_126 = arith.constant 0 : index
    %c0_127 = arith.constant 0 : index
    %308 = vector.load %arg9[%c1_125, %c0_126, %c0_127] : memref<2x32x32xbf16, #tpu.memory_space<vmem>>, vector<1x32x32xbf16>
    %309 = vector.shape_cast %308 : vector<1x32x32xbf16> to vector<32x32xbf16>
    %cst_128 = arith.constant dense<0.000000e+00> : vector<12x32xf32>
    %310 = tpu.matmul %300, %309, %cst_128 {dimension_numbers = #tpu.dot_dimension_numbers<[1], [0], [0], [1], [0, 0, 1, 1], [], []>} : vector<12x32xbf16>, vector<32x32xbf16>, vector<12x32xf32> -> vector<12x32xf32>
    %c1_129 = arith.constant 1 : index
    %c0_130 = arith.constant 0 : index
    %c0_131 = arith.constant 0 : index
    %311 = vector.load %arg10[%c1_129, %c0_130, %c0_131] : memref<2x1x32xf32, #tpu.memory_space<vmem>>, vector<1x1x32xf32>
    %312 = vector.shape_cast %311 : vector<1x1x32xf32> to vector<1x32xf32>
    %313 = vector.broadcast %312 : vector<1x32xf32> to vector<12x32xf32>
    %314 = arith.addf %310, %313 : vector<12x32xf32>
    %c1_132 = arith.constant 1 : index
    %c0_133 = arith.constant 0 : index
    %c0_134 = arith.constant 0 : index
    %315 = vector.load %arg11[%c1_132, %c0_133, %c0_134] : memref<2x32x32xbf16, #tpu.memory_space<vmem>>, vector<1x32x32xbf16>
    %316 = vector.shape_cast %315 : vector<1x32x32xbf16> to vector<32x32xbf16>
    %cst_135 = arith.constant dense<0.000000e+00> : vector<12x32xf32>
    %317 = tpu.matmul %300, %316, %cst_135 {dimension_numbers = #tpu.dot_dimension_numbers<[1], [0], [0], [1], [0, 0, 1, 1], [], []>} : vector<12x32xbf16>, vector<32x32xbf16>, vector<12x32xf32> -> vector<12x32xf32>
    %c1_136 = arith.constant 1 : index
    %c0_137 = arith.constant 0 : index
    %c0_138 = arith.constant 0 : index
    %318 = vector.load %arg12[%c1_136, %c0_137, %c0_138] : memref<2x1x32xf32, #tpu.memory_space<vmem>>, vector<1x1x32xf32>
    %319 = vector.shape_cast %318 : vector<1x1x32xf32> to vector<1x32xf32>
    %320 = vector.broadcast %319 : vector<1x32xf32> to vector<12x32xf32>
    %321 = arith.addf %317, %320 : vector<12x32xf32>
    %322 = vector.extract_strided_slice %307 {offsets = [0, 0], sizes = [6, 8], strides = [1, 1]} : vector<12x32xf32> to vector<6x8xf32>
    %323 = arith.truncf %322 : vector<6x8xf32> to vector<6x8xbf16>
    %324 = vector.extract_strided_slice %314 {offsets = [0, 0], sizes = [6, 8], strides = [1, 1]} : vector<12x32xf32> to vector<6x8xf32>
    %325 = arith.truncf %324 : vector<6x8xf32> to vector<6x8xbf16>
    %326 = vector.extract_strided_slice %321 {offsets = [0, 0], sizes = [6, 8], strides = [1, 1]} : vector<12x32xf32> to vector<6x8xf32>
    %327 = arith.truncf %326 : vector<6x8xf32> to vector<6x8xbf16>
    %cst_139 = arith.constant dense<0.000000e+00> : vector<6x6xf32>
    %328 = tpu.matmul %323, %325, %cst_139 {dimension_numbers = #tpu.dot_dimension_numbers<[1], [1], [0], [0], [0, 0, 1, 0], [], []>} : vector<6x8xbf16>, vector<6x8xbf16>, vector<6x6xf32> -> vector<6x6xf32>
    %cst_140 = arith.constant dense<0xFF800000> : vector<6xf32>
    %329 = vector.multi_reduction <maximumf>, %328, %cst_140 [1] : vector<6x6xf32> to vector<6xf32>
    %330 = vector.shape_cast %329 : vector<6xf32> to vector<6x1xf32>
    %331 = vector.broadcast %330 : vector<6x1xf32> to vector<6x6xf32>
    %332 = arith.subf %328, %331 : vector<6x6xf32>
    %333 = math.exp %332 : vector<6x6xf32>
    %cst_141 = arith.constant dense<0.000000e+00> : vector<6xf32>
    %334 = vector.multi_reduction <add>, %333, %cst_141 [1] : vector<6x6xf32> to vector<6xf32>
    %335 = vector.shape_cast %334 : vector<6xf32> to vector<6x1xf32>
    %336 = tpu.reciprocal %335 {approx = true} : vector<6x1xf32> -> vector<6x1xf32>
    %337 = vector.broadcast %336 : vector<6x1xf32> to vector<6x6xf32>
    %338 = arith.mulf %333, %337 : vector<6x6xf32>
    %339 = arith.truncf %338 : vector<6x6xf32> to vector<6x6xbf16>
    %cst_142 = arith.constant dense<0.000000e+00> : vector<6x8xf32>
    %340 = tpu.matmul %339, %327, %cst_142 {dimension_numbers = #tpu.dot_dimension_numbers<[1], [0], [0], [1], [0, 0, 1, 1], [], []>} : vector<6x6xbf16>, vector<6x8xbf16>, vector<6x8xf32> -> vector<6x8xf32>
    %341 = vector.extract_strided_slice %307 {offsets = [0, 8], sizes = [6, 8], strides = [1, 1]} : vector<12x32xf32> to vector<6x8xf32>
    %342 = arith.truncf %341 : vector<6x8xf32> to vector<6x8xbf16>
    %343 = vector.extract_strided_slice %314 {offsets = [0, 8], sizes = [6, 8], strides = [1, 1]} : vector<12x32xf32> to vector<6x8xf32>
    %344 = arith.truncf %343 : vector<6x8xf32> to vector<6x8xbf16>
    %345 = vector.extract_strided_slice %321 {offsets = [0, 8], sizes = [6, 8], strides = [1, 1]} : vector<12x32xf32> to vector<6x8xf32>
    %346 = arith.truncf %345 : vector<6x8xf32> to vector<6x8xbf16>
    %cst_143 = arith.constant dense<0.000000e+00> : vector<6x6xf32>
    %347 = tpu.matmul %342, %344, %cst_143 {dimension_numbers = #tpu.dot_dimension_numbers<[1], [1], [0], [0], [0, 0, 1, 0], [], []>} : vector<6x8xbf16>, vector<6x8xbf16>, vector<6x6xf32> -> vector<6x6xf32>
    %cst_144 = arith.constant dense<0xFF800000> : vector<6xf32>
    %348 = vector.multi_reduction <maximumf>, %347, %cst_144 [1] : vector<6x6xf32> to vector<6xf32>
    %349 = vector.shape_cast %348 : vector<6xf32> to vector<6x1xf32>
    %350 = vector.broadcast %349 : vector<6x1xf32> to vector<6x6xf32>
    %351 = arith.subf %347, %350 : vector<6x6xf32>
    %352 = math.exp %351 : vector<6x6xf32>
    %cst_145 = arith.constant dense<0.000000e+00> : vector<6xf32>
    %353 = vector.multi_reduction <add>, %352, %cst_145 [1] : vector<6x6xf32> to vector<6xf32>
    %354 = vector.shape_cast %353 : vector<6xf32> to vector<6x1xf32>
    %355 = tpu.reciprocal %354 {approx = true} : vector<6x1xf32> -> vector<6x1xf32>
    %356 = vector.broadcast %355 : vector<6x1xf32> to vector<6x6xf32>
    %357 = arith.mulf %352, %356 : vector<6x6xf32>
    %358 = arith.truncf %357 : vector<6x6xf32> to vector<6x6xbf16>
    %cst_146 = arith.constant dense<0.000000e+00> : vector<6x8xf32>
    %359 = tpu.matmul %358, %346, %cst_146 {dimension_numbers = #tpu.dot_dimension_numbers<[1], [0], [0], [1], [0, 0, 1, 1], [], []>} : vector<6x6xbf16>, vector<6x8xbf16>, vector<6x8xf32> -> vector<6x8xf32>
    %360 = vector.extract_strided_slice %307 {offsets = [0, 16], sizes = [6, 8], strides = [1, 1]} : vector<12x32xf32> to vector<6x8xf32>
    %361 = arith.truncf %360 : vector<6x8xf32> to vector<6x8xbf16>
    %362 = vector.extract_strided_slice %314 {offsets = [0, 16], sizes = [6, 8], strides = [1, 1]} : vector<12x32xf32> to vector<6x8xf32>
    %363 = arith.truncf %362 : vector<6x8xf32> to vector<6x8xbf16>
    %364 = vector.extract_strided_slice %321 {offsets = [0, 16], sizes = [6, 8], strides = [1, 1]} : vector<12x32xf32> to vector<6x8xf32>
    %365 = arith.truncf %364 : vector<6x8xf32> to vector<6x8xbf16>
    %cst_147 = arith.constant dense<0.000000e+00> : vector<6x6xf32>
    %366 = tpu.matmul %361, %363, %cst_147 {dimension_numbers = #tpu.dot_dimension_numbers<[1], [1], [0], [0], [0, 0, 1, 0], [], []>} : vector<6x8xbf16>, vector<6x8xbf16>, vector<6x6xf32> -> vector<6x6xf32>
    %cst_148 = arith.constant dense<0xFF800000> : vector<6xf32>
    %367 = vector.multi_reduction <maximumf>, %366, %cst_148 [1] : vector<6x6xf32> to vector<6xf32>
    %368 = vector.shape_cast %367 : vector<6xf32> to vector<6x1xf32>
    %369 = vector.broadcast %368 : vector<6x1xf32> to vector<6x6xf32>
    %370 = arith.subf %366, %369 : vector<6x6xf32>
    %371 = math.exp %370 : vector<6x6xf32>
    %cst_149 = arith.constant dense<0.000000e+00> : vector<6xf32>
    %372 = vector.multi_reduction <add>, %371, %cst_149 [1] : vector<6x6xf32> to vector<6xf32>
    %373 = vector.shape_cast %372 : vector<6xf32> to vector<6x1xf32>
    %374 = tpu.reciprocal %373 {approx = true} : vector<6x1xf32> -> vector<6x1xf32>
    %375 = vector.broadcast %374 : vector<6x1xf32> to vector<6x6xf32>
    %376 = arith.mulf %371, %375 : vector<6x6xf32>
    %377 = arith.truncf %376 : vector<6x6xf32> to vector<6x6xbf16>
    %cst_150 = arith.constant dense<0.000000e+00> : vector<6x8xf32>
    %378 = tpu.matmul %377, %365, %cst_150 {dimension_numbers = #tpu.dot_dimension_numbers<[1], [0], [0], [1], [0, 0, 1, 1], [], []>} : vector<6x6xbf16>, vector<6x8xbf16>, vector<6x8xf32> -> vector<6x8xf32>
    %379 = vector.extract_strided_slice %307 {offsets = [0, 24], sizes = [6, 8], strides = [1, 1]} : vector<12x32xf32> to vector<6x8xf32>
    %380 = arith.truncf %379 : vector<6x8xf32> to vector<6x8xbf16>
    %381 = vector.extract_strided_slice %314 {offsets = [0, 24], sizes = [6, 8], strides = [1, 1]} : vector<12x32xf32> to vector<6x8xf32>
    %382 = arith.truncf %381 : vector<6x8xf32> to vector<6x8xbf16>
    %383 = vector.extract_strided_slice %321 {offsets = [0, 24], sizes = [6, 8], strides = [1, 1]} : vector<12x32xf32> to vector<6x8xf32>
    %384 = arith.truncf %383 : vector<6x8xf32> to vector<6x8xbf16>
    %cst_151 = arith.constant dense<0.000000e+00> : vector<6x6xf32>
    %385 = tpu.matmul %380, %382, %cst_151 {dimension_numbers = #tpu.dot_dimension_numbers<[1], [1], [0], [0], [0, 0, 1, 0], [], []>} : vector<6x8xbf16>, vector<6x8xbf16>, vector<6x6xf32> -> vector<6x6xf32>
    %cst_152 = arith.constant dense<0xFF800000> : vector<6xf32>
    %386 = vector.multi_reduction <maximumf>, %385, %cst_152 [1] : vector<6x6xf32> to vector<6xf32>
    %387 = vector.shape_cast %386 : vector<6xf32> to vector<6x1xf32>
    %388 = vector.broadcast %387 : vector<6x1xf32> to vector<6x6xf32>
    %389 = arith.subf %385, %388 : vector<6x6xf32>
    %390 = math.exp %389 : vector<6x6xf32>
    %cst_153 = arith.constant dense<0.000000e+00> : vector<6xf32>
    %391 = vector.multi_reduction <add>, %390, %cst_153 [1] : vector<6x6xf32> to vector<6xf32>
    %392 = vector.shape_cast %391 : vector<6xf32> to vector<6x1xf32>
    %393 = tpu.reciprocal %392 {approx = true} : vector<6x1xf32> -> vector<6x1xf32>
    %394 = vector.broadcast %393 : vector<6x1xf32> to vector<6x6xf32>
    %395 = arith.mulf %390, %394 : vector<6x6xf32>
    %396 = arith.truncf %395 : vector<6x6xf32> to vector<6x6xbf16>
    %cst_154 = arith.constant dense<0.000000e+00> : vector<6x8xf32>
    %397 = tpu.matmul %396, %384, %cst_154 {dimension_numbers = #tpu.dot_dimension_numbers<[1], [0], [0], [1], [0, 0, 1, 1], [], []>} : vector<6x6xbf16>, vector<6x8xbf16>, vector<6x8xf32> -> vector<6x8xf32>
    %398 = tpu.concatenate %340, %359, %378, %397 in 1 : vector<6x8xf32>, vector<6x8xf32>, vector<6x8xf32>, vector<6x8xf32> -> vector<6x32xf32>
    %399 = vector.extract_strided_slice %307 {offsets = [6, 0], sizes = [6, 8], strides = [1, 1]} : vector<12x32xf32> to vector<6x8xf32>
    %400 = arith.truncf %399 : vector<6x8xf32> to vector<6x8xbf16>
    %401 = vector.extract_strided_slice %314 {offsets = [6, 0], sizes = [6, 8], strides = [1, 1]} : vector<12x32xf32> to vector<6x8xf32>
    %402 = arith.truncf %401 : vector<6x8xf32> to vector<6x8xbf16>
    %403 = vector.extract_strided_slice %321 {offsets = [6, 0], sizes = [6, 8], strides = [1, 1]} : vector<12x32xf32> to vector<6x8xf32>
    %404 = arith.truncf %403 : vector<6x8xf32> to vector<6x8xbf16>
    %cst_155 = arith.constant dense<0.000000e+00> : vector<6x6xf32>
    %405 = tpu.matmul %400, %402, %cst_155 {dimension_numbers = #tpu.dot_dimension_numbers<[1], [1], [0], [0], [0, 0, 1, 0], [], []>} : vector<6x8xbf16>, vector<6x8xbf16>, vector<6x6xf32> -> vector<6x6xf32>
    %cst_156 = arith.constant dense<0xFF800000> : vector<6xf32>
    %406 = vector.multi_reduction <maximumf>, %405, %cst_156 [1] : vector<6x6xf32> to vector<6xf32>
    %407 = vector.shape_cast %406 : vector<6xf32> to vector<6x1xf32>
    %408 = vector.broadcast %407 : vector<6x1xf32> to vector<6x6xf32>
    %409 = arith.subf %405, %408 : vector<6x6xf32>
    %410 = math.exp %409 : vector<6x6xf32>
    %cst_157 = arith.constant dense<0.000000e+00> : vector<6xf32>
    %411 = vector.multi_reduction <add>, %410, %cst_157 [1] : vector<6x6xf32> to vector<6xf32>
    %412 = vector.shape_cast %411 : vector<6xf32> to vector<6x1xf32>
    %413 = tpu.reciprocal %412 {approx = true} : vector<6x1xf32> -> vector<6x1xf32>
    %414 = vector.broadcast %413 : vector<6x1xf32> to vector<6x6xf32>
    %415 = arith.mulf %410, %414 : vector<6x6xf32>
    %416 = arith.truncf %415 : vector<6x6xf32> to vector<6x6xbf16>
    %cst_158 = arith.constant dense<0.000000e+00> : vector<6x8xf32>
    %417 = tpu.matmul %416, %404, %cst_158 {dimension_numbers = #tpu.dot_dimension_numbers<[1], [0], [0], [1], [0, 0, 1, 1], [], []>} : vector<6x6xbf16>, vector<6x8xbf16>, vector<6x8xf32> -> vector<6x8xf32>
    %418 = vector.extract_strided_slice %307 {offsets = [6, 8], sizes = [6, 8], strides = [1, 1]} : vector<12x32xf32> to vector<6x8xf32>
    %419 = arith.truncf %418 : vector<6x8xf32> to vector<6x8xbf16>
    %420 = vector.extract_strided_slice %314 {offsets = [6, 8], sizes = [6, 8], strides = [1, 1]} : vector<12x32xf32> to vector<6x8xf32>
    %421 = arith.truncf %420 : vector<6x8xf32> to vector<6x8xbf16>
    %422 = vector.extract_strided_slice %321 {offsets = [6, 8], sizes = [6, 8], strides = [1, 1]} : vector<12x32xf32> to vector<6x8xf32>
    %423 = arith.truncf %422 : vector<6x8xf32> to vector<6x8xbf16>
    %cst_159 = arith.constant dense<0.000000e+00> : vector<6x6xf32>
    %424 = tpu.matmul %419, %421, %cst_159 {dimension_numbers = #tpu.dot_dimension_numbers<[1], [1], [0], [0], [0, 0, 1, 0], [], []>} : vector<6x8xbf16>, vector<6x8xbf16>, vector<6x6xf32> -> vector<6x6xf32>
    %cst_160 = arith.constant dense<0xFF800000> : vector<6xf32>
    %425 = vector.multi_reduction <maximumf>, %424, %cst_160 [1] : vector<6x6xf32> to vector<6xf32>
    %426 = vector.shape_cast %425 : vector<6xf32> to vector<6x1xf32>
    %427 = vector.broadcast %426 : vector<6x1xf32> to vector<6x6xf32>
    %428 = arith.subf %424, %427 : vector<6x6xf32>
    %429 = math.exp %428 : vector<6x6xf32>
    %cst_161 = arith.constant dense<0.000000e+00> : vector<6xf32>
    %430 = vector.multi_reduction <add>, %429, %cst_161 [1] : vector<6x6xf32> to vector<6xf32>
    %431 = vector.shape_cast %430 : vector<6xf32> to vector<6x1xf32>
    %432 = tpu.reciprocal %431 {approx = true} : vector<6x1xf32> -> vector<6x1xf32>
    %433 = vector.broadcast %432 : vector<6x1xf32> to vector<6x6xf32>
    %434 = arith.mulf %429, %433 : vector<6x6xf32>
    %435 = arith.truncf %434 : vector<6x6xf32> to vector<6x6xbf16>
    %cst_162 = arith.constant dense<0.000000e+00> : vector<6x8xf32>
    %436 = tpu.matmul %435, %423, %cst_162 {dimension_numbers = #tpu.dot_dimension_numbers<[1], [0], [0], [1], [0, 0, 1, 1], [], []>} : vector<6x6xbf16>, vector<6x8xbf16>, vector<6x8xf32> -> vector<6x8xf32>
    %437 = vector.extract_strided_slice %307 {offsets = [6, 16], sizes = [6, 8], strides = [1, 1]} : vector<12x32xf32> to vector<6x8xf32>
    %438 = arith.truncf %437 : vector<6x8xf32> to vector<6x8xbf16>
    %439 = vector.extract_strided_slice %314 {offsets = [6, 16], sizes = [6, 8], strides = [1, 1]} : vector<12x32xf32> to vector<6x8xf32>
    %440 = arith.truncf %439 : vector<6x8xf32> to vector<6x8xbf16>
    %441 = vector.extract_strided_slice %321 {offsets = [6, 16], sizes = [6, 8], strides = [1, 1]} : vector<12x32xf32> to vector<6x8xf32>
    %442 = arith.truncf %441 : vector<6x8xf32> to vector<6x8xbf16>
    %cst_163 = arith.constant dense<0.000000e+00> : vector<6x6xf32>
    %443 = tpu.matmul %438, %440, %cst_163 {dimension_numbers = #tpu.dot_dimension_numbers<[1], [1], [0], [0], [0, 0, 1, 0], [], []>} : vector<6x8xbf16>, vector<6x8xbf16>, vector<6x6xf32> -> vector<6x6xf32>
    %cst_164 = arith.constant dense<0xFF800000> : vector<6xf32>
    %444 = vector.multi_reduction <maximumf>, %443, %cst_164 [1] : vector<6x6xf32> to vector<6xf32>
    %445 = vector.shape_cast %444 : vector<6xf32> to vector<6x1xf32>
    %446 = vector.broadcast %445 : vector<6x1xf32> to vector<6x6xf32>
    %447 = arith.subf %443, %446 : vector<6x6xf32>
    %448 = math.exp %447 : vector<6x6xf32>
    %cst_165 = arith.constant dense<0.000000e+00> : vector<6xf32>
    %449 = vector.multi_reduction <add>, %448, %cst_165 [1] : vector<6x6xf32> to vector<6xf32>
    %450 = vector.shape_cast %449 : vector<6xf32> to vector<6x1xf32>
    %451 = tpu.reciprocal %450 {approx = true} : vector<6x1xf32> -> vector<6x1xf32>
    %452 = vector.broadcast %451 : vector<6x1xf32> to vector<6x6xf32>
    %453 = arith.mulf %448, %452 : vector<6x6xf32>
    %454 = arith.truncf %453 : vector<6x6xf32> to vector<6x6xbf16>
    %cst_166 = arith.constant dense<0.000000e+00> : vector<6x8xf32>
    %455 = tpu.matmul %454, %442, %cst_166 {dimension_numbers = #tpu.dot_dimension_numbers<[1], [0], [0], [1], [0, 0, 1, 1], [], []>} : vector<6x6xbf16>, vector<6x8xbf16>, vector<6x8xf32> -> vector<6x8xf32>
    %456 = vector.extract_strided_slice %307 {offsets = [6, 24], sizes = [6, 8], strides = [1, 1]} : vector<12x32xf32> to vector<6x8xf32>
    %457 = arith.truncf %456 : vector<6x8xf32> to vector<6x8xbf16>
    %458 = vector.extract_strided_slice %314 {offsets = [6, 24], sizes = [6, 8], strides = [1, 1]} : vector<12x32xf32> to vector<6x8xf32>
    %459 = arith.truncf %458 : vector<6x8xf32> to vector<6x8xbf16>
    %460 = vector.extract_strided_slice %321 {offsets = [6, 24], sizes = [6, 8], strides = [1, 1]} : vector<12x32xf32> to vector<6x8xf32>
    %461 = arith.truncf %460 : vector<6x8xf32> to vector<6x8xbf16>
    %cst_167 = arith.constant dense<0.000000e+00> : vector<6x6xf32>
    %462 = tpu.matmul %457, %459, %cst_167 {dimension_numbers = #tpu.dot_dimension_numbers<[1], [1], [0], [0], [0, 0, 1, 0], [], []>} : vector<6x8xbf16>, vector<6x8xbf16>, vector<6x6xf32> -> vector<6x6xf32>
    %cst_168 = arith.constant dense<0xFF800000> : vector<6xf32>
    %463 = vector.multi_reduction <maximumf>, %462, %cst_168 [1] : vector<6x6xf32> to vector<6xf32>
    %464 = vector.shape_cast %463 : vector<6xf32> to vector<6x1xf32>
    %465 = vector.broadcast %464 : vector<6x1xf32> to vector<6x6xf32>
    %466 = arith.subf %462, %465 : vector<6x6xf32>
    %467 = math.exp %466 : vector<6x6xf32>
    %cst_169 = arith.constant dense<0.000000e+00> : vector<6xf32>
    %468 = vector.multi_reduction <add>, %467, %cst_169 [1] : vector<6x6xf32> to vector<6xf32>
    %469 = vector.shape_cast %468 : vector<6xf32> to vector<6x1xf32>
    %470 = tpu.reciprocal %469 {approx = true} : vector<6x1xf32> -> vector<6x1xf32>
    %471 = vector.broadcast %470 : vector<6x1xf32> to vector<6x6xf32>
    %472 = arith.mulf %467, %471 : vector<6x6xf32>
    %473 = arith.truncf %472 : vector<6x6xf32> to vector<6x6xbf16>
    %cst_170 = arith.constant dense<0.000000e+00> : vector<6x8xf32>
    %474 = tpu.matmul %473, %461, %cst_170 {dimension_numbers = #tpu.dot_dimension_numbers<[1], [0], [0], [1], [0, 0, 1, 1], [], []>} : vector<6x6xbf16>, vector<6x8xbf16>, vector<6x8xf32> -> vector<6x8xf32>
    %475 = tpu.concatenate %417, %436, %455, %474 in 1 : vector<6x8xf32>, vector<6x8xf32>, vector<6x8xf32>, vector<6x8xf32> -> vector<6x32xf32>
    %476 = tpu.concatenate %398, %475 in 0 : vector<6x32xf32>, vector<6x32xf32> -> vector<12x32xf32>
    %477 = arith.truncf %476 : vector<12x32xf32> to vector<12x32xbf16>
    %c1_171 = arith.constant 1 : index
    %c0_172 = arith.constant 0 : index
    %c0_173 = arith.constant 0 : index
    %478 = vector.load %arg13[%c1_171, %c0_172, %c0_173] : memref<2x32x32xbf16, #tpu.memory_space<vmem>>, vector<1x32x32xbf16>
    %479 = vector.shape_cast %478 : vector<1x32x32xbf16> to vector<32x32xbf16>
    %cst_174 = arith.constant dense<0.000000e+00> : vector<12x32xf32>
    %480 = tpu.matmul %477, %479, %cst_174 {dimension_numbers = #tpu.dot_dimension_numbers<[1], [0], [0], [1], [0, 0, 1, 1], [], []>} : vector<12x32xbf16>, vector<32x32xbf16>, vector<12x32xf32> -> vector<12x32xf32>
    %c1_175 = arith.constant 1 : index
    %c0_176 = arith.constant 0 : index
    %c0_177 = arith.constant 0 : index
    %481 = vector.load %arg14[%c1_175, %c0_176, %c0_177] : memref<2x1x32xf32, #tpu.memory_space<vmem>>, vector<1x1x32xf32>
    %482 = vector.shape_cast %481 : vector<1x1x32xf32> to vector<1x32xf32>
    %483 = vector.broadcast %482 : vector<1x32xf32> to vector<12x32xf32>
    %484 = arith.addf %480, %483 : vector<12x32xf32>
    %485 = arith.addf %275, %484 : vector<12x32xf32>
    %c1_178 = arith.constant 1 : index
    %c0_179 = arith.constant 0 : index
    %c0_180 = arith.constant 0 : index
    %486 = vector.load %arg15[%c1_178, %c0_179, %c0_180] : memref<2x1x32xf32, #tpu.memory_space<vmem>>, vector<1x1x32xf32>
    %487 = vector.shape_cast %486 : vector<1x1x32xf32> to vector<1x32xf32>
    %c1_181 = arith.constant 1 : index
    %c0_182 = arith.constant 0 : index
    %c0_183 = arith.constant 0 : index
    %488 = vector.load %arg16[%c1_181, %c0_182, %c0_183] : memref<2x1x32xf32, #tpu.memory_space<vmem>>, vector<1x1x32xf32>
    %489 = vector.shape_cast %488 : vector<1x1x32xf32> to vector<1x32xf32>
    %cst_184 = arith.constant dense<0.000000e+00> : vector<12xf32>
    %490 = vector.multi_reduction <add>, %485, %cst_184 [1] : vector<12x32xf32> to vector<12xf32>
    %491 = vector.shape_cast %490 : vector<12xf32> to vector<12x1xf32>
    %cst_185 = arith.constant 3.200000e+01 : f32
    %492 = vector.broadcast %cst_185 : f32 to vector<12x1xf32>
    %493 = arith.divf %491, %492 : vector<12x1xf32>
    %494 = vector.broadcast %493 : vector<12x1xf32> to vector<12x32xf32>
    %495 = arith.subf %485, %494 : vector<12x32xf32>
    %496 = arith.mulf %495, %495 : vector<12x32xf32>
    %cst_186 = arith.constant dense<0.000000e+00> : vector<12xf32>
    %497 = vector.multi_reduction <add>, %496, %cst_186 [1] : vector<12x32xf32> to vector<12xf32>
    %498 = vector.shape_cast %497 : vector<12xf32> to vector<12x1xf32>
    %cst_187 = arith.constant 3.200000e+01 : f32
    %499 = vector.broadcast %cst_187 : f32 to vector<12x1xf32>
    %500 = arith.divf %498, %499 : vector<12x1xf32>
    %cst_188 = arith.constant 9.99999997E-7 : f32
    %501 = vector.broadcast %cst_188 : f32 to vector<12x1xf32>
    %502 = arith.addf %500, %501 : vector<12x1xf32>
    %503 = math.rsqrt %502 : vector<12x1xf32>
    %504 = vector.broadcast %503 : vector<12x1xf32> to vector<12x32xf32>
    %505 = arith.mulf %495, %504 : vector<12x32xf32>
    %506 = vector.broadcast %487 : vector<1x32xf32> to vector<12x32xf32>
    %507 = arith.mulf %505, %506 : vector<12x32xf32>
    %508 = vector.broadcast %489 : vector<1x32xf32> to vector<12x32xf32>
    %509 = arith.addf %507, %508 : vector<12x32xf32>
    %510 = arith.truncf %509 : vector<12x32xf32> to vector<12x32xbf16>
    %c1_189 = arith.constant 1 : index
    %c0_190 = arith.constant 0 : index
    %c0_191 = arith.constant 0 : index
    %511 = vector.load %arg17[%c1_189, %c0_190, %c0_191] : memref<2x32x128xbf16, #tpu.memory_space<vmem>>, vector<1x32x128xbf16>
    %512 = vector.shape_cast %511 : vector<1x32x128xbf16> to vector<32x128xbf16>
    %cst_192 = arith.constant dense<0.000000e+00> : vector<12x128xf32>
    %513 = tpu.matmul %510, %512, %cst_192 {dimension_numbers = #tpu.dot_dimension_numbers<[1], [0], [0], [1], [0, 0, 1, 1], [], []>} : vector<12x32xbf16>, vector<32x128xbf16>, vector<12x128xf32> -> vector<12x128xf32>
    %c1_193 = arith.constant 1 : index
    %c0_194 = arith.constant 0 : index
    %c0_195 = arith.constant 0 : index
    %514 = vector.load %arg18[%c1_193, %c0_194, %c0_195] : memref<2x1x128xf32, #tpu.memory_space<vmem>>, vector<1x1x128xf32>
    %515 = vector.shape_cast %514 : vector<1x1x128xf32> to vector<1x128xf32>
    %516 = vector.broadcast %515 : vector<1x128xf32> to vector<12x128xf32>
    %517 = arith.addf %513, %516 : vector<12x128xf32>
    %cst_196 = arith.constant 5.000000e-01 : f32
    %518 = vector.broadcast %cst_196 : f32 to vector<12x128xf32>
    %519 = arith.mulf %518, %517 : vector<12x128xf32>
    %cst_197 = arith.constant 0.707106769 : f32
    %520 = vector.broadcast %cst_197 : f32 to vector<12x128xf32>
    %521 = arith.mulf %517, %520 : vector<12x128xf32>
    %522 = math.erf %521 : vector<12x128xf32>
    %cst_198 = arith.constant 1.000000e+00 : f32
    %523 = vector.broadcast %cst_198 : f32 to vector<12x128xf32>
    %524 = arith.addf %523, %522 : vector<12x128xf32>
    %525 = arith.mulf %519, %524 : vector<12x128xf32>
    %526 = arith.truncf %525 : vector<12x128xf32> to vector<12x128xbf16>
    %c1_199 = arith.constant 1 : index
    %c0_200 = arith.constant 0 : index
    %c0_201 = arith.constant 0 : index
    %527 = vector.load %arg19[%c1_199, %c0_200, %c0_201] : memref<2x128x32xbf16, #tpu.memory_space<vmem>>, vector<1x128x32xbf16>
    %528 = vector.shape_cast %527 : vector<1x128x32xbf16> to vector<128x32xbf16>
    %cst_202 = arith.constant dense<0.000000e+00> : vector<12x32xf32>
    %529 = tpu.matmul %526, %528, %cst_202 {dimension_numbers = #tpu.dot_dimension_numbers<[1], [0], [0], [1], [0, 0, 1, 1], [], []>} : vector<12x128xbf16>, vector<128x32xbf16>, vector<12x32xf32> -> vector<12x32xf32>
    %c1_203 = arith.constant 1 : index
    %c0_204 = arith.constant 0 : index
    %c0_205 = arith.constant 0 : index
    %530 = vector.load %arg20[%c1_203, %c0_204, %c0_205] : memref<2x1x32xf32, #tpu.memory_space<vmem>>, vector<1x1x32xf32>
    %531 = vector.shape_cast %530 : vector<1x1x32xf32> to vector<1x32xf32>
    %532 = vector.broadcast %531 : vector<1x32xf32> to vector<12x32xf32>
    %533 = arith.addf %529, %532 : vector<12x32xf32>
    %534 = arith.addf %485, %533 : vector<12x32xf32>
    %c0_206 = arith.constant 0 : index
    %c0_207 = arith.constant 0 : index
    %535 = vector.load %arg21[%c0_206, %c0_207] : memref<1x32xf32, #tpu.memory_space<vmem>>, vector<1x32xf32>
    %c0_208 = arith.constant 0 : index
    %c0_209 = arith.constant 0 : index
    %536 = vector.load %arg22[%c0_208, %c0_209] : memref<1x32xf32, #tpu.memory_space<vmem>>, vector<1x32xf32>
    %cst_210 = arith.constant dense<0.000000e+00> : vector<12xf32>
    %537 = vector.multi_reduction <add>, %534, %cst_210 [1] : vector<12x32xf32> to vector<12xf32>
    %538 = vector.shape_cast %537 : vector<12xf32> to vector<12x1xf32>
    %cst_211 = arith.constant 3.200000e+01 : f32
    %539 = vector.broadcast %cst_211 : f32 to vector<12x1xf32>
    %540 = arith.divf %538, %539 : vector<12x1xf32>
    %541 = vector.broadcast %540 : vector<12x1xf32> to vector<12x32xf32>
    %542 = arith.subf %534, %541 : vector<12x32xf32>
    %543 = arith.mulf %542, %542 : vector<12x32xf32>
    %cst_212 = arith.constant dense<0.000000e+00> : vector<12xf32>
    %544 = vector.multi_reduction <add>, %543, %cst_212 [1] : vector<12x32xf32> to vector<12xf32>
    %545 = vector.shape_cast %544 : vector<12xf32> to vector<12x1xf32>
    %cst_213 = arith.constant 3.200000e+01 : f32
    %546 = vector.broadcast %cst_213 : f32 to vector<12x1xf32>
    %547 = arith.divf %545, %546 : vector<12x1xf32>
    %cst_214 = arith.constant 9.99999997E-7 : f32
    %548 = vector.broadcast %cst_214 : f32 to vector<12x1xf32>
    %549 = arith.addf %547, %548 : vector<12x1xf32>
    %550 = math.rsqrt %549 : vector<12x1xf32>
    %551 = vector.broadcast %550 : vector<12x1xf32> to vector<12x32xf32>
    %552 = arith.mulf %542, %551 : vector<12x32xf32>
    %553 = vector.broadcast %535 : vector<1x32xf32> to vector<12x32xf32>
    %554 = arith.mulf %552, %553 : vector<12x32xf32>
    %555 = vector.broadcast %536 : vector<1x32xf32> to vector<12x32xf32>
    %556 = arith.addf %554, %555 : vector<12x32xf32>
    %557 = vector.extract_strided_slice %556 {offsets = [0, 0], sizes = [1, 32], strides = [1, 1]} : vector<12x32xf32> to vector<1x32xf32>
    %558 = vector.extract_strided_slice %556 {offsets = [1, 0], sizes = [1, 32], strides = [1, 1]} : vector<12x32xf32> to vector<1x32xf32>
    %559 = tpu.concatenate %557, %558 in 1 : vector<1x32xf32>, vector<1x32xf32> -> vector<1x64xf32>
    %560 = vector.extract_strided_slice %556 {offsets = [6, 0], sizes = [1, 32], strides = [1, 1]} : vector<12x32xf32> to vector<1x32xf32>
    %561 = vector.extract_strided_slice %556 {offsets = [7, 0], sizes = [1, 32], strides = [1, 1]} : vector<12x32xf32> to vector<1x32xf32>
    %562 = tpu.concatenate %560, %561 in 1 : vector<1x32xf32>, vector<1x32xf32> -> vector<1x64xf32>
    %563 = tpu.concatenate %559, %562 in 0 : vector<1x64xf32>, vector<1x64xf32> -> vector<2x64xf32>
    %564 = arith.truncf %563 : vector<2x64xf32> to vector<2x64xbf16>
    %c0_215 = arith.constant 0 : index
    %c0_216 = arith.constant 0 : index
    %565 = vector.load %arg23[%c0_215, %c0_216] : memref<64x1xbf16, #tpu.memory_space<vmem>>, vector<64x1xbf16>
    %cst_217 = arith.constant dense<0.000000e+00> : vector<2x1xf32>
    %566 = tpu.matmul %564, %565, %cst_217 {dimension_numbers = #tpu.dot_dimension_numbers<[1], [0], [0], [1], [0, 0, 1, 1], [], []>} : vector<2x64xbf16>, vector<64x1xbf16>, vector<2x1xf32> -> vector<2x1xf32>
    %c0_218 = arith.constant 0 : index
    %c0_219 = arith.constant 0 : index
    %567 = vector.load %arg24[%c0_218, %c0_219] : memref<1x1xf32, #tpu.memory_space<vmem>>, vector<1x1xf32>
    %568 = vector.broadcast %567 : vector<1x1xf32> to vector<2x1xf32>
    %569 = arith.addf %566, %568 : vector<2x1xf32>
    %c0_220 = arith.constant 0 : index
    %c0_221 = arith.constant 0 : index
    %570 = vector.load %arg25[%c0_220, %c0_221] : memref<2x1xf32, #tpu.memory_space<vmem>>, vector<2x1xf32>
    tpu.vector_store %arg25[%c0_220, %c0_221], %569 {strides = array<i32>} : memref<2x1xf32, #tpu.memory_space<vmem>>, vector<2x1xf32>,
    return
  }
}

</mosaic_0001>

<bundles_post_ra>
// kernel: vit_forward.1
= control target key start
LH: loop header
LB: loop body
LE: loop exit
PB: predicated region body
PF: predicated region fallthrough
CT: control target
= control target key end

     0   :  { %v4050_v0 = vmov 0.0   ;;  %vm4051_vm0 = vmmov 0   ;;  %vm124_vm1 = vcmask 523264   ;;  %vm187_vm2 = vcmask 1041408   ;;  %s4053_s26 = smov 112   ;;  %s4936_s27 = smov 24   ;;  %s4904_s1 = inlined_call_operand.vmem [shape: bf16[64,32], index: 1, kind: input, shape index: {}]   ;;  %s4905_s0 = inlined_call_operand.vmem [shape: f32[8,64], index: 0, kind: input, shape index: {}]   ;;  %s4906_s4 = inlined_call_operand.vmem [shape: f32[6,32], index: 4, kind: input, shape index: {}]   ;;  %s4907_s3 = inlined_call_operand.vmem [shape: f32[2,32], index: 3, kind: input, shape index: {}]   ;;  %s4908_s2 = inlined_call_operand.vmem [shape: f32[1,32], index: 2, kind: input, shape index: {}]   ;;  %s4909_s7 = inlined_call_operand.vmem [shape: bf16[2,32,32], index: 7, kind: input, shape index: {}]   ;;  %s4910_s9 = inlined_call_operand.vmem [shape: bf16[2,32,32], index: 9, kind: input, shape index: {}]   ;;  %s4911_s11 = inlined_call_operand.vmem [shape: bf16[2,32,32], index: 11, kind: input, shape index: {}]   ;;  %s4912_s5 = inlined_call_operand.vmem [shape: f32[2,1,32], index: 5, kind: input, shape index: {}]   ;;  %s4913_s6 = inlined_call_operand.vmem [shape: f32[2,1,32], index: 6, kind: input, shape index: {}]   ;;  %s4914_s8 = inlined_call_operand.vmem [shape: f32[2,1,32], index: 8, kind: input, shape index: {}]   ;;  %s4915_s10 = inlined_call_operand.vmem [shape: f32[2,1,32], index: 10, kind: input, shape index: {}]   ;;  %s4916_s12 = inlined_call_operand.vmem [shape: f32[2,1,32], index: 12, kind: input, shape index: {}]   ;;  %s4917_s13 = inlined_call_operand.vmem [shape: bf16[2,32,32], index: 13, kind: input, shape index: {}]   ;;  %s4918_s14 = inlined_call_operand.vmem [shape: f32[2,1,32], index: 14, kind: input, shape index: {}]   ;;  %s4919_s17 = inlined_call_operand.vmem [shape: bf16[2,32,128], index: 17, kind: input, shape index: {}]   ;;  %s4920_s19 = inlined_call_operand.vmem [shape: bf16[2,128,32], index: 19, kind: input, shape index: {}]   ;;  %s4921_s15 = inlined_call_operand.vmem [shape: f32[2,1,32], index: 15, kind: input, shape index: {}]   ;;  %s4922_s16 = inlined_call_operand.vmem [shape: f32[2,1,32], index: 16, kind: input, shape index: {}]   ;;  %s4923_s18 = inlined_call_operand.vmem [shape: f32[2,1,128], index: 18, kind: input, shape index: {}]   ;;  %s4924_s20 = inlined_call_operand.vmem [shape: f32[2,1,32], index: 20, kind: input, shape index: {}]   ;;  %s4925_s23 = inlined_call_operand.vmem [shape: bf16[64,1], index: 23, kind: input, shape index: {}]   ;;  %s4926_s21 = inlined_call_operand.vmem [shape: f32[1,32], index: 21, kind: input, shape index: {}]   ;;  %s4927_s22 = inlined_call_operand.vmem [shape: f32[1,32], index: 22, kind: input, shape index: {}]   ;;  %s4928_s24 = inlined_call_operand.<no memory space> [shape: f32[1,1], index: 24, kind: input, shape index: {}]   ;;  %s4929_s25 = inlined_call_operand.vmem [shape: f32[2,1], index: 25, kind: output, shape index: {}]  }
   0x1   :  { %4942 = sst [smem:[#allocation3_spill]] %s4904_s1  ;;  %3551 = vmatprep.subr.bf16.mxu0 %v4050_v0  ;;  %3559 = vmatprep.mubr.msk.bf16.mxu0 %vm4051_vm0, %v4050_v0  ;;  %vm189_vm3 = vcmask 1045504   ;;  %vm193_vm4 = vcmask 261120   ;;  %vm197_vm5 = vcmask 257024   ;;  %v3279_v60 = vld [vmem:[%s4914_s8] ss:$0 sm:$0xff] }
   0x2   :  { %4943 = sst [smem:[#allocation4_spill]] %s4905_s0  ;;  %3563 = vmatprep.subr.bf16.mxu1 %v4050_v0  ;;  %3567 = vmatprep.mubr.msk.bf16.mxu1 %vm4051_vm0, %v4050_v0  ;;  %vm437_vm6 = vcmask 64512   ;;  %vm501_vm7 = vcmask 1042432   ;;  %vm484_vm8 = vcmask 46080   ;;  %vm497_vm9 = vcmask 48128   ;;  %s4938_s0 = smov 16  }
   0x3   :  { %4944 = sst [smem:[#allocation5_spill]] %s4906_s4  ;;  %s4953_s28 = sld [smem:[#allocation4_spill]]  ;;  %vm891_vm10 = vcmask 130048   ;;  %vm893_vm11 = vcmask 195584   ;;  %vm3180_vm12 = vcmask 1040384   ;;  %vm3265_vm13 = vcmask 1024  }
   0x4   :  { %4945 = sst [smem:[#allocation6_spill]] %s4907_s3  ;;  %s4954_s1 = sld [smem:[#allocation5_spill]] }
   0x5   :  { %4946 = sst [smem:[#allocation7_spill]] %s4908_s2 }
   0x6   :  { %4947 = sst [smem:[#allocation8_spill]] %s4909_s7  ;;  %s4956_s3 = sld [smem:[#allocation7_spill]] }
   0x7   :  { %4948 = sst [smem:[#allocation9_spill]] %s4910_s9  ;;  %s4952_s9 = sld [smem:[#allocation3_spill]] }
   0x8   :  { %4949 = sst [smem:[#allocation10_spill]] %s4911_s11  ;;  %s4960_s11 = sld [smem:[#allocation9_spill]] }
   0x9   :  { %4950 = sst [smem:[#allocation11_spill]] %s4912_s5  ;;  %v83_v5 = vld [vmem:[%s4953_s28] sm:$0xff]  ;;  %s4957_s5 = sld [smem:[#allocation8_spill]] }
   0xa   :  { %4951 = sst [smem:[#allocation12_spill]] %s4913_s6  ;;  %v84_v6 = vpack.c.bf16 %v83_v5, %v83_v5  ;;  %v168_v7 = vld [vmem:[%s4954_s1] sm:$0x3f]  ;;  %s4958_s7 = sld [smem:[#allocation11_spill]] }
   0xb   :  { %v172_v10 = vrot.slane %v168_v7, 2  ;;  %v175_v14 = vrot.slane %v168_v7, 6  ;;  %s4959_s4 = sld [smem:[#allocation12_spill]]  ;;  %s4961_s2 = sld [smem:[#allocation10_spill]] }
   0xc   :  { %v3271_v9 = vld [vmem:[%s4956_s3] ss:$0 sm:$0xff]  ;;  %s4940_s28 = smov 104   ;;  %s4939_s6 = smov 8  }
   0xd   :  { %v3916_v1 = vld [vmem:[%s4952_s9] sm:$0xff]   ;;  %v3917_v2 = vld [vmem:[%s4952_s9 + $0x8] sm:$0xff]   ;;  %v3918_v3 = vld [vmem:[%s4952_s9 + $0x10] sm:$0xff]   ;;  %s4965_s3 = smov 24  }
   0xe   :  { %3552 = vmatpush3.bf16.msra.mxu0 %v3916_v1  ;;  %v3919_v4 = vld [vmem:[%s4952_s9 + $0x18] sm:$0xff]   ;;  %s4955_s9 = sld [smem:[#allocation6_spill]]  ;;  %v3922_v55 = vld [vmem:[%s4960_s11] sm:$0xff]   ;;  %v3923_v57 = vld [vmem:[%s4960_s11 + $0x8] sm:$0xff]  }
   0xf   :  { %3553 = vmatprep.subr.bf16.mxu0 %v4050_v0  ;;  %v3920_v37 = vld [vmem:[%s4957_s5] sm:$0xff]   ;;  %v3921_v38 = vld [vmem:[%s4957_s5 + $0x8] sm:$0xff]  }
  0x10   :  { %3564 = vmatpush3.bf16.msra.mxu1 %v3920_v37  ;;  %v3277_v47 = vld [vmem:[%s4958_s7] ss:$0 sm:$0xff] }
  0x11   :  { %3565 = vmatprep.subr.bf16.mxu1 %v4050_v0  ;;  %v3278_v51 = vld [vmem:[%s4959_s4] ss:$0 sm:$0xff]  ;;  %v3925_v59 = vld [vmem:[%s4961_s2 + $0x8] sm:$0xff]  }
  0x12   :  { %3554 = vmatpush3.bf16.msra.mxu0 %v3917_v2  ;;  %v3924_v58 = vld [vmem:[%s4961_s2] sm:$0xff]  }
  0x13   :  { %3555 = vmatprep.subr.bf16.mxu0 %v4050_v0 }
  0x14   :  { %v169_v8 = vld [vmem:[%s4955_s9] sm:$0x3]  ;;  %3566 = vmatpush3.bf16.msra.mxu1 %v3921_v38  ;;  %s4052_s9 = smov 120  }
  0x15   :  { %v170_v12 = vadd.f32 %v169_v8, %v168_v7  ;;  %3571 = vmatprep.subr.bf16.mxu1 %v4050_v0 }
  0x16   :  { %3556 = vmatpush3.bf16.msra.mxu0 %v3918_v3 }
  0x17   :  { %3557 = vmatprep.subr.bf16.mxu0 %v4050_v0  ;;  %v182_v19 = vrot.slane %v170_v12, 2 }
  0x1a   :  { %3558 = vmatpush3.bf16.msra.mxu0 %v3919_v4 }
  0x1b   :  { %3593 = vmatprep.subr.bf16.mxu0 %v4050_v0 }
  0x1d   :  { %3560 = vmatmul.mubr.msk.bf16.vlgmr.msra.gmra.mrb[0].mxu0 %vm124_vm1, %v84_v6  ;;  %v3283_v6 = vld [vmem:[%s4915_s10] ss:$0 sm:$0xff] }
  0x1e   :  { %3595 = vmatprep.mubr.msk.bf16.mxu0 %vm4051_vm0, %v4050_v0 }
  0xf0   :  { %v162_v11 = vpop.f32.mrb[0].mxu0 }
  0xf1   :  { %v163_v13 = vadd.f32 %v3271_v9, %v162_v11  ;;  %v3561_v15 = vpop.f32.mrb[1].mxu0 }
  0xf2   :  { %v165_v16 = vpop.f32.mrb[2].mxu0 }
  0xf3   :  { %v174_v17 = vadd.f32 %v172_v10, %v163_v13  ;;  %v3562_v18 = vpop.f32.mrb[3].mxu0  ;;  %v177_v20 = vadd.f32 %v175_v14, %v163_v13  ;;  %v3287_v16 = vld [vmem:[%s4916_s12] ss:$0 sm:$0xff] }
  0xf5   :  { %v179_v21 = vrot.slane %v174_v17, 6  ;;  %v4229_v24 = vrot.slane %v177_v20, 4 }
  0xf7   :  { %v188_v22 = vsel %vm187_vm2, %v170_v12, %v179_v21  ;;  %v198_v26 = vsel %vm197_vm5, %v4229_v24, 0.0 }
  0xf8   :  { %v4227_v23 = vsel %vm189_vm3, %v188_v22, %v182_v19 }
  0xf9   :  { %v194_v25 = vsel %vm193_vm4, %v4227_v23, 0.0 }
  0xfa   :  { %195 = vadd.xlane.f32.xlu0 %v194_v25 }
  0xfe   :  { %199 = vadd.xlane.f32.xlu0 %v198_v26 }
 0x187   :  { %v196_v27 = vpop.xlane.xlu0 %195 }
 0x188   :  { %v202_v28 = vmul.f32 0.03125, %v196_v27 }
 0x18a   :  { %v204_v29 = vsub.f32 %v4227_v23, %v202_v28 }
 0x18b   :  { %v200_v30 = vpop.xlane.xlu0 %199 }
 0x18c   :  { %v203_v31 = vmul.f32 0.03125, %v200_v30  ;;  %v206_v32 = vmul.f32 %v204_v29, %v204_v29 }
 0x18e   :  { %v205_v33 = vsub.f32 %v4229_v24, %v203_v31  ;;  %v208_v34 = vsel %vm193_vm4, %v206_v32, 0.0 }
 0x18f   :  { %209 = vadd.xlane.f32.xlu1 %v208_v34 }
 0x190   :  { %v207_v35 = vmul.f32 %v205_v33, %v205_v33 }
 0x192   :  { %v211_v36 = vsel %vm197_vm5, %v207_v35, 0.0 }
 0x193   :  { %212 = vadd.xlane.f32.xlu1 %v211_v36 }
 0x21c   :  { %v210_v39 = vpop.xlane.xlu1 %209 }
 0x21d   :  { %v214_v40 = vmul.f32 0.03125, %v210_v39 }
 0x21f   :  { %v216_v41 = vadd.f32 1e-06, %v214_v40 }
 0x220   :  { %v213_v42 = vpop.xlane.xlu1 %212 }
 0x221   :  { %3960 = vrsqrt.f32 %v216_v41  ;;  %v215_v43 = vmul.f32 0.03125, %v213_v42 }
 0x223   :  { %v217_v44 = vadd.f32 1e-06, %v215_v43 }
 0x225   :  { %3962 = vrsqrt.f32 %v217_v44 }
 0x22b   :  { %v3961_v45 = vpop.eup %3960 }
 0x22c   :  { %v220_v46 = vmul.f32 %v3961_v45, %v204_v29 }
 0x22e   :  { %v228_v50 = vmul.f32 %v3277_v47, %v220_v46 }
 0x22f   :  { %v3963_v48 = vpop.eup %3962 }
 0x230   :  { %v221_v49 = vmul.f32 %v3963_v48, %v205_v33  ;;  %v236_v53 = vadd.f32 %v3278_v51, %v228_v50 }
 0x232   :  { %v229_v52 = vmul.f32 %v3277_v47, %v221_v49 }
 0x234   :  { %v237_v54 = vadd.f32 %v3278_v51, %v229_v52 }
 0x236   :  { %v238_v56 = vpack.c.bf16 %v237_v54, %v236_v53 }
 0x238   :  { %3568 = vmatmul.mubr.msk.bf16.vlgmr.msra.gmra.mrb[0].mxu1 %vm193_vm4, %v238_v56 }
 0x239   :  { %3572 = vmatpush3.bf16.msra.mxu1 %v3922_v55  ;;  %3575 = vmatprep.mubr.msk.bf16.mxu1 %vm4051_vm0, %v4050_v0 }
 0x23a   :  { %3573 = vmatprep.subr.bf16.mxu1 %v4050_v0 }
 0x23d   :  { %3574 = vmatpush3.bf16.msra.mxu1 %v3923_v57 }
 0x23e   :  { %3579 = vmatprep.subr.bf16.mxu1 %v4050_v0 }
 0x240   :  { %3576 = vmatmul.mubr.msk.bf16.vlgmr.msra.gmra.mrb[4].mxu1 %vm193_vm4, %v238_v56 }
 0x241   :  { %3580 = vmatpush3.bf16.msra.mxu1 %v3924_v58  ;;  %3583 = vmatprep.mubr.msk.bf16.mxu1 %vm4051_vm0, %v4050_v0 }
 0x242   :  { %3581 = vmatprep.subr.bf16.mxu1 %v4050_v0 }
 0x245   :  { %3582 = vmatpush3.bf16.msra.mxu1 %v3925_v59 }
 0x246   :  { %3587 = vmatprep.subr.bf16.mxu1 %v4050_v0 }
 0x248   :  { %3584 = vmatmul.mubr.msk.bf16.vlgmr.msra.gmra.mrb[8].mxu1 %vm193_vm4, %v238_v56 }
 0x249   :  { %3589 = vmatprep.mubr.msk.bf16.mxu1 %vm4051_vm0, %v4050_v0 }
 0x30b   :  { %v299_v61 = vpop.f32.mrb[0].mxu1 }
 0x30c   :  { %v300_v62 = vadd.f32 %v3279_v60, %v299_v61  ;;  %v3569_v63 = vpop.f32.mrb[1].mxu1 }
 0x30d   :  { %v302_v1 = vpop.f32.mrb[2].mxu1 }
 0x30e   :  { %v434_v2 = vpack.c.bf16 %v300_v62, %v300_v62  ;;  %v303_v3 = vadd.f32 %v3279_v60, %v302_v1  ;;  %v3570_v4 = vpop.f32.mrb[3].mxu1 }
 0x310   :  { %v895_v5 = vpack.c.bf16 %v303_v3, %v300_v62  ;;  %546 = vrot.lane.b32.xlu1 %v434_v2, %s4052_s9 }
 0x312   :  { %v899_v29 = vrot.slane %v895_v5, 3 }
 0x313   :  { %v363_v7 = vpop.f32.mrb[4].mxu1 }
 0x314   :  { %v364_v8 = vadd.f32 %v3283_v6, %v363_v7  ;;  %v3577_v9 = vpop.f32.mrb[5].mxu1 }
 0x315   :  { %v366_v10 = vpop.f32.mrb[6].mxu1 }
 0x316   :  { %v435_v11 = vpack.c.bf16 %v364_v8, %v364_v8  ;;  %v367_v12 = vadd.f32 %v3283_v6, %v366_v10  ;;  %v3578_v13 = vpop.f32.mrb[7].mxu1 }
 0x318   :  { %v896_v14 = vpack.c.bf16 %v367_v12, %v364_v8  ;;  %660 = vrot.lane.b32.xlu1 %v435_v11, %s4053_s26  ;;  %549 = vrot.lane.b32.xlu0 %v435_v11, %s4052_s9  ;;  %v442_v15 = vsel %vm437_vm6, %v435_v11, 0 }
 0x319   :  { %3588 = vmatpush3.bf16.xpose.msra.mxu1 %v442_v15 }
 0x31a   :  { %3599 = vmatprep.subr.bf16.mxu1 %v4050_v0  ;;  %v901_v26 = vrot.slane %v896_v14, 3 }
 0x31b   :  { %v427_v17 = vpop.f32.mrb[8].mxu1 }
 0x31c   :  { %v4292_v18 = vadd.f32 %v3287_v16, %v427_v17  ;;  %658 = vrot.lane.b32.xlu1 %v434_v2, %s4053_s26  ;;  %770 = vrot.lane.b32.xlu0 %v435_v11, %s4940_s28  ;;  %v3585_v19 = vpop.f32.mrb[9].mxu1  ;;  %v906_v39 = vsel %vm437_vm6, %v901_v26, 0 }
 0x31d   :  { %v430_v20 = vpop.f32.mrb[10].mxu1 }
 0x31e   :  { %v4298_v21 = vpack.c.bf16 %v4292_v18, %v4292_v18  ;;  %v4300_v22 = vadd.f32 %v3287_v16, %v430_v20  ;;  %v3586_v25 = vpop.f32.mrb[11].mxu1 }
 0x320   :  { %v897_v27 = vpack.c.bf16 %v4300_v22, %v4292_v18  ;;  %768 = vrot.lane.b32.xlu1 %v434_v2, %s4940_s28  ;;  %3590 = vmatmul.mubr.msk.bf16.vlgmr.msra.gmra.mrb[12].mxu1 %vm437_vm6, %v434_v2  ;;  %v503_v28 = vsel %vm501_vm7, %v4298_v21, 0 }
 0x321   :  { %1010 = vrot.lane.b32.xlu0 %v901_v26, %s4052_s9  ;;  %3594 = vmatpush3.bf16.msra.mxu0 %v503_v28 }
 0x322   :  { %3601 = vmatprep.mubr.msk.bf16.mxu1 %vm4051_vm0, %v4050_v0  ;;  %3605 = vmatprep.subr.bf16.mxu0 %v4050_v0 }
 0x324   :  { %1008 = vrot.lane.b32.xlu1 %v899_v29, %s4052_s9 }
 0x325   :  { %1120 = vrot.lane.b32.xlu0 %v901_v26, %s4053_s26 }
 0x328   :  { %1118 = vrot.lane.b32.xlu1 %v899_v29, %s4053_s26 }
 0x329   :  { %1230 = vrot.lane.b32.xlu0 %v901_v26, %s4940_s28 }
 0x32c   :  { %1228 = vrot.lane.b32.xlu1 %v899_v29, %s4940_s28 }
 0x382   :  { %v547_v32 = vpop.permute.xlu1 %546 }
 0x38a   :  { %v550_v30 = vpop.permute.xlu0 %549  ;;  %v661_v33 = vpop.permute.xlu1 %660 }
 0x38b   :  { %v555_v31 = vsel %vm437_vm6, %v550_v30, 0  ;;  %v666_v34 = vsel %vm437_vm6, %v661_v33, 0 }
 0x38c   :  { %3600 = vmatpush3.bf16.xpose.msra.mxu1 %v555_v31 }
 0x38d   :  { %3611 = vmatprep.subr.bf16.mxu1 %v4050_v0 }
 0x38e   :  { %v771_v35 = vpop.permute.xlu0 %770  ;;  %v659_v36 = vpop.permute.xlu1 %658 }
 0x38f   :  { %v776_v37 = vsel %vm437_vm6, %v771_v35, 0 }
 0x392   :  { %v769_v38 = vpop.permute.xlu1 %768 }
 0x393   :  { %3602 = vmatmul.mubr.msk.bf16.vlgmr.msra.gmra.mrb[16].mxu1 %vm437_vm6, %v547_v32  ;;  %v1011_v40 = vpop.permute.xlu0 %1010 }
 0x394   :  { %3612 = vmatpush3.bf16.xpose.msra.mxu1 %v666_v34  ;;  %3613 = vmatprep.mubr.msk.bf16.mxu1 %vm4051_vm0, %v4050_v0  ;;  %v1016_v41 = vsel %vm437_vm6, %v1011_v40, 0 }
 0x395   :  { %3623 = vmatprep.subr.bf16.mxu1 %v4050_v0 }
 0x396   :  { %v1009_v43 = vpop.permute.xlu1 %1008 }
 0x397   :  { %v1121_v42 = vpop.permute.xlu0 %1120 }
 0x398   :  { %v1126_v44 = vsel %vm437_vm6, %v1121_v42, 0 }
 0x39a   :  { %v1119_v46 = vpop.permute.xlu1 %1118 }
 0x39b   :  { %3614 = vmatmul.mubr.msk.bf16.vlgmr.msra.gmra.mrb[20].mxu1 %vm437_vm6, %v659_v36  ;;  %v1231_v45 = vpop.permute.xlu0 %1230 }
 0x39c   :  { %3624 = vmatpush3.bf16.xpose.msra.mxu1 %v776_v37  ;;  %3625 = vmatprep.mubr.msk.bf16.mxu1 %vm4051_vm0, %v4050_v0  ;;  %v1236_v47 = vsel %vm437_vm6, %v1231_v45, 0 }
 0x39d   :  { %3635 = vmatprep.subr.bf16.mxu1 %v4050_v0 }
 0x39e   :  { %v1229_v48 = vpop.permute.xlu1 %1228 }
 0x3a3   :  { %3626 = vmatmul.mubr.msk.bf16.vlgmr.msra.gmra.mrb[24].mxu1 %vm437_vm6, %v769_v38 }
 0x3a4   :  { %3636 = vmatpush3.bf16.xpose.msra.mxu1 %v906_v39  ;;  %3637 = vmatprep.mubr.msk.bf16.mxu1 %vm4051_vm0, %v4050_v0 }
 0x3a5   :  { %3647 = vmatprep.subr.bf16.mxu1 %v4050_v0 }
 0x3ab   :  { %3638 = vmatmul.mubr.msk.bf16.vlgmr.msra.gmra.mrb[28].mxu1 %vm437_vm6, %v899_v29 }
 0x3ac   :  { %3648 = vmatpush3.bf16.xpose.msra.mxu1 %v1016_v41  ;;  %3649 = vmatprep.mubr.msk.bf16.mxu1 %vm4051_vm0, %v4050_v0 }
 0x3ad   :  { %3659 = vmatprep.subr.bf16.mxu1 %v4050_v0 }
 0x3b3   :  { %3650 = vmatmul.mubr.msk.bf16.vlgmr.msra.gmra.mrb[32].mxu1 %vm437_vm6, %v1009_v43 }
 0x3b4   :  { %3660 = vmatpush3.bf16.xpose.msra.mxu1 %v1126_v44  ;;  %3661 = vmatprep.mubr.msk.bf16.mxu1 %vm4051_vm0, %v4050_v0 }
 0x3b5   :  { %3671 = vmatprep.subr.bf16.mxu1 %v4050_v0 }
 0x3bb   :  { %3662 = vmatmul.mubr.msk.bf16.vlgmr.msra.gmra.mrb[36].mxu1 %vm437_vm6, %v1119_v46 }
 0x3bc   :  { %3672 = vmatpush3.bf16.xpose.msra.mxu1 %v1236_v47  ;;  %3673 = vmatprep.mubr.msk.bf16.mxu1 %vm4051_vm0, %v4050_v0 }
 0x3bd   :  { %3683 = vmatprep.subr.bf16.mxu1 %v4050_v0 }
 0x3c3   :  { %3674 = vmatmul.mubr.msk.bf16.vlgmr.msra.gmra.mrb[40].mxu1 %vm437_vm6, %v1229_v48 }
 0x3c4   :  { %3687 = vmatprep.mubr.msk.bf16.mxu1 %vm4051_vm0, %v4050_v0 }
 0x3f3   :  { %v478_v49 = vpop.f32.mrb[12].mxu1 }
 0x3f4   :  { %v3591_v50 = vpop.f32.mrb[13].mxu1  ;;  %v485_v51 = vsel %vm484_vm8, %v478_v49, -inf }
 0x3f5   :  { %486 = vmax.xlane.f32.xlu0 %v485_v51  ;;  %v481_v52 = vpop.f32.mrb[14].mxu1 }
 0x3f6   :  { %v3592_v53 = vpop.f32.mrb[15].mxu1 }
 0x466   :  { %v591_v54 = vpop.f32.mrb[16].mxu1 }
 0x467   :  { %v3603_v55 = vpop.f32.mrb[17].mxu1  ;;  %v597_v56 = vsel %vm484_vm8, %v591_v54, -inf }
 0x468   :  { %598 = vmax.xlane.f32.xlu1 %v597_v56  ;;  %v594_v57 = vpop.f32.mrb[18].mxu1 }
 0x469   :  { %v3604_v58 = vpop.f32.mrb[19].mxu1 }
 0x46e   :  { %v702_v59 = vpop.f32.mrb[20].mxu1 }
 0x46f   :  { %v3615_v60 = vpop.f32.mrb[21].mxu1  ;;  %v708_v61 = vsel %vm484_vm8, %v702_v59, -inf }
 0x470   :  { %709 = vmax.xlane.f32.xlu0 %v708_v61  ;;  %v705_v62 = vpop.f32.mrb[22].mxu1 }
 0x471   :  { %v3616_v63 = vpop.f32.mrb[23].mxu1 }
 0x476   :  { %v812_v1 = vpop.f32.mrb[24].mxu1 }
 0x477   :  { %v3627_v2 = vpop.f32.mrb[25].mxu1  ;;  %v818_v3 = vsel %vm484_vm8, %v812_v1, -inf }
 0x478   :  { %819 = vmax.xlane.f32.xlu0 %v818_v3  ;;  %v815_v4 = vpop.f32.mrb[26].mxu1 }
 0x479   :  { %v3628_v5 = vpop.f32.mrb[27].mxu1 }
 0x47e   :  { %v942_v6 = vpop.f32.mrb[28].mxu1 }
 0x47f   :  { %v3639_v7 = vpop.f32.mrb[29].mxu1  ;;  %v948_v8 = vsel %vm484_vm8, %v942_v6, -inf }
 0x480   :  { %949 = vmax.xlane.f32.xlu0 %v948_v8  ;;  %v945_v9 = vpop.f32.mrb[30].mxu1 }
 0x481   :  { %v3640_v10 = vpop.f32.mrb[31].mxu1 }
 0x482   :  { %v487_v11 = vpop.xlane.xlu0 %486 }
 0x483   :  { %v488_v12 = vsub.f32 %v478_v49, %v487_v11 }
 0x485   :  { %v489_v13 = vmul.f32 1.442695, %v488_v12 }
 0x486   :  { %v4357_v14 = vpop.f32.mrb[32].mxu1 }
 0x487   :  { %3964 = vpow2.f32 %v489_v13  ;;  %v3651_v15 = vpop.f32.mrb[33].mxu1  ;;  %v1058_v16 = vsel %vm484_vm8, %v4357_v14, -inf }
 0x488   :  { %1059 = vmax.xlane.f32.xlu1 %v1058_v16  ;;  %v1055_v17 = vpop.f32.mrb[34].mxu1 }
 0x489   :  { %v3652_v19 = vpop.f32.mrb[35].mxu1 }
 0x48e   :  { %v4361_v20 = vpop.f32.mrb[36].mxu1 }
 0x48f   :  { %v3663_v25 = vpop.f32.mrb[37].mxu1  ;;  %v1168_v26 = vsel %vm484_vm8, %v4361_v20, -inf }
 0x490   :  { %1169 = vmax.xlane.f32.xlu0 %v1168_v26  ;;  %v1165_v28 = vpop.f32.mrb[38].mxu1 }
 0x491   :  { %v3965_v29 = vpop.eup %3964  ;;  %v3664_v30 = vpop.f32.mrb[39].mxu1 }
 0x492   :  { %v491_v31 = vsel %vm484_vm8, %v3965_v29, 0.0 }
 0x494   :  { %492 = vadd.xlane.f32.xlu0 %v491_v31 }
 0x496   :  { %v1272_v32 = vpop.f32.mrb[40].mxu1 }
 0x497   :  { %v3675_v33 = vpop.f32.mrb[41].mxu1  ;;  %v1278_v34 = vsel %vm484_vm8, %v1272_v32, -inf }
 0x498   :  { %1279 = vmax.xlane.f32.xlu1 %v1278_v34  ;;  %v1275_v35 = vpop.f32.mrb[42].mxu1 }
 0x499   :  { %v3676_v36 = vpop.f32.mrb[43].mxu1 }
 0x4a9   :  { %610 = vrot.lane.b32.xlu1 %v4298_v21, %s4052_s9 }
 0x4aa   :  { %720 = vrot.lane.b32.xlu0 %v4298_v21, %s4053_s26 }
 0x4f5   :  { %v599_v37 = vpop.xlane.xlu1 %598 }
 0x4f6   :  { %v600_v38 = vsub.f32 %v591_v54, %v599_v37 }
 0x4f8   :  { %v601_v39 = vmul.f32 1.442695, %v600_v38 }
 0x4fa   :  { %3966 = vpow2.f32 %v601_v39 }
 0x4fd   :  { %v710_v40 = vpop.xlane.xlu0 %709 }
 0x4fe   :  { %v711_v41 = vsub.f32 %v702_v59, %v710_v40  ;;  %v4390_v59 = vrot.slane %v897_v27, 3 }
 0x500   :  { %v712_v42 = vmul.f32 1.442695, %v711_v41  ;;  %v966_v35 = vsel %vm501_vm7, %v4390_v59, 0 }
 0x502   :  { %3968 = vpow2.f32 %v712_v42 }
 0x504   :  { %v4371_v43 = vpop.eup %3966 }
 0x505   :  { %v820_v44 = vpop.xlane.xlu0 %819  ;;  %v603_v45 = vsel %vm484_vm8, %v4371_v43, 0.0 }
 0x506   :  { %v821_v46 = vsub.f32 %v812_v1, %v820_v44  ;;  %604 = vadd.xlane.f32.xlu1 %v603_v45 }
 0x508   :  { %v822_v47 = vmul.f32 1.442695, %v821_v46 }
 0x50a   :  { %3970 = vpow2.f32 %v822_v47 }
 0x50c   :  { %v4375_v48 = vpop.eup %3968 }
 0x50d   :  { %v950_v49 = vpop.xlane.xlu0 %949  ;;  %v714_v50 = vsel %vm484_vm8, %v4375_v48, 0.0 }
 0x50e   :  { %v951_v51 = vsub.f32 %v942_v6, %v950_v49  ;;  %715 = vadd.xlane.f32.xlu0 %v714_v50 }
 0x510   :  { %v952_v52 = vmul.f32 1.442695, %v951_v51 }
 0x512   :  { %3972 = vpow2.f32 %v952_v52 }
 0x514   :  { %v4379_v53 = vpop.eup %3970 }
 0x515   :  { %v824_v54 = vsel %vm484_vm8, %v4379_v53, 0.0  ;;  %v1060_v60 = vpop.xlane.xlu1 %1059 }
 0x516   :  { %825 = vadd.xlane.f32.xlu1 %v824_v54  ;;  %v1061_v27 = vsub.f32 %v4357_v14, %v1060_v60 }
 0x518   :  { %v1062_v4 = vmul.f32 1.442695, %v1061_v27 }
 0x51c   :  { %v4383_v55 = vpop.eup %3972 }
 0x51d   :  { %v1170_v56 = vpop.xlane.xlu0 %1169  ;;  %v954_v57 = vsel %vm484_vm8, %v4383_v55, 0.0 }
 0x51e   :  { %955 = vadd.xlane.f32.xlu0 %v954_v57  ;;  %v1171_v18 = vsub.f32 %v4361_v20, %v1170_v56 }
 0x520   :  { %v1172_v22 = vmul.f32 1.442695, %v1171_v18 }
 0x521   :  { %v493_v58 = vpop.xlane.xlu0 %492 }
 0x522   :  { %3974 = vrcp.f32 %v493_v58 }
 0x523   :  { %3976 = vpow2.f32 %v1172_v22 }
 0x524   :  { %3978 = vpow2.f32 %v1062_v4 }
 0x525   :  { %v1280_v61 = vpop.xlane.xlu1 %1279  ;;  %v721_v13 = vpop.permute.xlu0 %720 }
 0x526   :  { %v1281_v5 = vsub.f32 %v1272_v32, %v1280_v61  ;;  %v726_v19 = vsel %vm501_vm7, %v721_v13, 0 }
 0x527   :  { %1070 = vrot.lane.b32.xlu1 %v4390_v59, %s4052_s9 }
 0x528   :  { %v1282_v6 = vmul.f32 1.442695, %v1281_v5 }
 0x529   :  { %v611_v1 = vpop.permute.xlu1 %610 }
 0x52a   :  { %v616_v3 = vsel %vm501_vm7, %v611_v1, 0  ;;  %3980 = vpow2.f32 %v1282_v6 }
 0x52c   :  { %v3975_v62 = vpop.eup %3974 }
 0x52d   :  { %v495_v63 = vmul.f32 %v3975_v62, %v3965_v29  ;;  %v4403_v7 = vpop.eup %3976 }
 0x52e   :  { %v1174_v8 = vsel %vm484_vm8, %v4403_v7, 0.0 }
 0x52f   :  { %v496_v2 = vpack.c.bf16 %v495_v63, %v495_v63 }
 0x531   :  { %3596 = vmatmul.mubr.msk.bf16.vlgmr.msra.gmra.mrb[4].mxu0 %vm497_vm9, %v496_v2 }
 0x532   :  { %3606 = vmatpush3.bf16.msra.mxu0 %v616_v3  ;;  %3607 = vmatprep.mubr.msk.bf16.mxu0 %vm4051_vm0, %v4050_v0 }
 0x533   :  { %3617 = vmatprep.subr.bf16.mxu0 %v4050_v0 }
 0x534   :  { %830 = vrot.lane.b32.xlu0 %v4298_v21, %s4940_s28  ;;  %v3979_v21 = vpop.eup %3978 }
 0x535   :  { %v1064_v9 = vsel %vm484_vm8, %v3979_v21, 0.0  ;;  %v4408_v10 = vpop.eup %3980 }
 0x536   :  { %v1284_v11 = vsel %vm484_vm8, %v4408_v10, 0.0 }
 0x54b   :  { %1175 = vadd.xlane.f32.xlu1 %v1174_v8 }
 0x553   :  { %1065 = vadd.xlane.f32.xlu0 %v1064_v9 }
 0x557   :  { %1285 = vadd.xlane.f32.xlu0 %v1284_v11 }
 0x55c   :  { %1290 = vrot.lane.b32.xlu1 %v4390_v59, %s4940_s28 }
 0x56d   :  { %1180 = vrot.lane.b32.xlu0 %v4390_v59, %s4053_s26 }
 0x593   :  { %v605_v12 = vpop.xlane.xlu1 %604 }
 0x594   :  { %3982 = vrcp.f32 %v605_v12 }
 0x59b   :  { %v716_v14 = vpop.xlane.xlu0 %715 }
 0x59c   :  { %3984 = vrcp.f32 %v716_v14 }
 0x59e   :  { %v3983_v15 = vpop.eup %3982 }
 0x59f   :  { %v607_v16 = vmul.f32 %v3983_v15, %v4371_v43  ;;  %v3926_v15 = vld [vmem:[%s4917_s13] sm:$0xff]  }
 0x5a0   :  { %3684 = vmatpush3.bf16.msra.mxu1 %v3926_v15 }
 0x5a1   :  { %v608_v17 = vpack.c.bf16 %v607_v16, %v607_v16  ;;  %3685 = vmatprep.subr.bf16.mxu1 %v4050_v0 }
 0x5a3   :  { %3608 = vmatmul.mubr.msk.bf16.vlgmr.msra.gmra.mrb[8].mxu0 %vm497_vm9, %v608_v17  ;;  %v826_v20 = vpop.xlane.xlu1 %825 }
 0x5a4   :  { %3618 = vmatpush3.bf16.msra.mxu0 %v726_v19  ;;  %3986 = vrcp.f32 %v826_v20  ;;  %3619 = vmatprep.mubr.msk.bf16.mxu0 %vm4051_vm0, %v4050_v0  ;;  %v3927_v20 = vld [vmem:[%s4917_s13 + $0x8] sm:$0xff]  }
 0x5a5   :  { %3629 = vmatprep.subr.bf16.mxu0 %v4050_v0  ;;  %3686 = vmatpush3.bf16.msra.mxu1 %v3927_v20 }
 0x5a6   :  { %v3985_v25 = vpop.eup %3984  ;;  %3699 = vmatprep.subr.bf16.mxu1 %v4050_v0 }
 0x5a7   :  { %v718_v26 = vmul.f32 %v3985_v25, %v4375_v48  ;;  %v1071_v38 = vpop.permute.xlu1 %1070 }
 0x5a8   :  { %v1076_v40 = vsel %vm501_vm7, %v1071_v38, 0 }
 0x5a9   :  { %v719_v28 = vpack.c.bf16 %v718_v26, %v718_v26 }
 0x5ab   :  { %v956_v29 = vpop.xlane.xlu0 %955  ;;  %3620 = vmatmul.mubr.msk.bf16.vlgmr.msra.gmra.mrb[12].mxu0 %vm497_vm9, %v719_v28 }
 0x5ac   :  { %3988 = vrcp.f32 %v956_v29  ;;  %3631 = vmatprep.mubr.msk.bf16.mxu0 %vm4051_vm0, %v4050_v0 }
 0x5ae   :  { %v3987_v30 = vpop.eup %3986 }
 0x5af   :  { %v828_v31 = vmul.f32 %v3987_v30, %v4379_v53  ;;  %v831_v32 = vpop.permute.xlu0 %830 }
 0x5b0   :  { %v836_v33 = vsel %vm501_vm7, %v831_v32, 0 }
 0x5b1   :  { %3630 = vmatpush3.bf16.msra.mxu0 %v836_v33  ;;  %v829_v34 = vpack.c.bf16 %v828_v31, %v828_v31 }
 0x5b2   :  { %3641 = vmatprep.subr.bf16.mxu0 %v4050_v0 }
 0x5b4   :  { %3632 = vmatmul.mubr.msk.bf16.vlgmr.msra.gmra.mrb[16].mxu0 %vm497_vm9, %v829_v34 }
 0x5b5   :  { %3642 = vmatpush3.bf16.msra.mxu0 %v966_v35  ;;  %3643 = vmatprep.mubr.msk.bf16.mxu0 %vm4051_vm0, %v4050_v0 }
 0x5b6   :  { %v3989_v36 = vpop.eup %3988  ;;  %3653 = vmatprep.subr.bf16.mxu0 %v4050_v0 }
 0x5b7   :  { %v958_v37 = vmul.f32 %v3989_v36, %v4383_v55 }
 0x5b9   :  { %v959_v39 = vpack.c.bf16 %v958_v37, %v958_v37 }
 0x5bc   :  { %3644 = vmatmul.mubr.msk.bf16.vlgmr.msra.gmra.mrb[20].mxu0 %vm497_vm9, %v959_v39 }
 0x5bd   :  { %3654 = vmatpush3.bf16.msra.mxu0 %v1076_v40  ;;  %3655 = vmatprep.mubr.msk.bf16.mxu0 %vm4051_vm0, %v4050_v0 }
 0x5be   :  { %3665 = vmatprep.subr.bf16.mxu0 %v4050_v0 }
 0x5d8   :  { %v1176_v42 = vpop.xlane.xlu1 %1175 }
 0x5dc   :  { %v1291_v51 = vpop.permute.xlu1 %1290 }
 0x5dd   :  { %v1296_v54 = vsel %vm501_vm7, %v1291_v51, 0 }
 0x5e0   :  { %v1066_v41 = vpop.xlane.xlu0 %1065 }
 0x5e1   :  { %3990 = vrcp.f32 %v1066_v41 }
 0x5e2   :  { %3992 = vrcp.f32 %v1176_v42 }
 0x5e4   :  { %v1286_v43 = vpop.xlane.xlu0 %1285 }
 0x5e5   :  { %3994 = vrcp.f32 %v1286_v43 }
 0x5e8   :  { %v1181_v46 = vpop.permute.xlu0 %1180 }
 0x5e9   :  { %v1186_v49 = vsel %vm501_vm7, %v1181_v46, 0 }
 0x5eb   :  { %v3991_v44 = vpop.eup %3990 }
 0x5ec   :  { %v1068_v45 = vmul.f32 %v3991_v44, %v3979_v21  ;;  %v3993_v48 = vpop.eup %3992 }
 0x5ed   :  { %v1178_v50 = vmul.f32 %v3993_v48, %v4403_v7 }
 0x5ee   :  { %v1069_v47 = vpack.c.bf16 %v1068_v45, %v1068_v45 }
 0x5ef   :  { %v1179_v52 = vpack.c.bf16 %v1178_v50, %v1178_v50  ;;  %v3995_v53 = vpop.eup %3994 }
 0x5f0   :  { %3656 = vmatmul.mubr.msk.bf16.vlgmr.msra.gmra.mrb[24].mxu0 %vm497_vm9, %v1069_v47  ;;  %v1288_v55 = vmul.f32 %v3995_v53, %v4408_v10 }
 0x5f1   :  { %3666 = vmatpush3.bf16.msra.mxu0 %v1186_v49  ;;  %3667 = vmatprep.mubr.msk.bf16.mxu0 %vm4051_vm0, %v4050_v0  ;;  %v3307_v49 = vld [vmem:[%s4918_s14] ss:$0 sm:$0xff] }
 0x5f2   :  { %3677 = vmatprep.subr.bf16.mxu0 %v4050_v0  ;;  %v1289_v56 = vpack.c.bf16 %v1288_v55, %v1288_v55 }
 0x5f8   :  { %3668 = vmatmul.mubr.msk.bf16.vlgmr.msra.gmra.mrb[28].mxu0 %vm497_vm9, %v1179_v52 }
 0x5f9   :  { %3678 = vmatpush3.bf16.msra.mxu0 %v1296_v54  ;;  %3679 = vmatprep.mubr.msk.bf16.mxu0 %vm4051_vm0, %v4050_v0 }
 0x5fa   :  { %3691 = vmatprep.subr.bf16.mxu0 %v4050_v0 }
 0x600   :  { %3680 = vmatmul.mubr.msk.bf16.vlgmr.msra.gmra.mrb[32].mxu0 %vm497_vm9, %v1289_v56 }
 0x601   :  { %3695 = vmatprep.mubr.msk.bf16.mxu0 %vm4051_vm0, %v4050_v0 }
 0x604   :  { %v539_v57 = vpop.f32.mrb[4].mxu0 }
 0x605   :  { %v3597_v58 = vpop.f32.mrb[5].mxu0 }
 0x606   :  { %v542_v59 = vpop.f32.mrb[6].mxu0 }
 0x607   :  { %v3598_v60 = vpop.f32.mrb[7].mxu0 }
 0x676   :  { %v652_v61 = vpop.f32.mrb[8].mxu0 }
 0x677   :  { %v3609_v62 = vpop.f32.mrb[9].mxu0 }
 0x678   :  { %v655_v63 = vpop.f32.mrb[10].mxu0 }
 0x679   :  { %v3610_v1 = vpop.f32.mrb[11].mxu0 }
 0x67e   :  { %v762_v2 = vpop.f32.mrb[12].mxu0 }
 0x67f   :  { %v3621_v3 = vpop.f32.mrb[13].mxu0 }
 0x680   :  { %v765_v18 = vpop.f32.mrb[14].mxu0 }
 0x681   :  { %v3622_v22 = vpop.f32.mrb[15].mxu0 }
 0x682   :  { %v3928_v22 = vld [vmem:[%s4919_s17] sm:$0xff]  }
 0x683   :  { %3692 = vmatpush3.bf16.msra.mxu0 %v3928_v22 }
 0x684   :  { %3693 = vmatprep.subr.bf16.mxu0 %v4050_v0 }
 0x687   :  { %v872_v27 = vpop.f32.mrb[16].mxu0 }
 0x688   :  { %v3633_v4 = vpop.f32.mrb[17].mxu0 }
 0x689   :  { %v875_v5 = vpop.f32.mrb[18].mxu0  ;;  %v3930_v4 = vld [vmem:[%s4920_s19] sm:$0xff]  }
 0x68a   :  { %v3634_v6 = vpop.f32.mrb[19].mxu0  ;;  %v3931_v5 = vld [vmem:[%s4920_s19 + $0x8] sm:$0xff]  }
 0x68f   :  { %v1002_v7 = vpop.f32.mrb[20].mxu0 }
 0x690   :  { %v3645_v8 = vpop.f32.mrb[21].mxu0 }
 0x691   :  { %v1005_v21 = vpop.f32.mrb[22].mxu0 }
 0x692   :  { %v3646_v9 = vpop.f32.mrb[23].mxu0 }
 0x6c3   :  { %v1112_v10 = vpop.f32.mrb[24].mxu0 }
 0x6c4   :  { %v3896_v11 = vpack.i.bf16 %v652_v61, %v1112_v10  ;;  %v3657_v12 = vpop.f32.mrb[25].mxu0 }
 0x6c5   :  { %v1115_v13 = vpop.f32.mrb[26].mxu0 }
 0x6c6   :  { %3897 = vrot.lane.b32.xlu1 %v3896_v11, %s4939_s6  ;;  %v3658_v14 = vpop.f32.mrb[27].mxu0  ;;  %v3311_v13 = vld [vmem:[%s4921_s15] ss:$0 sm:$0xff] }
 0x6cb   :  { %v1222_v16 = vpop.f32.mrb[28].mxu0 }
 0x6cc   :  { %v3901_v17 = vpack.i.bf16 %v762_v2, %v1222_v16  ;;  %v3669_v19 = vpop.f32.mrb[29].mxu0 }
 0x6cd   :  { %v1225_v25 = vpop.f32.mrb[30].mxu0 }
 0x6ce   :  { %3902 = vrot.lane.b32.xlu1 %v3901_v17, %s4938_s0  ;;  %v3670_v26 = vpop.f32.mrb[31].mxu0  ;;  %v3312_v17 = vld [vmem:[%s4922_s16] ss:$0 sm:$0xff] }
 0x6d3   :  { %v1332_v28 = vpop.f32.mrb[32].mxu0 }
 0x6d4   :  { %1347 = vrot.lane.b32.xlu1 %v1332_v28, %s4936_s27  ;;  %v3681_v29 = vpop.f32.mrb[33].mxu0  ;;  %v3932_v28 = vld [vmem:[%s4920_s19 + $0x10] sm:$0xff]  }
 0x6d5   :  { %v1335_v30 = vpop.f32.mrb[34].mxu0  ;;  %v3933_v29 = vld [vmem:[%s4920_s19 + $0x18] sm:$0xff]  }
 0x6d6   :  { %v3682_v31 = vpop.f32.mrb[35].mxu0  ;;  %v3934_v30 = vld [vmem:[%s4920_s19 + $0x20] sm:$0xff]  }
 0x6d7   :  { %v3935_v31 = vld [vmem:[%s4920_s19 + $0x28] sm:$0xff]  }
 0x6d8   :  { %887 = vrot.lane.b32.xlu1 %v872_v27, %s4936_s27  ;;  %v3929_v27 = vld [vmem:[%s4919_s17 + $0x8] sm:$0xff]  }
 0x6d9   :  { %3694 = vmatpush3.bf16.msra.mxu0 %v3929_v27 }
 0x6da   :  { %3719 = vmatprep.subr.bf16.mxu0 %v4050_v0 }
 0x738   :  { %v3898_v32 = vpop.permute.xlu1 %3897 }
 0x739   :  { %v3899_v34 = vunpack.i.l.bf16 %v3898_v32  ;;  %v3900_v36 = vunpack.i.h.bf16 %v3898_v32  ;;  %v3936_v32 = vld [vmem:[%s4920_s19 + $0x30] sm:$0xff]  }
 0x73b   :  { %v1350_v37 = vsel %vm437_vm6, %v1002_v7, %v3899_v34  ;;  %v890_v42 = vsel %vm437_vm6, %v539_v57, %v3900_v36  ;;  %v3313_v34 = vld [vmem:[%s4923_s18] ss:$0 sm:$0xff] }
 0x740   :  { %v3903_v33 = vpop.permute.xlu1 %3902 }
 0x741   :  { %v3904_v35 = vunpack.i.l.bf16 %v3903_v33  ;;  %v3905_v38 = vunpack.i.h.bf16 %v3903_v33  ;;  %v3937_v33 = vld [vmem:[%s4920_s19 + $0x38] sm:$0xff]  }
 0x743   :  { %v1351_v39 = vsel %vm891_vm10, %v1350_v37, %v3904_v35  ;;  %v892_v44 = vsel %vm891_vm10, %v890_v42, %v3905_v38 }
 0x746   :  { %v1348_v40 = vpop.permute.xlu1 %1347 }
 0x747   :  { %v1352_v41 = vsel %vm893_vm11, %v1351_v39, %v1348_v40 }
 0x748   :  { %v1354_v43 = vrot.slane %v1352_v41, 2 }
 0x74a   :  { %v888_v45 = vpop.permute.xlu1 %887 }
 0x74b   :  { %v894_v46 = vsel %vm893_vm11, %v892_v44, %v888_v45 }
 0x74c   :  { %v1356_v47 = vsel %vm189_vm3, %v894_v46, %v1354_v43 }
 0x74d   :  { %v1357_v48 = vpack.c.bf16 %v1354_v43, %v1356_v47 }
 0x74f   :  { %3688 = vmatmul.mubr.msk.bf16.vlgmr.msra.gmra.mrb[44].mxu1 %vm193_vm4, %v1357_v48 }
 0x750   :  { %3715 = vmatprep.mubr.msk.bf16.mxu1 %vm4051_vm0, %v4050_v0  ;;  %3700 = vmatpush3.bf16.msra.mxu1 %v3930_v4 }
 0x751   :  { %3701 = vmatprep.subr.bf16.mxu1 %v4050_v0 }
 0x754   :  { %3702 = vmatpush3.bf16.msra.mxu1 %v3931_v5  ;;  %v3938_v5 = vld [vmem:[%s4957_s5 + $0x10] sm:$0xff]  }
 0x755   :  { %3703 = vmatprep.subr.bf16.mxu1 %v4050_v0 }
 0x758   :  { %3704 = vmatpush3.bf16.msra.mxu1 %v3932_v28  ;;  %v3940_v28 = vld [vmem:[%s4960_s11 + $0x10] sm:$0xff]  }
 0x759   :  { %3705 = vmatprep.subr.bf16.mxu1 %v4050_v0 }
 0x75c   :  { %3706 = vmatpush3.bf16.msra.mxu1 %v3933_v29 }
 0x75d   :  { %3707 = vmatprep.subr.bf16.mxu1 %v4050_v0 }
 0x760   :  { %3708 = vmatpush3.bf16.msra.mxu1 %v3934_v30  ;;  %v3941_v30 = vld [vmem:[%s4960_s11 + $0x18] sm:$0xff]  }
 0x761   :  { %3709 = vmatprep.subr.bf16.mxu1 %v4050_v0 }
 0x764   :  { %3710 = vmatpush3.bf16.msra.mxu1 %v3935_v31  ;;  %v3942_v31 = vld [vmem:[%s4961_s2 + $0x10] sm:$0xff]  }
 0x765   :  { %3711 = vmatprep.subr.bf16.mxu1 %v4050_v0 }
 0x768   :  { %3712 = vmatpush3.bf16.msra.mxu1 %v3936_v32  ;;  %v3943_v32 = vld [vmem:[%s4961_s2 + $0x18] sm:$0xff]  }
 0x769   :  { %3713 = vmatprep.subr.bf16.mxu1 %v4050_v0 }
 0x76c   :  { %3714 = vmatpush3.bf16.msra.mxu1 %v3937_v33  ;;  %v3335_v33 = vld [vmem:[%s4914_s8 + $0x1] ss:$0 sm:$0xff] }
 0x76d   :  { %3749 = vmatprep.subr.bf16.mxu1 %v4050_v0 }
 0x822   :  { %v1418_v50 = vpop.f32.mrb[44].mxu1 }
 0x823   :  { %v1419_v51 = vadd.f32 %v3307_v49, %v1418_v50  ;;  %v3689_v52 = vpop.f32.mrb[45].mxu1 }
 0x824   :  { %v1421_v53 = vpop.f32.mrb[46].mxu1  ;;  %v3317_v52 = vld [vmem:[%s4924_s20] ss:$0 sm:$0xff] }
 0x825   :  { %v4482_v54 = vadd.f32 %v1419_v51, %v4227_v23  ;;  %v1422_v55 = vadd.f32 %v3307_v49, %v1421_v53  ;;  %v3690_v56 = vpop.f32.mrb[47].mxu1 }
 0x827   :  { %v4485_v57 = vadd.f32 %v1422_v55, %v4229_v24  ;;  %v1429_v58 = vsel %vm193_vm4, %v4482_v54, 0.0 }
 0x828   :  { %1430 = vadd.xlane.f32.xlu0 %v1429_v58 }
 0x829   :  { %v1432_v59 = vsel %vm197_vm5, %v4485_v57, 0.0 }
 0x82a   :  { %1433 = vadd.xlane.f32.xlu1 %v1432_v59 }
 0x8b5   :  { %v1431_v60 = vpop.xlane.xlu0 %1430 }
 0x8b6   :  { %v1435_v61 = vmul.f32 0.03125, %v1431_v60 }
 0x8b7   :  { %v1434_v62 = vpop.xlane.xlu1 %1433 }
 0x8b8   :  { %v1437_v63 = vsub.f32 %v4482_v54, %v1435_v61  ;;  %v1436_v23 = vmul.f32 0.03125, %v1434_v62 }
 0x8ba   :  { %v1438_v1 = vsub.f32 %v4485_v57, %v1436_v23  ;;  %v1439_v2 = vmul.f32 %v1437_v63, %v1437_v63 }
 0x8bc   :  { %v1441_v24 = vsel %vm193_vm4, %v1439_v2, 0.0  ;;  %v1440_v3 = vmul.f32 %v1438_v1, %v1438_v1 }
 0x8bd   :  { %1442 = vadd.xlane.f32.xlu0 %v1441_v24 }
 0x8be   :  { %v1444_v18 = vsel %vm197_vm5, %v1440_v3, 0.0 }
 0x8c1   :  { %1445 = vadd.xlane.f32.xlu0 %v1444_v18 }
 0x94a   :  { %v1443_v6 = vpop.xlane.xlu0 %1442 }
 0x94b   :  { %v1447_v7 = vmul.f32 0.03125, %v1443_v6  ;;  %v3939_v6 = vld [vmem:[%s4957_s5 + $0x18] sm:$0xff]  }
 0x94d   :  { %v1449_v8 = vadd.f32 1e-06, %v1447_v7 }
 0x94e   :  { %v1446_v21 = vpop.xlane.xlu0 %1445 }
 0x94f   :  { %3996 = vrsqrt.f32 %v1449_v8  ;;  %v1448_v9 = vmul.f32 0.03125, %v1446_v21 }
 0x951   :  { %v1450_v10 = vadd.f32 1e-06, %v1448_v9 }
 0x953   :  { %3998 = vrsqrt.f32 %v1450_v10 }
 0x959   :  { %v3997_v11 = vpop.eup %3996 }
 0x95a   :  { %v1453_v12 = vmul.f32 %v3997_v11, %v1437_v63 }
 0x95c   :  { %v1461_v15 = vmul.f32 %v3311_v13, %v1453_v12 }
 0x95d   :  { %v3999_v14 = vpop.eup %3998 }
 0x95e   :  { %v1454_v16 = vmul.f32 %v3999_v14, %v1438_v1  ;;  %v1469_v20 = vadd.f32 %v3312_v17, %v1461_v15 }
 0x960   :  { %v1462_v19 = vmul.f32 %v3311_v13, %v1454_v16  ;;  %v3328_v13 = vld [vmem:[%s4958_s7 + $0x1] ss:$0 sm:$0xff]  ;;  %s4964_s7 = smov 16  }
 0x961   :  { %v3329_v16 = vld [vmem:[%s4959_s4 + $0x1] ss:$0 sm:$0xff] }
 0x962   :  { %v1470_v25 = vadd.f32 %v3312_v17, %v1462_v19 }
 0x964   :  { %v1471_v26 = vpack.c.bf16 %v1470_v25, %v1469_v20 }
 0x966   :  { %3696 = vmatmul.mubr.msk.bf16.vlgmr.msra.gmra.mrb[36].mxu0 %vm193_vm4, %v1471_v26 }
 0x967   :  { %3723 = vmatprep.mubr.msk.bf16.mxu0 %vm4051_vm0, %v4050_v0  ;;  %3720 = vmatpush3.bf16.msra.mxu0 %v3938_v5 }
 0x968   :  { %3721 = vmatprep.subr.bf16.mxu0 %v4050_v0 }
 0x96b   :  { %3722 = vmatpush3.bf16.msra.mxu0 %v3939_v6 }
 0x96c   :  { %3727 = vmatprep.subr.bf16.mxu0 %v4050_v0 }
 0xa39   :  { %v1532_v35 = vpop.f32.mrb[36].mxu0 }
 0xa3a   :  { %v1533_v36 = vadd.f32 %v3313_v34, %v1532_v35  ;;  %v3697_v37 = vpop.f32.mrb[37].mxu0 }
 0xa3b   :  { %v1535_v38 = vpop.f32.mrb[38].mxu0 }
 0xa3c   :  { %v1541_v39 = vmul.f32 0.70710677, %v1533_v36  ;;  %v1536_v40 = vadd.f32 %v3313_v34, %v1535_v38  ;;  %v3698_v41 = vpop.f32.mrb[39].mxu0  ;;  %v1539_v46 = vmul.f32 0.5, %v1533_v36 }
 0xa3e   :  { %4000 = verf.f32 %v1541_v39  ;;  %v1542_v42 = vmul.f32 0.70710677, %v1536_v40  ;;  %v1540_v47 = vmul.f32 0.5, %v1536_v40 }
 0xa40   :  { %4002 = verf.f32 %v1542_v42  ;;  %v3344_v42 = vld [vmem:[%s4915_s10 + $0x1] ss:$0 sm:$0xff]  ;;  %s4962_s10 = smov 104  }
 0xa48   :  { %v4001_v43 = vpop.eup %4000 }
 0xa49   :  { %v1545_v44 = vadd.f32 1.0, %v4001_v43 }
 0xa4a   :  { %v4003_v45 = vpop.eup %4002 }
 0xa4b   :  { %v1546_v48 = vadd.f32 1.0, %v4003_v45  ;;  %v1547_v49 = vmul.f32 %v1545_v44, %v1539_v46 }
 0xa4d   :  { %v1548_v50 = vmul.f32 %v1546_v48, %v1540_v47 }
 0xa4f   :  { %v1549_v51 = vpack.c.bf16 %v1548_v50, %v1547_v49 }
 0xa51   :  { %3716 = vmatmul.mubr.bf16.vlgmr.msra.gmra.mrb[48].mxu1 %v1549_v51 }
 0xa52   :  { %3751 = vmatprep.mubr.msk.bf16.mxu1 %vm4051_vm0, %v4050_v0 }
 0xb24   :  { %v1655_v53 = vpop.f32.mrb[48].mxu1 }
 0xb25   :  { %v1656_v55 = vadd.f32 %v3317_v52, %v1655_v53  ;;  %v3717_v56 = vpop.f32.mrb[49].mxu1 }
 0xb26   :  { %v1658_v58 = vpop.f32.mrb[50].mxu1 }
 0xb27   :  { %v4553_v59 = vadd.f32 %v1656_v55, %v4482_v54  ;;  %v1659_v60 = vadd.f32 %v3317_v52, %v1658_v58  ;;  %v3718_v61 = vpop.f32.mrb[51].mxu1  ;;  %v3353_v52 = vld [vmem:[%s4916_s12 + $0x1] ss:$0 sm:$0xff]  ;;  %s4963_s12 = smov 8  }
 0xb29   :  { %v4556_v62 = vadd.f32 %v1659_v60, %v4485_v57  ;;  %v1668_v63 = vsel %vm193_vm4, %v4553_v59, 0.0 }
 0xb2a   :  { %1669 = vadd.xlane.f32.xlu0 %v1668_v63 }
 0xb2b   :  { %v1671_v23 = vsel %vm197_vm5, %v4556_v62, 0.0 }
 0xb2c   :  { %1672 = vadd.xlane.f32.xlu1 %v1671_v23 }
 0xbb7   :  { %v1670_v1 = vpop.xlane.xlu0 %1669 }
 0xbb8   :  { %v1674_v2 = vmul.f32 0.03125, %v1670_v1 }
 0xbb9   :  { %v1673_v24 = vpop.xlane.xlu1 %1672 }
 0xbba   :  { %v1676_v3 = vsub.f32 %v4553_v59, %v1674_v2  ;;  %v1675_v54 = vmul.f32 0.03125, %v1673_v24 }
 0xbbc   :  { %v1677_v18 = vsub.f32 %v4556_v62, %v1675_v54  ;;  %v1678_v22 = vmul.f32 %v1676_v3, %v1676_v3 }
 0xbbe   :  { %v1680_v57 = vsel %vm193_vm4, %v1678_v22, 0.0  ;;  %v1679_v27 = vmul.f32 %v1677_v18, %v1677_v18 }
 0xbbf   :  { %1681 = vadd.xlane.f32.xlu0 %v1680_v57 }
 0xbc0   :  { %v1683_v4 = vsel %vm197_vm5, %v1679_v27, 0.0 }
 0xbc1   :  { %1684 = vadd.xlane.f32.xlu1 %v1683_v4 }
 0xc4c   :  { %v1682_v7 = vpop.xlane.xlu0 %1681 }
 0xc4d   :  { %v1686_v8 = vmul.f32 0.03125, %v1682_v7 }
 0xc4e   :  { %v1685_v21 = vpop.xlane.xlu1 %1684 }
 0xc4f   :  { %v1688_v9 = vadd.f32 1e-06, %v1686_v8  ;;  %v1687_v10 = vmul.f32 0.03125, %v1685_v21 }
 0xc51   :  { %4004 = vrsqrt.f32 %v1688_v9  ;;  %v1689_v11 = vadd.f32 1e-06, %v1687_v10 }
 0xc53   :  { %4006 = vrsqrt.f32 %v1689_v11 }
 0xc5b   :  { %v4005_v12 = vpop.eup %4004 }
 0xc5c   :  { %v1692_v14 = vmul.f32 %v4005_v12, %v1676_v3 }
 0xc5d   :  { %v4007_v15 = vpop.eup %4006 }
 0xc5e   :  { %v1700_v17 = vmul.f32 %v3328_v13, %v1692_v14  ;;  %v1693_v19 = vmul.f32 %v4007_v15, %v1677_v18 }
 0xc60   :  { %v1701_v20 = vmul.f32 %v3328_v13, %v1693_v19  ;;  %v1708_v25 = vadd.f32 %v3329_v16, %v1700_v17 }
 0xc62   :  { %v1709_v26 = vadd.f32 %v3329_v16, %v1701_v20 }
 0xc64   :  { %v1710_v29 = vpack.c.bf16 %v1709_v26, %v1708_v25 }
 0xc66   :  { %3724 = vmatmul.mubr.msk.bf16.vlgmr.msra.gmra.mrb[40].mxu0 %vm193_vm4, %v1710_v29 }
 0xc67   :  { %3728 = vmatpush3.bf16.msra.mxu0 %v3940_v28  ;;  %3731 = vmatprep.mubr.msk.bf16.mxu0 %vm4051_vm0, %v4050_v0 }
 0xc68   :  { %3729 = vmatprep.subr.bf16.mxu0 %v4050_v0 }
 0xc6b   :  { %3730 = vmatpush3.bf16.msra.mxu0 %v3941_v30 }
 0xc6c   :  { %3735 = vmatprep.subr.bf16.mxu0 %v4050_v0 }
 0xc6e   :  { %3732 = vmatmul.mubr.msk.bf16.vlgmr.msra.gmra.mrb[44].mxu0 %vm193_vm4, %v1710_v29 }
 0xc6f   :  { %3736 = vmatpush3.bf16.msra.mxu0 %v3942_v31  ;;  %3739 = vmatprep.mubr.msk.bf16.mxu0 %vm4051_vm0, %v4050_v0 }
 0xc70   :  { %3737 = vmatprep.subr.bf16.mxu0 %v4050_v0 }
 0xc73   :  { %3738 = vmatpush3.bf16.msra.mxu0 %v3943_v32 }
 0xc74   :  { %3743 = vmatprep.subr.bf16.mxu0 %v4050_v0 }
 0xc76   :  { %3740 = vmatmul.mubr.msk.bf16.vlgmr.msra.gmra.mrb[48].mxu0 %vm193_vm4, %v1710_v29 }
 0xc77   :  { %3745 = vmatprep.mubr.msk.bf16.mxu0 %vm4051_vm0, %v4050_v0 }
 0xd39   :  { %v1773_v34 = vpop.f32.mrb[40].mxu0 }
 0xd3a   :  { %v1774_v35 = vadd.f32 %v3335_v33, %v1773_v34  ;;  %v3725_v36 = vpop.f32.mrb[41].mxu0 }
 0xd3b   :  { %v1776_v37 = vpop.f32.mrb[42].mxu0 }
 0xd3c   :  { %v1912_v38 = vpack.c.bf16 %v1774_v35, %v1774_v35  ;;  %v1777_v39 = vadd.f32 %v3335_v33, %v1776_v37  ;;  %v3726_v40 = vpop.f32.mrb[43].mxu0 }
 0xd3e   :  { %v2367_v41 = vpack.c.bf16 %v1777_v39, %v1774_v35  ;;  %2020 = vrot.lane.b32.xlu1 %v1912_v38, %s4052_s9 }
 0xd40   :  { %v2371_v24 = vrot.slane %v2367_v41, 3 }
 0xd41   :  { %v1839_v43 = vpop.f32.mrb[44].mxu0 }
 0xd42   :  { %v1840_v44 = vadd.f32 %v3344_v42, %v1839_v43  ;;  %v3733_v45 = vpop.f32.mrb[45].mxu0 }
 0xd43   :  { %v1842_v46 = vpop.f32.mrb[46].mxu0 }
 0xd44   :  { %v1913_v47 = vpack.c.bf16 %v1840_v44, %v1840_v44  ;;  %v1843_v48 = vadd.f32 %v3344_v42, %v1842_v46  ;;  %v3734_v49 = vpop.f32.mrb[47].mxu0 }
 0xd46   :  { %v2368_v50 = vpack.c.bf16 %v1843_v48, %v1840_v44  ;;  %2134 = vrot.lane.b32.xlu1 %v1913_v47, %s4053_s26  ;;  %2023 = vrot.lane.b32.xlu0 %v1913_v47, %s4052_s9  ;;  %v1919_v51 = vsel %vm437_vm6, %v1913_v47, 0 }
 0xd47   :  { %3744 = vmatpush3.bf16.xpose.msra.mxu0 %v1919_v51 }
 0xd48   :  { %3755 = vmatprep.subr.bf16.mxu0 %v4050_v0  ;;  %v2373_v23 = vrot.slane %v2368_v50, 3 }
 0xd49   :  { %v1905_v53 = vpop.f32.mrb[48].mxu0 }
 0xd4a   :  { %v4619_v55 = vadd.f32 %v3353_v52, %v1905_v53  ;;  %2132 = vrot.lane.b32.xlu1 %v1912_v38, %s4053_s26  ;;  %2244 = vrot.lane.b32.xlu0 %v1913_v47, %s4962_s10  ;;  %v3741_v56 = vpop.f32.mrb[49].mxu0  ;;  %v2378_v7 = vsel %vm437_vm6, %v2373_v23, 0 }
 0xd4b   :  { %v1908_v58 = vpop.f32.mrb[50].mxu0 }
 0xd4c   :  { %v4625_v60 = vpack.c.bf16 %v4619_v55, %v4619_v55  ;;  %v4627_v61 = vadd.f32 %v3353_v52, %v1908_v58  ;;  %v3742_v63 = vpop.f32.mrb[51].mxu0 }
 0xd4e   :  { %v2369_v1 = vpack.c.bf16 %v4627_v61, %v4619_v55  ;;  %2242 = vrot.lane.b32.xlu1 %v1912_v38, %s4962_s10  ;;  %3746 = vmatmul.mubr.msk.bf16.vlgmr.msra.gmra.mrb[52].mxu0 %vm437_vm6, %v1912_v38  ;;  %v1977_v2 = vsel %vm501_vm7, %v4625_v60, 0 }
 0xd4f   :  { %2482 = vrot.lane.b32.xlu0 %v2373_v23, %s4052_s9  ;;  %3750 = vmatpush3.bf16.msra.mxu1 %v1977_v2 }
 0xd50   :  { %3757 = vmatprep.mubr.msk.bf16.mxu0 %vm4051_vm0, %v4050_v0  ;;  %3761 = vmatprep.subr.bf16.mxu1 %v4050_v0 }
 0xd52   :  { %2480 = vrot.lane.b32.xlu1 %v2371_v24, %s4052_s9 }
 0xd53   :  { %2592 = vrot.lane.b32.xlu0 %v2373_v23, %s4053_s26 }
 0xd56   :  { %2590 = vrot.lane.b32.xlu1 %v2371_v24, %s4053_s26 }
 0xd57   :  { %2702 = vrot.lane.b32.xlu0 %v2373_v23, %s4962_s10 }
 0xd5a   :  { %2700 = vrot.lane.b32.xlu1 %v2371_v24, %s4962_s10 }
 0xdb0   :  { %v2021_v18 = vpop.permute.xlu1 %2020 }
 0xdb8   :  { %v2024_v3 = vpop.permute.xlu0 %2023  ;;  %v2135_v22 = vpop.permute.xlu1 %2134 }
 0xdb9   :  { %v2029_v54 = vsel %vm437_vm6, %v2024_v3, 0  ;;  %v2140_v57 = vsel %vm437_vm6, %v2135_v22, 0 }
 0xdba   :  { %3756 = vmatpush3.bf16.xpose.msra.mxu0 %v2029_v54 }
 0xdbb   :  { %3767 = vmatprep.subr.bf16.mxu0 %v4050_v0 }
 0xdbc   :  { %v2245_v27 = vpop.permute.xlu0 %2244  ;;  %v2133_v4 = vpop.permute.xlu1 %2132 }
 0xdbd   :  { %v2250_v5 = vsel %vm437_vm6, %v2245_v27, 0 }
 0xdc0   :  { %v2243_v6 = vpop.permute.xlu1 %2242 }
 0xdc1   :  { %3758 = vmatmul.mubr.msk.bf16.vlgmr.msra.gmra.mrb[56].mxu0 %vm437_vm6, %v2021_v18  ;;  %v2483_v8 = vpop.permute.xlu0 %2482 }
 0xdc2   :  { %3768 = vmatpush3.bf16.xpose.msra.mxu0 %v2140_v57  ;;  %3769 = vmatprep.mubr.msk.bf16.mxu0 %vm4051_vm0, %v4050_v0  ;;  %v2488_v21 = vsel %vm437_vm6, %v2483_v8, 0 }
 0xdc3   :  { %3779 = vmatprep.subr.bf16.mxu0 %v4050_v0 }
 0xdc4   :  { %v2481_v10 = vpop.permute.xlu1 %2480 }
 0xdc5   :  { %v2593_v9 = vpop.permute.xlu0 %2592 }
 0xdc6   :  { %v2598_v11 = vsel %vm437_vm6, %v2593_v9, 0 }
 0xdc8   :  { %v2591_v13 = vpop.permute.xlu1 %2590 }
 0xdc9   :  { %3770 = vmatmul.mubr.msk.bf16.vlgmr.msra.gmra.mrb[60].mxu0 %vm437_vm6, %v2133_v4  ;;  %v2703_v12 = vpop.permute.xlu0 %2702 }
 0xdca   :  { %3780 = vmatpush3.bf16.xpose.msra.mxu0 %v2250_v5  ;;  %3781 = vmatprep.mubr.msk.bf16.mxu0 %vm4051_vm0, %v4050_v0  ;;  %v2708_v14 = vsel %vm437_vm6, %v2703_v12, 0 }
 0xdcb   :  { %3791 = vmatprep.subr.bf16.mxu0 %v4050_v0 }
 0xdcc   :  { %v2701_v15 = vpop.permute.xlu1 %2700 }
 0xdd1   :  { %3782 = vmatmul.mubr.msk.bf16.vlgmr.msra.gmra.mrb[64].mxu0 %vm437_vm6, %v2243_v6 }
 0xdd2   :  { %3792 = vmatpush3.bf16.xpose.msra.mxu0 %v2378_v7  ;;  %3793 = vmatprep.mubr.msk.bf16.mxu0 %vm4051_vm0, %v4050_v0 }
 0xdd3   :  { %3803 = vmatprep.subr.bf16.mxu0 %v4050_v0 }
 0xdd9   :  { %3794 = vmatmul.mubr.msk.bf16.vlgmr.msra.gmra.mrb[68].mxu0 %vm437_vm6, %v2371_v24 }
 0xdda   :  { %3804 = vmatpush3.bf16.xpose.msra.mxu0 %v2488_v21  ;;  %3805 = vmatprep.mubr.msk.bf16.mxu0 %vm4051_vm0, %v4050_v0 }
 0xddb   :  { %3815 = vmatprep.subr.bf16.mxu0 %v4050_v0 }
 0xde1   :  { %3806 = vmatmul.mubr.msk.bf16.vlgmr.msra.gmra.mrb[72].mxu0 %vm437_vm6, %v2481_v10 }
 0xde2   :  { %3816 = vmatpush3.bf16.xpose.msra.mxu0 %v2598_v11  ;;  %3817 = vmatprep.mubr.msk.bf16.mxu0 %vm4051_vm0, %v4050_v0 }
 0xde3   :  { %3827 = vmatprep.subr.bf16.mxu0 %v4050_v0 }
 0xde9   :  { %3818 = vmatmul.mubr.msk.bf16.vlgmr.msra.gmra.mrb[76].mxu0 %vm437_vm6, %v2591_v13 }
 0xdea   :  { %3828 = vmatpush3.bf16.xpose.msra.mxu0 %v2708_v14  ;;  %3829 = vmatprep.mubr.msk.bf16.mxu0 %vm4051_vm0, %v4050_v0 }
 0xdeb   :  { %3839 = vmatprep.subr.bf16.mxu0 %v4050_v0 }
 0xdf1   :  { %3830 = vmatmul.mubr.msk.bf16.vlgmr.msra.gmra.mrb[80].mxu0 %vm437_vm6, %v2701_v15 }
 0xdf2   :  { %3843 = vmatprep.mubr.msk.bf16.mxu0 %vm4051_vm0, %v4050_v0 }
 0xe21   :  { %v1955_v16 = vpop.f32.mrb[52].mxu0 }
 0xe22   :  { %v3747_v17 = vpop.f32.mrb[53].mxu0  ;;  %v1961_v19 = vsel %vm484_vm8, %v1955_v16, -inf }
 0xe23   :  { %1962 = vmax.xlane.f32.xlu0 %v1961_v19  ;;  %v1958_v20 = vpop.f32.mrb[54].mxu0 }
 0xe24   :  { %v3748_v25 = vpop.f32.mrb[55].mxu0 }
 0xe94   :  { %v2065_v26 = vpop.f32.mrb[56].mxu0 }
 0xe95   :  { %v3759_v28 = vpop.f32.mrb[57].mxu0  ;;  %v2071_v29 = vsel %vm484_vm8, %v2065_v26, -inf }
 0xe96   :  { %2072 = vmax.xlane.f32.xlu1 %v2071_v29  ;;  %v2068_v30 = vpop.f32.mrb[58].mxu0 }
 0xe97   :  { %v3760_v31 = vpop.f32.mrb[59].mxu0 }
 0xe9c   :  { %v2176_v32 = vpop.f32.mrb[60].mxu0 }
 0xe9d   :  { %v3771_v33 = vpop.f32.mrb[61].mxu0  ;;  %v2182_v34 = vsel %vm484_vm8, %v2176_v32, -inf }
 0xe9e   :  { %2183 = vmax.xlane.f32.xlu0 %v2182_v34  ;;  %v2179_v35 = vpop.f32.mrb[62].mxu0 }
 0xe9f   :  { %v3772_v36 = vpop.f32.mrb[63].mxu0 }
 0xea4   :  { %v2286_v37 = vpop.f32.mrb[64].mxu0 }
 0xea5   :  { %v3783_v38 = vpop.f32.mrb[65].mxu0  ;;  %v2292_v39 = vsel %vm484_vm8, %v2286_v37, -inf }
 0xea6   :  { %2293 = vmax.xlane.f32.xlu0 %v2292_v39  ;;  %v2289_v40 = vpop.f32.mrb[66].mxu0 }
 0xea7   :  { %v3784_v41 = vpop.f32.mrb[67].mxu0 }
 0xeac   :  { %v2414_v42 = vpop.f32.mrb[68].mxu0 }
 0xead   :  { %v3795_v43 = vpop.f32.mrb[69].mxu0  ;;  %v2420_v44 = vsel %vm484_vm8, %v2414_v42, -inf }
 0xeae   :  { %2421 = vmax.xlane.f32.xlu0 %v2420_v44  ;;  %v2417_v45 = vpop.f32.mrb[70].mxu0 }
 0xeaf   :  { %v3796_v46 = vpop.f32.mrb[71].mxu0 }
 0xeb0   :  { %v1963_v47 = vpop.xlane.xlu0 %1962 }
 0xeb1   :  { %v1964_v48 = vsub.f32 %v1955_v16, %v1963_v47 }
 0xeb3   :  { %v1965_v49 = vmul.f32 1.442695, %v1964_v48 }
 0xeb4   :  { %v4684_v50 = vpop.f32.mrb[72].mxu0 }
 0xeb5   :  { %4008 = vpow2.f32 %v1965_v49  ;;  %v3807_v51 = vpop.f32.mrb[73].mxu0  ;;  %v2530_v52 = vsel %vm484_vm8, %v4684_v50, -inf }
 0xeb6   :  { %2531 = vmax.xlane.f32.xlu1 %v2530_v52  ;;  %v2527_v53 = vpop.f32.mrb[74].mxu0 }
 0xeb7   :  { %v3808_v56 = vpop.f32.mrb[75].mxu0 }
 0xebc   :  { %v4688_v58 = vpop.f32.mrb[76].mxu0 }
 0xebd   :  { %v3819_v63 = vpop.f32.mrb[77].mxu0  ;;  %v2640_v23 = vsel %vm484_vm8, %v4688_v58, -inf }
 0xebe   :  { %2641 = vmax.xlane.f32.xlu0 %v2640_v23  ;;  %v2637_v2 = vpop.f32.mrb[78].mxu0 }
 0xebf   :  { %v4009_v24 = vpop.eup %4008  ;;  %v3820_v3 = vpop.f32.mrb[79].mxu0 }
 0xec0   :  { %v1967_v54 = vsel %vm484_vm8, %v4009_v24, 0.0 }
 0xec2   :  { %1968 = vadd.xlane.f32.xlu0 %v1967_v54 }
 0xec4   :  { %v2744_v18 = vpop.f32.mrb[80].mxu0 }
 0xec5   :  { %v3831_v22 = vpop.f32.mrb[81].mxu0  ;;  %v2750_v57 = vsel %vm484_vm8, %v2744_v18, -inf }
 0xec6   :  { %2751 = vmax.xlane.f32.xlu1 %v2750_v57  ;;  %v2747_v27 = vpop.f32.mrb[82].mxu0 }
 0xec7   :  { %v3832_v4 = vpop.f32.mrb[83].mxu0 }
 0xed7   :  { %2084 = vrot.lane.b32.xlu1 %v4625_v60, %s4052_s9 }
 0xed8   :  { %2194 = vrot.lane.b32.xlu0 %v4625_v60, %s4053_s26 }
 0xf23   :  { %v2073_v5 = vpop.xlane.xlu1 %2072 }
 0xf24   :  { %v2074_v6 = vsub.f32 %v2065_v26, %v2073_v5 }
 0xf26   :  { %v2075_v7 = vmul.f32 1.442695, %v2074_v6 }
 0xf28   :  { %4010 = vpow2.f32 %v2075_v7 }
 0xf2b   :  { %v2184_v8 = vpop.xlane.xlu0 %2183 }
 0xf2c   :  { %v2185_v21 = vsub.f32 %v2176_v32, %v2184_v8  ;;  %v4717_v32 = vrot.slane %v2369_v1, 3 }
 0xf2e   :  { %v2186_v9 = vmul.f32 1.442695, %v2185_v21  ;;  %v2438_v27 = vsel %vm501_vm7, %v4717_v32, 0 }
 0xf30   :  { %4012 = vpow2.f32 %v2186_v9 }
 0xf32   :  { %v4698_v10 = vpop.eup %4010 }
 0xf33   :  { %v2294_v11 = vpop.xlane.xlu0 %2293  ;;  %v2077_v12 = vsel %vm484_vm8, %v4698_v10, 0.0 }
 0xf34   :  { %v2295_v13 = vsub.f32 %v2286_v37, %v2294_v11  ;;  %2078 = vadd.xlane.f32.xlu1 %v2077_v12 }
 0xf36   :  { %v2296_v14 = vmul.f32 1.442695, %v2295_v13 }
 0xf38   :  { %4014 = vpow2.f32 %v2296_v14 }
 0xf3a   :  { %v4702_v15 = vpop.eup %4012 }
 0xf3b   :  { %v2422_v16 = vpop.xlane.xlu0 %2421  ;;  %v2188_v17 = vsel %vm484_vm8, %v4702_v15, 0.0 }
 0xf3c   :  { %v2423_v19 = vsub.f32 %v2414_v42, %v2422_v16  ;;  %2189 = vadd.xlane.f32.xlu0 %v2188_v17 }
 0xf3e   :  { %v2424_v20 = vmul.f32 1.442695, %v2423_v19 }
 0xf40   :  { %4016 = vpow2.f32 %v2424_v20 }
 0xf42   :  { %v4706_v25 = vpop.eup %4014 }
 0xf43   :  { %v2298_v26 = vsel %vm484_vm8, %v4706_v25, 0.0  ;;  %v2532_v33 = vpop.xlane.xlu1 %2531 }
 0xf44   :  { %2299 = vadd.xlane.f32.xlu1 %v2298_v26  ;;  %v2533_v1 = vsub.f32 %v4684_v50, %v2532_v33 }
 0xf46   :  { %v2534_v40 = vmul.f32 1.442695, %v2533_v1 }
 0xf4a   :  { %v4710_v28 = vpop.eup %4016 }
 0xf4b   :  { %v2642_v29 = vpop.xlane.xlu0 %2641  ;;  %v2426_v30 = vsel %vm484_vm8, %v4710_v28, 0.0 }
 0xf4c   :  { %2427 = vadd.xlane.f32.xlu0 %v2426_v30  ;;  %v2643_v55 = vsub.f32 %v4688_v58, %v2642_v29 }
 0xf4e   :  { %v2644_v61 = vmul.f32 1.442695, %v2643_v55 }
 0xf4f   :  { %v1969_v31 = vpop.xlane.xlu0 %1968 }
 0xf50   :  { %4018 = vrcp.f32 %v1969_v31 }
 0xf51   :  { %4020 = vpow2.f32 %v2644_v61 }
 0xf52   :  { %4022 = vpow2.f32 %v2534_v40 }
 0xf53   :  { %v2752_v34 = vpop.xlane.xlu1 %2751  ;;  %v2195_v49 = vpop.permute.xlu0 %2194 }
 0xf54   :  { %v2753_v41 = vsub.f32 %v2744_v18, %v2752_v34  ;;  %v2200_v56 = vsel %vm501_vm7, %v2195_v49, 0 }
 0xf55   :  { %2542 = vrot.lane.b32.xlu1 %v4717_v32, %s4052_s9 }
 0xf56   :  { %v2754_v42 = vmul.f32 1.442695, %v2753_v41 }
 0xf57   :  { %v2085_v37 = vpop.permute.xlu1 %2084 }
 0xf58   :  { %v2090_v39 = vsel %vm501_vm7, %v2085_v37, 0  ;;  %4024 = vpow2.f32 %v2754_v42 }
 0xf5a   :  { %v4019_v35 = vpop.eup %4018 }
 0xf5b   :  { %v1971_v36 = vmul.f32 %v4019_v35, %v4009_v24  ;;  %v4730_v43 = vpop.eup %4020 }
 0xf5c   :  { %v2646_v44 = vsel %vm484_vm8, %v4730_v43, 0.0 }
 0xf5d   :  { %v1972_v38 = vpack.c.bf16 %v1971_v36, %v1971_v36 }
 0xf5f   :  { %3752 = vmatmul.mubr.msk.bf16.vlgmr.msra.gmra.mrb[52].mxu1 %vm497_vm9, %v1972_v38 }
 0xf60   :  { %3762 = vmatpush3.bf16.msra.mxu1 %v2090_v39  ;;  %3763 = vmatprep.mubr.msk.bf16.mxu1 %vm4051_vm0, %v4050_v0 }
 0xf61   :  { %3773 = vmatprep.subr.bf16.mxu1 %v4050_v0 }
 0xf62   :  { %2304 = vrot.lane.b32.xlu0 %v4625_v60, %s4962_s10  ;;  %v4023_v60 = vpop.eup %4022 }
 0xf63   :  { %v2536_v45 = vsel %vm484_vm8, %v4023_v60, 0.0  ;;  %v4735_v46 = vpop.eup %4024 }
 0xf64   :  { %v2756_v47 = vsel %vm484_vm8, %v4735_v46, 0.0 }
 0xf79   :  { %2647 = vadd.xlane.f32.xlu1 %v2646_v44 }
 0xf81   :  { %2537 = vadd.xlane.f32.xlu0 %v2536_v45 }
 0xf85   :  { %2757 = vadd.xlane.f32.xlu0 %v2756_v47 }
 0xf8a   :  { %2762 = vrot.lane.b32.xlu1 %v4717_v32, %s4962_s10 }
 0xf9b   :  { %2652 = vrot.lane.b32.xlu0 %v4717_v32, %s4053_s26 }
 0xfc1   :  { %v2079_v48 = vpop.xlane.xlu1 %2078 }
 0xfc2   :  { %4026 = vrcp.f32 %v2079_v48 }
 0xfc9   :  { %v2190_v50 = vpop.xlane.xlu0 %2189 }
 0xfca   :  { %4028 = vrcp.f32 %v2190_v50 }
 0xfcc   :  { %v4027_v51 = vpop.eup %4026 }
 0xfcd   :  { %v2081_v52 = vmul.f32 %v4027_v51, %v4698_v10  ;;  %v3944_v51 = vld [vmem:[%s4917_s13 + $0x10] sm:$0xff]  }
 0xfce   :  { %3840 = vmatpush3.bf16.msra.mxu0 %v3944_v51 }
 0xfcf   :  { %v2082_v53 = vpack.c.bf16 %v2081_v52, %v2081_v52  ;;  %3841 = vmatprep.subr.bf16.mxu0 %v4050_v0 }
 0xfd1   :  { %3764 = vmatmul.mubr.msk.bf16.vlgmr.msra.gmra.mrb[56].mxu1 %vm497_vm9, %v2082_v53  ;;  %v2300_v58 = vpop.xlane.xlu1 %2299 }
 0xfd2   :  { %3774 = vmatpush3.bf16.msra.mxu1 %v2200_v56  ;;  %4030 = vrcp.f32 %v2300_v58  ;;  %3775 = vmatprep.mubr.msk.bf16.mxu1 %vm4051_vm0, %v4050_v0  ;;  %v3945_v58 = vld [vmem:[%s4917_s13 + $0x18] sm:$0xff]  }
 0xfd3   :  { %3785 = vmatprep.subr.bf16.mxu1 %v4050_v0  ;;  %3842 = vmatpush3.bf16.msra.mxu0 %v3945_v58 }
 0xfd4   :  { %v4029_v63 = vpop.eup %4028  ;;  %3855 = vmatprep.subr.bf16.mxu0 %v4050_v0 }
 0xfd5   :  { %v2192_v23 = vmul.f32 %v4029_v63, %v4702_v15  ;;  %v2543_v6 = vpop.permute.xlu1 %2542 }
 0xfd6   :  { %v2548_v8 = vsel %vm501_vm7, %v2543_v6, 0 }
 0xfd7   :  { %v2193_v2 = vpack.c.bf16 %v2192_v23, %v2192_v23 }
 0xfd9   :  { %v2428_v24 = vpop.xlane.xlu0 %2427  ;;  %3776 = vmatmul.mubr.msk.bf16.vlgmr.msra.gmra.mrb[60].mxu1 %vm497_vm9, %v2193_v2 }
 0xfda   :  { %4032 = vrcp.f32 %v2428_v24  ;;  %3787 = vmatprep.mubr.msk.bf16.mxu1 %vm4051_vm0, %v4050_v0 }
 0xfdc   :  { %v4031_v3 = vpop.eup %4030 }
 0xfdd   :  { %v2302_v54 = vmul.f32 %v4031_v3, %v4706_v25  ;;  %v2305_v18 = vpop.permute.xlu0 %2304 }
 0xfde   :  { %v2310_v22 = vsel %vm501_vm7, %v2305_v18, 0 }
 0xfdf   :  { %3786 = vmatpush3.bf16.msra.mxu1 %v2310_v22  ;;  %v2303_v57 = vpack.c.bf16 %v2302_v54, %v2302_v54 }
 0xfe0   :  { %3797 = vmatprep.subr.bf16.mxu1 %v4050_v0 }
 0xfe2   :  { %3788 = vmatmul.mubr.msk.bf16.vlgmr.msra.gmra.mrb[64].mxu1 %vm497_vm9, %v2303_v57 }
 0xfe3   :  { %3798 = vmatpush3.bf16.msra.mxu1 %v2438_v27  ;;  %3799 = vmatprep.mubr.msk.bf16.mxu1 %vm4051_vm0, %v4050_v0 }
 0xfe4   :  { %v4033_v4 = vpop.eup %4032  ;;  %3809 = vmatprep.subr.bf16.mxu1 %v4050_v0 }
 0xfe5   :  { %v2430_v5 = vmul.f32 %v4033_v4, %v4710_v28 }
 0xfe7   :  { %v2431_v7 = vpack.c.bf16 %v2430_v5, %v2430_v5 }
 0xfea   :  { %3800 = vmatmul.mubr.msk.bf16.vlgmr.msra.gmra.mrb[68].mxu1 %vm497_vm9, %v2431_v7 }
 0xfeb   :  { %3810 = vmatpush3.bf16.msra.mxu1 %v2548_v8  ;;  %3811 = vmatprep.mubr.msk.bf16.mxu1 %vm4051_vm0, %v4050_v0 }
 0xfec   :  { %3821 = vmatprep.subr.bf16.mxu1 %v4050_v0 }
0x1006   :  { %v2648_v9 = vpop.xlane.xlu1 %2647 }
0x100a   :  { %v2763_v19 = vpop.permute.xlu1 %2762 }
0x100b   :  { %v2768_v26 = vsel %vm501_vm7, %v2763_v19, 0 }
0x100e   :  { %v2538_v21 = vpop.xlane.xlu0 %2537 }
0x100f   :  { %4034 = vrcp.f32 %v2538_v21 }
0x1010   :  { %4036 = vrcp.f32 %v2648_v9 }
0x1012   :  { %v2758_v10 = vpop.xlane.xlu0 %2757 }
0x1013   :  { %4038 = vrcp.f32 %v2758_v10 }
0x1016   :  { %v2653_v13 = vpop.permute.xlu0 %2652 }
0x1017   :  { %v2658_v16 = vsel %vm501_vm7, %v2653_v13, 0 }
0x1019   :  { %v4035_v11 = vpop.eup %4034 }
0x101a   :  { %v2540_v12 = vmul.f32 %v4035_v11, %v4023_v60  ;;  %v4037_v15 = vpop.eup %4036 }
0x101b   :  { %v2650_v17 = vmul.f32 %v4037_v15, %v4730_v43 }
0x101c   :  { %v2541_v14 = vpack.c.bf16 %v2540_v12, %v2540_v12 }
0x101d   :  { %v2651_v20 = vpack.c.bf16 %v2650_v17, %v2650_v17  ;;  %v4039_v25 = vpop.eup %4038 }
0x101e   :  { %3812 = vmatmul.mubr.msk.bf16.vlgmr.msra.gmra.mrb[72].mxu1 %vm497_vm9, %v2541_v14  ;;  %v2760_v28 = vmul.f32 %v4039_v25, %v4735_v46 }
0x101f   :  { %3822 = vmatpush3.bf16.msra.mxu1 %v2658_v16  ;;  %3823 = vmatprep.mubr.msk.bf16.mxu1 %vm4051_vm0, %v4050_v0  ;;  %v3378_v16 = vld [vmem:[%s4918_s14 + $0x1] ss:$0 sm:$0xff] }
0x1020   :  { %3833 = vmatprep.subr.bf16.mxu1 %v4050_v0  ;;  %v2761_v29 = vpack.c.bf16 %v2760_v28, %v2760_v28 }
0x1026   :  { %3824 = vmatmul.mubr.msk.bf16.vlgmr.msra.gmra.mrb[76].mxu1 %vm497_vm9, %v2651_v20 }
0x1027   :  { %3834 = vmatpush3.bf16.msra.mxu1 %v2768_v26  ;;  %3835 = vmatprep.mubr.msk.bf16.mxu1 %vm4051_vm0, %v4050_v0 }
0x1028   :  { %3847 = vmatprep.subr.bf16.mxu1 %v4050_v0 }
0x102e   :  { %3836 = vmatmul.mubr.msk.bf16.vlgmr.msra.gmra.mrb[80].mxu1 %vm497_vm9, %v2761_v29 }
0x102f   :  { %3851 = vmatprep.mubr.msk.bf16.mxu1 %vm4051_vm0, %v4050_v0 }
0x1032   :  { %v2013_v30 = vpop.f32.mrb[52].mxu1 }
0x1033   :  { %v3753_v31 = vpop.f32.mrb[53].mxu1 }
0x1034   :  { %v2016_v32 = vpop.f32.mrb[54].mxu1 }
0x1035   :  { %v3754_v33 = vpop.f32.mrb[55].mxu1 }
0x10a4   :  { %v2126_v34 = vpop.f32.mrb[56].mxu1 }
0x10a5   :  { %v3765_v35 = vpop.f32.mrb[57].mxu1 }
0x10a6   :  { %v2129_v36 = vpop.f32.mrb[58].mxu1 }
0x10a7   :  { %v3766_v37 = vpop.f32.mrb[59].mxu1 }
0x10ac   :  { %v2236_v38 = vpop.f32.mrb[60].mxu1 }
0x10ad   :  { %v3777_v39 = vpop.f32.mrb[61].mxu1 }
0x10ae   :  { %v2239_v55 = vpop.f32.mrb[62].mxu1 }
0x10af   :  { %v3778_v61 = vpop.f32.mrb[63].mxu1 }
0x10b5   :  { %v2346_v1 = vpop.f32.mrb[64].mxu1 }
0x10b6   :  { %v3789_v40 = vpop.f32.mrb[65].mxu1 }
0x10b7   :  { %v2349_v41 = vpop.f32.mrb[66].mxu1  ;;  %v3948_v40 = vld [vmem:[%s4920_s19 + $0x40] sm:$0xff]  }
0x10b8   :  { %v3790_v42 = vpop.f32.mrb[67].mxu1  ;;  %v3949_v41 = vld [vmem:[%s4920_s19 + $0x48] sm:$0xff]  }
0x10bd   :  { %v2474_v43 = vpop.f32.mrb[68].mxu1 }
0x10be   :  { %v3801_v44 = vpop.f32.mrb[69].mxu1 }
0x10bf   :  { %v2477_v60 = vpop.f32.mrb[70].mxu1 }
0x10c0   :  { %v3802_v45 = vpop.f32.mrb[71].mxu1 }
0x10f1   :  { %v2584_v46 = vpop.f32.mrb[72].mxu1 }
0x10f2   :  { %v3906_v47 = vpack.i.bf16 %v2126_v34, %v2584_v46  ;;  %v3813_v48 = vpop.f32.mrb[73].mxu1 }
0x10f3   :  { %v2587_v49 = vpop.f32.mrb[74].mxu1 }
0x10f4   :  { %3907 = vrot.lane.b32.xlu1 %v3906_v47, %s4963_s12  ;;  %v3814_v50 = vpop.f32.mrb[75].mxu1  ;;  %v3384_v49 = vld [vmem:[%s4921_s15 + $0x1] ss:$0 sm:$0xff] }
0x10f9   :  { %v2694_v52 = vpop.f32.mrb[76].mxu1 }
0x10fa   :  { %v3911_v53 = vpack.i.bf16 %v2236_v38, %v2694_v52  ;;  %v3825_v56 = vpop.f32.mrb[77].mxu1 }
0x10fb   :  { %v2697_v63 = vpop.f32.mrb[78].mxu1 }
0x10fc   :  { %3912 = vrot.lane.b32.xlu1 %v3911_v53, %s4964_s7  ;;  %v3826_v23 = vpop.f32.mrb[79].mxu1  ;;  %v3385_v53 = vld [vmem:[%s4922_s16 + $0x1] ss:$0 sm:$0xff] }
0x1101   :  { %v2804_v2 = vpop.f32.mrb[80].mxu1 }
0x1102   :  { %2819 = vrot.lane.b32.xlu1 %v2804_v2, %s4965_s3  ;;  %v3837_v24 = vpop.f32.mrb[81].mxu1  ;;  %v3950_v2 = vld [vmem:[%s4920_s19 + $0x50] sm:$0xff]  }
0x1103   :  { %v2807_v3 = vpop.f32.mrb[82].mxu1  ;;  %v3951_v24 = vld [vmem:[%s4920_s19 + $0x58] sm:$0xff]  }
0x1104   :  { %v3838_v54 = vpop.f32.mrb[83].mxu1  ;;  %v3952_v3 = vld [vmem:[%s4920_s19 + $0x60] sm:$0xff]  }
0x1105   :  { %v3953_v54 = vld [vmem:[%s4920_s19 + $0x68] sm:$0xff]  }
0x1106   :  { %2361 = vrot.lane.b32.xlu1 %v2346_v1, %s4965_s3  ;;  %v3947_v1 = vld [vmem:[%s4919_s17 + $0x18] sm:$0xff]  }
0x1166   :  { %v3908_v18 = vpop.permute.xlu1 %3907 }
0x1167   :  { %v3909_v57 = vunpack.i.l.bf16 %v3908_v18  ;;  %v3910_v4 = vunpack.i.h.bf16 %v3908_v18  ;;  %v3954_v18 = vld [vmem:[%s4920_s19 + $0x70] sm:$0xff]  }
0x1169   :  { %v2822_v5 = vsel %vm437_vm6, %v2474_v43, %v3909_v57  ;;  %v2364_v9 = vsel %vm437_vm6, %v2013_v30, %v3910_v4  ;;  %v3391_v57 = vld [vmem:[%s4923_s18 + $0x1] ss:$0 sm:$0xff] }
0x116e   :  { %v3913_v22 = vpop.permute.xlu1 %3912 }
0x116f   :  { %v3914_v27 = vunpack.i.l.bf16 %v3913_v22  ;;  %v3915_v6 = vunpack.i.h.bf16 %v3913_v22  ;;  %v3955_v22 = vld [vmem:[%s4920_s19 + $0x78] sm:$0xff]  }
0x1171   :  { %v2823_v8 = vsel %vm891_vm10, %v2822_v5, %v3914_v27  ;;  %v2365_v12 = vsel %vm891_vm10, %v2364_v9, %v3915_v6 }
0x1174   :  { %v2820_v7 = vpop.permute.xlu1 %2819 }
0x1175   :  { %v2824_v21 = vsel %vm893_vm11, %v2823_v8, %v2820_v7 }
0x1176   :  { %v2826_v10 = vrot.slane %v2824_v21, 2 }
0x1178   :  { %v2362_v11 = vpop.permute.xlu1 %2361 }
0x1179   :  { %v2366_v13 = vsel %vm893_vm11, %v2365_v12, %v2362_v11 }
0x117a   :  { %v2828_v14 = vsel %vm189_vm3, %v2366_v13, %v2826_v10 }
0x117b   :  { %v2829_v15 = vpack.c.bf16 %v2826_v10, %v2828_v14 }
0x117d   :  { %3844 = vmatmul.mubr.msk.bf16.vlgmr.msra.gmra.mrb[84].mxu0 %vm193_vm4, %v2829_v15 }
0x117e   :  { %3871 = vmatprep.mubr.msk.bf16.mxu0 %vm4051_vm0, %v4050_v0  ;;  %3856 = vmatpush3.bf16.msra.mxu0 %v3948_v40 }
0x117f   :  { %3857 = vmatprep.subr.bf16.mxu0 %v4050_v0 }
0x1182   :  { %3858 = vmatpush3.bf16.msra.mxu0 %v3949_v41  ;;  %v3421_v41 = vld [vmem:[%s4926_s21] ss:$0 sm:$0xff] }
0x1183   :  { %3859 = vmatprep.subr.bf16.mxu0 %v4050_v0 }
0x1186   :  { %3860 = vmatpush3.bf16.msra.mxu0 %v3950_v2 }
0x1187   :  { %3861 = vmatprep.subr.bf16.mxu0 %v4050_v0 }
0x118a   :  { %3862 = vmatpush3.bf16.msra.mxu0 %v3951_v24 }
0x118b   :  { %3863 = vmatprep.subr.bf16.mxu0 %v4050_v0 }
0x118e   :  { %3864 = vmatpush3.bf16.msra.mxu0 %v3952_v3 }
0x118f   :  { %3865 = vmatprep.subr.bf16.mxu0 %v4050_v0 }
0x1192   :  { %3866 = vmatpush3.bf16.msra.mxu0 %v3953_v54 }
0x1193   :  { %3867 = vmatprep.subr.bf16.mxu0 %v4050_v0 }
0x1196   :  { %3868 = vmatpush3.bf16.msra.mxu0 %v3954_v18 }
0x1197   :  { %3869 = vmatprep.subr.bf16.mxu0 %v4050_v0 }
0x119a   :  { %3870 = vmatpush3.bf16.msra.mxu0 %v3955_v22 }
0x1250   :  { %v2892_v17 = vpop.f32.mrb[84].mxu0 }
0x1251   :  { %v2893_v19 = vadd.f32 %v3378_v16, %v2892_v17  ;;  %v3845_v20 = vpop.f32.mrb[85].mxu0 }
0x1252   :  { %v2895_v25 = vpop.f32.mrb[86].mxu0  ;;  %v3412_v20 = vld [vmem:[%s4924_s20 + $0x1] ss:$0 sm:$0xff] }
0x1253   :  { %v4809_v26 = vadd.f32 %v2893_v19, %v4553_v59  ;;  %v2896_v28 = vadd.f32 %v3378_v16, %v2895_v25  ;;  %v3846_v29 = vpop.f32.mrb[87].mxu0 }
0x1255   :  { %v2905_v30 = vsel %vm193_vm4, %v4809_v26, 0.0  ;;  %v2900_v31 = vadd.f32 %v2896_v28, %v4556_v62  ;;  %v3946_v62 = vld [vmem:[%s4919_s17 + $0x10] sm:$0xff]  }
0x1256   :  { %2906 = vadd.xlane.f32.xlu0 %v2905_v30  ;;  %3848 = vmatpush3.bf16.msra.mxu1 %v3946_v62 }
0x1257   :  { %v2908_v32 = vsel %vm197_vm5, %v2900_v31, 0.0  ;;  %3849 = vmatprep.subr.bf16.mxu1 %v4050_v0 }
0x1258   :  { %2909 = vadd.xlane.f32.xlu1 %v2908_v32 }
0x125a   :  { %3850 = vmatpush3.bf16.msra.mxu1 %v3947_v1  ;;  %v3959_v1 = vld [vmem:[%s4925_s23 + $0x18] sm:$0xff]  }
0x125b   :  { %3875 = vmatprep.subr.bf16.mxu1 %v4050_v0 }
0x12e3   :  { %v2907_v33 = vpop.xlane.xlu0 %2906 }
0x12e4   :  { %v2911_v34 = vmul.f32 0.03125, %v2907_v33 }
0x12e5   :  { %v2910_v35 = vpop.xlane.xlu1 %2909 }
0x12e6   :  { %v2913_v36 = vsub.f32 %v4809_v26, %v2911_v34  ;;  %v2912_v37 = vmul.f32 0.03125, %v2910_v35 }
0x12e8   :  { %v2914_v38 = vsub.f32 %v2900_v31, %v2912_v37  ;;  %v2915_v59 = vmul.f32 %v2913_v36, %v2913_v36 }
0x12ea   :  { %v2917_v39 = vsel %vm193_vm4, %v2915_v59, 0.0  ;;  %v2916_v55 = vmul.f32 %v2914_v38, %v2914_v38  ;;  %v3956_v59 = vld [vmem:[%s4925_s23] sm:$0xff]  }
0x12eb   :  { %2918 = vadd.xlane.f32.xlu0 %v2917_v39  ;;  %v3957_v39 = vld [vmem:[%s4925_s23 + $0x8] sm:$0xff]  }
0x12ec   :  { %v2920_v61 = vsel %vm197_vm5, %v2916_v55, 0.0 }
0x12ef   :  { %2921 = vadd.xlane.f32.xlu0 %v2920_v61 }
0x1378   :  { %v2919_v42 = vpop.xlane.xlu0 %2918 }
0x1379   :  { %v2923_v43 = vmul.f32 0.03125, %v2919_v42 }
0x137b   :  { %v2925_v44 = vadd.f32 1e-06, %v2923_v43  ;;  %v3422_v43 = vld [vmem:[%s4927_s22] ss:$0 sm:$0xff] }
0x137c   :  { %v2922_v60 = vpop.xlane.xlu0 %2921 }
0x137d   :  { %4040 = vrsqrt.f32 %v2925_v44  ;;  %v2924_v45 = vmul.f32 0.03125, %v2922_v60  ;;  %v30_v44 = vstv %s4928_s24 }
0x137e   :  { %31 = vst [vmem:[#allocation2] sm:$0x1] %v30_v44 }
0x137f   :  { %v2926_v46 = vadd.f32 1e-06, %v2924_v45 }
0x1381   :  { %4042 = vrsqrt.f32 %v2926_v46 }
0x1387   :  { %v4041_v47 = vpop.eup %4040 }
0x1388   :  { %v2929_v48 = vmul.f32 %v4041_v47, %v2913_v36 }
0x138a   :  { %v2937_v51 = vmul.f32 %v3384_v49, %v2929_v48 }
0x138b   :  { %v4043_v50 = vpop.eup %4042 }
0x138c   :  { %v2930_v52 = vmul.f32 %v4043_v50, %v2914_v38  ;;  %v2945_v58 = vadd.f32 %v3385_v53, %v2937_v51  ;;  %v3423_v51 = vld [vmem:[#allocation2] ss:$0 sm:$0xff] }
0x138e   :  { %v2938_v56 = vmul.f32 %v3384_v49, %v2930_v52 }
0x1390   :  { %v2946_v63 = vadd.f32 %v3385_v53, %v2938_v56 }
0x1392   :  { %v2947_v23 = vpack.c.bf16 %v2946_v63, %v2945_v58 }
0x1394   :  { %3852 = vmatmul.mubr.msk.bf16.vlgmr.msra.gmra.mrb[84].mxu1 %vm193_vm4, %v2947_v23 }
0x1395   :  { %3883 = vmatprep.mubr.msk.bf16.mxu1 %vm4051_vm0, %v4050_v0  ;;  %3876 = vmatpush3.bf16.msra.mxu1 %v3956_v59 }
0x1396   :  { %3877 = vmatprep.subr.bf16.mxu1 %v4050_v0 }
0x1399   :  { %3878 = vmatpush3.bf16.msra.mxu1 %v3957_v39 }
0x139a   :  { %3879 = vmatprep.subr.bf16.mxu1 %v4050_v0 }
0x1467   :  { %v3010_v27 = vpop.f32.mrb[84].mxu1 }
0x1468   :  { %v3011_v4 = vadd.f32 %v3391_v57, %v3010_v27  ;;  %v3853_v5 = vpop.f32.mrb[85].mxu1 }
0x1469   :  { %v3013_v6 = vpop.f32.mrb[86].mxu1 }
0x146a   :  { %v3019_v7 = vmul.f32 0.70710677, %v3011_v4  ;;  %v3014_v8 = vadd.f32 %v3391_v57, %v3013_v6  ;;  %v3854_v21 = vpop.f32.mrb[87].mxu1  ;;  %v3017_v13 = vmul.f32 0.5, %v3011_v4 }
0x146c   :  { %4044 = verf.f32 %v3019_v7  ;;  %v3020_v9 = vmul.f32 0.70710677, %v3014_v8  ;;  %v3018_v14 = vmul.f32 0.5, %v3014_v8 }
0x146e   :  { %4046 = verf.f32 %v3020_v9 }
0x1476   :  { %v4045_v10 = vpop.eup %4044 }
0x1477   :  { %v3023_v11 = vadd.f32 1.0, %v4045_v10 }
0x1478   :  { %v4047_v12 = vpop.eup %4046 }
0x1479   :  { %v3024_v15 = vadd.f32 1.0, %v4047_v12  ;;  %v3025_v16 = vmul.f32 %v3023_v11, %v3017_v13 }
0x147b   :  { %v3026_v17 = vmul.f32 %v3024_v15, %v3018_v14 }
0x147d   :  { %v3027_v19 = vpack.c.bf16 %v3026_v17, %v3025_v16 }
0x147f   :  { %3872 = vmatmul.mubr.bf16.vlgmr.msra.gmra.mrb[88].mxu0 %v3027_v19 }
0x1552   :  { %v3135_v25 = vpop.f32.mrb[88].mxu0 }
0x1553   :  { %v3136_v28 = vadd.f32 %v3412_v20, %v3135_v25  ;;  %v3873_v29 = vpop.f32.mrb[89].mxu0 }
0x1554   :  { %v3138_v30 = vpop.f32.mrb[90].mxu0 }
0x1555   :  { %v3874_v31 = vpop.f32.mrb[91].mxu0  ;;  %v3141_v32 = vadd.f32 %v3136_v28, %v4809_v26  ;;  %v3958_v26 = vld [vmem:[%s4925_s23 + $0x10] sm:$0xff]   ;;  %s4058_s23 = smov 32  }
0x1556   :  { %3880 = vmatpush3.bf16.msra.mxu1 %v3958_v26 }
0x1557   :  { %v3144_v33 = vsel %vm193_vm4, %v3141_v32, 0.0  ;;  %3881 = vmatprep.subr.bf16.mxu1 %v4050_v0 }
0x1558   :  { %3145 = vadd.xlane.f32.xlu0 %v3144_v33 }
0x155a   :  { %3882 = vmatpush3.bf16.msra.mxu1 %v3959_v1 }
0x15e5   :  { %v3146_v34 = vpop.xlane.xlu0 %3145 }
0x15e6   :  { %v3147_v35 = vmul.f32 0.03125, %v3146_v34 }
0x15e8   :  { %v3148_v36 = vsub.f32 %v3141_v32, %v3147_v35 }
0x15ea   :  { %v3149_v37 = vmul.f32 %v3148_v36, %v3148_v36 }
0x15ec   :  { %v3150_v38 = vsel %vm193_vm4, %v3149_v37, 0.0 }
0x15ed   :  { %3151 = vadd.xlane.f32.xlu1 %v3150_v38 }
0x167a   :  { %v3152_v55 = vpop.xlane.xlu1 %3151 }
0x167b   :  { %v3153_v61 = vmul.f32 0.03125, %v3152_v55 }
0x167d   :  { %v3154_v62 = vadd.f32 1e-06, %v3153_v61 }
0x167f   :  { %4048 = vrsqrt.f32 %v3154_v62 }
0x1689   :  { %v4049_v40 = vpop.eup %4048 }
0x168a   :  { %v3156_v42 = vmul.f32 %v4049_v40, %v3148_v36 }
0x168c   :  { %v3163_v0 = vmul.f32 %v3421_v41, %v3156_v42 }
0x168e   :  { %v3170_v60 = vadd.f32 %v3422_v43, %v3163_v0 }
0x1690   :  { %v3172_v45 = vrot.slane %v3170_v60, 1 }
0x1692   :  { %3173 = vrot.lane.b32.xlu0 %v3172_v45, %s4058_s23 }
0x1704   :  { %v3174_v46 = vpop.permute.xlu0 %3173 }
0x1705   :  { %v3176_v47 = vsel %vm193_vm4, %v3170_v60, %v3174_v46 }
0x1706   :  { %v3178_v48 = vrot.slane %v3176_v47, 5 }
0x1708   :  { %v3181_v49 = vsel %vm3180_vm12, %v3176_v47, %v3178_v48 }
0x1709   :  { %v3182_v50 = vpack.c.bf16 %v3181_v49, %v3181_v49 }
0x170b   :  { %3884 = vmatmul.mubr.msk.bf16.vlgmr.msra.gmra.mrb[88].mxu1 %vm124_vm1, %v3182_v50 }
0x17de   :  { %v3259_v52 = vpop.f32.mrb[88].mxu1 }
0x17df   :  { %v3260_v53 = vadd.f32 %v3423_v51, %v3259_v52  ;;  %v3885_v56 = vpop.f32.mrb[89].mxu1 }
0x17e0   :  { %v3262_v58 = vpop.f32.mrb[90].mxu1 }
0x17e1   :  { %3266 = vst.msk [vmem:[%s4929_s25] sm:$0x3] %vm3265_vm13, %v3260_v53  ;;  %v3886_v63 = vpop.f32.mrb[91].mxu1 }

</bundles_post_ra>
